<compile_context>
chip_gen: v6e
topology: v6e:2x2x1
jax: 0.10.0
libtpu: 0.0.40
codegen_flags: <defaults>
</compile_context>

<pallas_src>
import functools

import jax
import jax.numpy as jnp
from jax import lax
from jax.experimental import pallas as pl
from jax.experimental.pallas import tpu as pltpu

EPS_NORM = 1e-8   # norm_no_nan clamp
EPS_LN = 1e-5     # nn.LayerNorm default eps

FLAG_AGG = 1      # this step aggregates a valid edge tile
FLAG_FIRST = 2    # first step of this node tile  -> zero the accumulator
FLAG_LAST = 4     # last step of this node tile   -> finalize + store


# ---------------------------------------------------------------------------
# Feature-major math helpers used inside the kernels.
#   s : [channels, T]      v : 3-tuple of [channels, T]  (x/y/z components)
# Weights are pre-transposed to [out, in]; MXU operands are cast to the weight
# dtype (bf16); accumulation and all elementwise math stay f32.
# ---------------------------------------------------------------------------
def _gvp_fm(s, v, whT, wvT, wsS, wsV, wsb, *, scalar_act, vector_act):
    """Geometric Vector Perceptron (vector_gate=False), feature-major."""
    mm = whT.dtype
    vh = tuple(jnp.dot(whT, vc.astype(mm), preferred_element_type=jnp.float32)
               for vc in v)                                            # 3 x [h,T]
    vn = jnp.sqrt(jnp.maximum(vh[0] * vh[0] + vh[1] * vh[1] + vh[2] * vh[2],
                              EPS_NORM))                               # [h,T]
    # split-weight form of Ws @ concat([s, vn])  (no lane/sublane concat)
    s_out = (jnp.dot(wsS, s.astype(mm), preferred_element_type=jnp.float32)
             + jnp.dot(wsV, vn.astype(mm), preferred_element_type=jnp.float32)
             + wsb)                                                    # [so,T]
    v_out = tuple(jnp.dot(wvT, vhc.astype(mm),
                          preferred_element_type=jnp.float32)
                  for vhc in vh)                                       # 3 x [vo,T]
    if vector_act:   # sigmoid(||v||) gating (default activations)
        gate = jax.nn.sigmoid(jnp.sqrt(jnp.maximum(
            v_out[0] * v_out[0] + v_out[1] * v_out[1] + v_out[2] * v_out[2],
            EPS_NORM)))
        v_out = tuple(vc * gate for vc in v_out)
    if scalar_act:   # relu
        s_out = jnp.maximum(s_out, 0.0)
    return s_out, v_out


def _layer_norm_fm(s, v, gamma, beta):
    """Combined LayerNorm for (s, V), feature-major (reduce over sublane rows)."""
    mu = jnp.mean(s, axis=0, keepdims=True)
    var = jnp.mean((s - mu) ** 2, axis=0, keepdims=True)
    s_out = (s - mu) * lax.rsqrt(var + EPS_LN) * gamma + beta
    sq = jnp.maximum(v[0] * v[0] + v[1] * v[1] + v[2] * v[2], EPS_NORM)  # [nv,T]
    inv_vn = lax.rsqrt(jnp.mean(sq, axis=0, keepdims=True))              # [1,T]
    return s_out, tuple(vc * inv_vn for vc in v)


# ---------------------------------------------------------------------------
# Kernel 1: per-edge message function (3 chained GVPs), feature-major.
# args: packed message-input block [D_in, TE], 15 weights (3 GVPs x 5), out.
# ---------------------------------------------------------------------------
def _message_kernel(min_ref, *rest, s_in, v_in):
    w = [r[...] for r in rest[:15]]
    out_ref = rest[15]

    s = min_ref[:s_in, :]
    v = tuple(min_ref[s_in + c * v_in: s_in + (c + 1) * v_in, :]
              for c in range(3))

    s, v = _gvp_fm(s, v, *w[0:5], scalar_act=True, vector_act=True)
    s, v = _gvp_fm(s, v, *w[5:10], scalar_act=True, vector_act=True)
    s, v = _gvp_fm(s, v, *w[10:15], scalar_act=False, vector_act=False)

    ns = s.shape[0]
    nv = v[0].shape[0]
    # lane-dense packed store: [s | vx | vy | vz] sublane-row ranges.
    out_ref[:ns, :] = s.astype(out_ref.dtype)
    for c in range(3):
        out_ref[ns + c * nv: ns + (c + 1) * nv, :] = v[c].astype(out_ref.dtype)


# ---------------------------------------------------------------------------
# Kernel 2: CSR scatter-mean aggregation + residual + LN + FF(2 GVPs)
#           + residual + LN.  1-D staircase grid driven by scalar prefetch.
# ---------------------------------------------------------------------------
def _update_kernel(nstep_ref, estep_ref, flags_ref,
                   dst_ref, msg_ref, x_ref, invc_ref, *rest, ns, nv):
    out_ref = rest[14]
    acc_ref = rest[15]

    g = pl.program_id(0)
    flags = flags_ref[g]

    @pl.when((flags & FLAG_FIRST) != 0)
    def _():
        acc_ref[...] = jnp.zeros_like(acc_ref)

    @pl.when((flags & FLAG_AGG) != 0)
    def _():
        tn = acc_ref.shape[1]
        te = dst_ref.shape[1]
        node_base = nstep_ref[g] * tn
        # (tn, te) slice of the one-hot destination matrix, built on the fly.
        row_ids = node_base + lax.broadcasted_iota(jnp.int32, (tn, te), 0)
        onehot = (row_ids == dst_ref[...]).astype(msg_ref.dtype)        # [tn,te]
        # acc[C, tn] += msg[C, te] . onehot[tn, te]^T  (contract the edge dim)
        acc_ref[...] += lax.dot_general(
            msg_ref[...], onehot,
            dimension_numbers=(((1,), (1,)), ((), ())),
            preferred_element_type=jnp.float32)

    @pl.when((flags & FLAG_LAST) != 0)
    def _():
        ln0g, ln0b = rest[0][...], rest[1][...]
        ffw = [r[...] for r in rest[2:12]]
        ln1g, ln1b = rest[12][...], rest[13][...]

        dh = acc_ref[...] * invc_ref[...]          # scatter-mean (count >= 1)
        hp = x_ref[...] + dh                       # residual, packed [C, tn]

        s = hp[:ns, :]
        v = tuple(hp[ns + c * nv: ns + (c + 1) * nv, :] for c in range(3))
        s, v = _layer_norm_fm(s, v, ln0g, ln0b)

        fs, fv = _gvp_fm(s, v, *ffw[0:5], scalar_act=True, vector_act=True)
        fs, fv = _gvp_fm(fs, fv, *ffw[5:10], scalar_act=False, vector_act=False)

        s = s + fs
        v = tuple(v[c] + fv[c] for c in range(3))
        s, v = _layer_norm_fm(s, v, ln1g, ln1b)

        out_ref[:ns, :] = s
        for c in range(3):
            out_ref[ns + c * nv: ns + (c + 1) * nv, :] = v[c]


# ---------------------------------------------------------------------------
# Wrapper
# ---------------------------------------------------------------------------
def _prep_gvp_fm(w4, si, mm_dtype):
    """(wh[vi,h], wv[h,vo], ws[(si+h),so], b[1,so]) -> transposed/split weights."""
    wh, wv, wsw, wsb = w4
    return (wh.T.astype(mm_dtype),          # whT [h, vi]
            wv.T.astype(mm_dtype),          # wvT [vo, h]
            wsw[:si].T.astype(mm_dtype),    # wsS [so, si]
            wsw[si:].T.astype(mm_dtype),    # wsV [so, h]
            wsb.T.astype(jnp.float32))      # b   [so, 1]


def gvp_conv_layer(x_s, x_v, edge_index, e_s, e_v, params, *,
                   edge_tile=1024, node_tile=128):
    """x_s [N, ns], x_v [3, N, nv] (component-major), e_s [E, se], e_v [3, E, ve]."""
    msg_w, ff_w, ln0, ln1 = params
    N, ns = x_s.shape
    nv = x_v.shape[-1]
    se = e_s.shape[-1]
    ve = e_v.shape[-1]
    E = edge_index.shape[1]
    C = ns + 3 * nv
    S_in = 2 * ns + se
    V_in = 2 * nv + ve
    D_in = S_in + 3 * V_in

    mm_dtype = jnp.bfloat16   # MXU operand dtype; accumulation stays f32

    TE, TN = edge_tile, node_tile
    E_pad = pl.cdiv(E, TE) * TE
    N_pad = pl.cdiv(N, TN) * TN
    ET = E_pad // TE
    NT = N_pad // TN

    # kernel weights: [out, in] transposed, scalar weight split into (s | vn).
    msg_wk = (_prep_gvp_fm(msg_w[0:4], S_in, mm_dtype)
              + _prep_gvp_fm(msg_w[4:8], ns, mm_dtype)
              + _prep_gvp_fm(msg_w[8:12], ns, mm_dtype))
    ff_wk = (_prep_gvp_fm(ff_w[0:4], ns, mm_dtype)
             + _prep_gvp_fm(ff_w[4:8], 4 * ns, mm_dtype))
    ln0k = (ln0[0].T, ln0[1].T)                     # [ns, 1]
    ln1k = (ln1[0].T, ln1[1].T)

    src = edge_index[0].astype(jnp.int32)
    dst = edge_index[1].astype(jnp.int32)

    # --- glue: sort edges by destination (CSR) and pack feature-major -------
    order = jnp.argsort(dst)
    src_s, dst_s = src[order], dst[order]
    e_s_s = e_s[order]
    e_v_s = e_v[:, order]

    xsT = x_s.T                                     # [ns, N]
    xvT = jnp.transpose(x_v, (0, 2, 1))             # [3, nv, N]
    parts = [xsT[:, src_s], e_s_s.T, xsT[:, dst_s]]                 # scalar rows
    for c in range(3):
        parts += [xvT[c][:, src_s], e_v_s[c].T, xvT[c][:, dst_s]]   # vector rows
    msg_in = jnp.concatenate(parts, axis=0).astype(mm_dtype)        # [D_in, E]
    msg_in = jnp.pad(msg_in, ((0, 0), (0, E_pad - E)))

    # padded edges carry the sentinel N_pad, which never matches a node row id
    # (< N_pad), so they contribute nothing to the aggregation.
    dst2d = jnp.pad(dst_s, (0, E_pad - E), constant_values=N_pad)[None, :]

    # mean normalisation: 1 / max(in_degree, 1)   (zero-degree nodes -> 0)
    cnt = jnp.zeros((N,), jnp.float32).at[dst].add(1.0)
    inv_cnt = 1.0 / jnp.maximum(cnt, 1.0)
    inv_cnt = jnp.pad(inv_cnt, (0, N_pad - N), constant_values=1.0)[None, :]

    # packed node features [s | vx | vy | vz] rows, feature-major, f32.
    x_packed = jnp.concatenate([xsT, xvT[0], xvT[1], xvT[2]], axis=0)
    x_packed = jnp.pad(x_packed, ((0, 0), (0, N_pad - N)))          # [C, N_pad]

    # --- CSR staircase step table (scalar prefetch) --------------------------
    bounds = jnp.arange(NT + 1, dtype=jnp.int32) * TN
    pos = jnp.searchsorted(dst_s, bounds).astype(jnp.int32)         # [NT+1]
    lo, hi = pos[:-1], pos[1:]
    first_tile = lo // TE
    ntiles = jnp.maximum((hi + TE - 1) // TE - first_tile, 0)
    steps = jnp.maximum(ntiles, 1)       # >= 1 so every node tile finalizes
    cum = jnp.concatenate([jnp.zeros((1,), jnp.int32),
                           jnp.cumsum(steps, dtype=jnp.int32)])
    total = cum[-1]

    G = ET + 2 * NT                      # static bound, always >= total
    g_idx = jnp.arange(G, dtype=jnp.int32)
    node_of = jnp.clip(
        jnp.searchsorted(cum, g_idx, side="right").astype(jnp.int32) - 1,
        0, NT - 1)
    k_in = g_idx - cum[node_of]
    live = g_idx < total
    etile = jnp.clip(first_tile[node_of] + k_in, 0, ET - 1)
    flags = ((live & (k_in < ntiles[node_of])).astype(jnp.int32) * FLAG_AGG
             + (live & (k_in == 0)).astype(jnp.int32) * FLAG_FIRST
             + (live & (k_in == steps[node_of] - 1)).astype(jnp.int32) * FLAG_LAST)
    # padded steps hold the last block indices -> no extra DMA / writeback.
    node_step = jnp.where(live, node_of, NT - 1)
    etile_step = jnp.where(live, etile, ET - 1)

    # --- kernel 1: per-edge messages -----------------------------------------
    w_spec1 = [pl.BlockSpec(w.shape, lambda i: (0, 0)) for w in msg_wk]
    blocks1 = D_in * TE * 2 + C * TE * 2
    vmem1 = int(min(2 * blocks1 + sum(int(w.size) * 4 for w in msg_wk)
                    + 8 * 1024 * 1024, 48 * 1024 * 1024))
    msg_out = pl.pallas_call(
        functools.partial(_message_kernel, s_in=S_in, v_in=V_in),
        grid=(ET,),
        in_specs=[pl.BlockSpec((D_in, TE), lambda i: (0, i))] + w_spec1,
        out_specs=pl.BlockSpec((C, TE), lambda i: (0, i)),
        out_shape=jax.ShapeDtypeStruct((C, E_pad), mm_dtype),
        compiler_params=pltpu.CompilerParams(
            dimension_semantics=("parallel",),
            vmem_limit_bytes=vmem1),
    )(msg_in, *msg_wk)

    # --- kernel 2: CSR aggregation + residual + LN + FF + residual + LN ------
    upd_w = [ln0k[0], ln0k[1], *ff_wk, ln1k[0], ln1k[1]]
    w_spec2 = [pl.BlockSpec(w.shape, lambda g, n_, e_, f_: (0, 0)) for w in upd_w]
    blocks2 = TE * 4 + C * TE * 2 + C * TN * 4 + TN * 4 + C * TN * 4
    vmem2 = int(min(2 * blocks2 + C * TN * 4 + TN * TE * 8
                    + sum(int(w.size) * 4 for w in upd_w)
                    + 8 * 1024 * 1024, 48 * 1024 * 1024))
    grid_spec = pltpu.PrefetchScalarGridSpec(
        num_scalar_prefetch=3,
        grid=(G,),
        in_specs=[pl.BlockSpec((1, TE), lambda g, n_, e_, f_: (0, e_[g])),   # dst
                  pl.BlockSpec((C, TE), lambda g, n_, e_, f_: (0, e_[g])),   # msg
                  pl.BlockSpec((C, TN), lambda g, n_, e_, f_: (0, n_[g])),   # x
                  pl.BlockSpec((1, TN), lambda g, n_, e_, f_: (0, n_[g]))]   # 1/cnt
                 + w_spec2,
        out_specs=pl.BlockSpec((C, TN), lambda g, n_, e_, f_: (0, n_[g])),
        scratch_shapes=[pltpu.VMEM((C, TN), jnp.float32)])
    out_packed = pl.pallas_call(
        functools.partial(_update_kernel, ns=ns, nv=nv),
        grid_spec=grid_spec,
        out_shape=jax.ShapeDtypeStruct((C, N_pad), jnp.float32),
        compiler_params=pltpu.CompilerParams(
            dimension_semantics=("arbitrary",),
            vmem_limit_bytes=vmem2),
    )(node_step, etile_step, flags, dst2d, msg_out, x_packed, inv_cnt, *upd_w)

    out_s = out_packed[:ns, :N].T
    out_v = jnp.stack([out_packed[ns + c * nv: ns + (c + 1) * nv, :N].T
                       for c in range(3)], axis=0)
    return out_s, out_v


# ---------------------------------------------------------------------------
# Pure-JAX f32 item-major reference (same math, no Pallas) for a check.
# ---------------------------------------------------------------------------
def _gvp_ref(s, v3, wh, wv, wsw, wsb, *, scalar_act, vector_act):
    T = s.shape[0]
    vi = v3.shape[-1]
    h = wh.shape[-1]
    vo = wv.shape[-1]
    vh = jnp.dot(v3.reshape(3 * T, vi), wh).reshape(3, T, h)
    vn = jnp.sqrt(jnp.maximum(vh[0] ** 2 + vh[1] ** 2 + vh[2] ** 2, EPS_NORM))
    s_out = jnp.dot(jnp.concatenate([s, vn], -1), wsw) + wsb
    v_out = jnp.dot(vh.reshape(3 * T, h), wv).reshape(3, T, vo)
    if vector_act:
        gate = jax.nn.sigmoid(jnp.sqrt(jnp.maximum(
            v_out[0] ** 2 + v_out[1] ** 2 + v_out[2] ** 2, EPS_NORM)))
        v_out = v_out * gate[None]
    if scalar_act:
        s_out = jnp.maximum(s_out, 0.0)
    return s_out, v_out


def _layer_norm_ref(s, v3, gamma, beta):
    mu = jnp.mean(s, -1, keepdims=True)
    var = jnp.mean((s - mu) ** 2, -1, keepdims=True)
    s_out = (s - mu) / jnp.sqrt(var + EPS_LN) * gamma + beta
    sq = jnp.maximum(v3[0] ** 2 + v3[1] ** 2 + v3[2] ** 2, EPS_NORM)
    vn = jnp.sqrt(jnp.mean(sq, -1, keepdims=True))
    return s_out, v3 / vn


def reference_forward(x_s, x_v, edge_index, e_s, e_v, params):
    msg_w, ff_w, ln0, ln1 = params
    N = x_s.shape[0]
    src, dst = edge_index[0], edge_index[1]

    s = jnp.concatenate([x_s[src], e_s, x_s[dst]], axis=-1)
    v3 = jnp.concatenate([x_v[:, src, :], e_v, x_v[:, dst, :]], axis=-1)
    s, v3 = _gvp_ref(s, v3, *msg_w[0:4], scalar_act=True, vector_act=True)
    s, v3 = _gvp_ref(s, v3, *msg_w[4:8], scalar_act=True, vector_act=True)
    s, v3 = _gvp_ref(s, v3, *msg_w[8:12], scalar_act=False, vector_act=False)

    cnt = jnp.zeros((N,), jnp.float32).at[dst].add(1.0)
    denom = jnp.maximum(cnt, 1.0)[:, None]
    dh_s = jnp.zeros((N, s.shape[-1]), jnp.float32).at[dst].add(s) / denom
    dh_v = jnp.stack([jnp.zeros((N, v3.shape[-1]), jnp.float32).at[dst].add(v3[c])
                      for c in range(3)], axis=0) / denom[None]

    s_n, v_n = _layer_norm_ref(x_s + dh_s, x_v + dh_v, ln0[0], ln0[1])
    fs, fv = _gvp_ref(s_n, v_n, *ff_w[0:4], scalar_act=True, vector_act=True)
    fs, fv = _gvp_ref(fs, fv, *ff_w[4:8], scalar_act=False, vector_act=False)
    s_n, v_n = _layer_norm_ref(s_n + fs, v_n + fv, ln1[0], ln1[1])
    return s_n, v_n


# ---------------------------------------------------------------------------
# Deterministic parameter construction (synthetic, matches module shapes).
# ---------------------------------------------------------------------------
def make_gvp_params(key, si, vi, so, vo):
    h = max(vi, vo)  # GVP h_dim = max(vi, vo)
    k1, k2, k3, k4 = jax.random.split(key, 4)
    wh = jax.random.normal(k1, (vi, h), jnp.float32) / jnp.sqrt(float(vi))
    wv = jax.random.normal(k2, (h, vo), jnp.float32) / jnp.sqrt(float(h))
    wsw = jax.random.normal(k3, (h + si, so), jnp.float32) / jnp.sqrt(float(h + si))
    wsb = 0.1 * jax.random.normal(k4, (1, so), jnp.float32)
    return (wh, wv, wsw, wsb)


if __name__ == "__main__":
    # node_dims = (8, 4), edge_dims = (4, 2), n_message=3, n_feedforward=2
    NS, NV = 8, 4
    SE, VE = 4, 2
    N, E = 200, 3000     # non-tile-aligned; >1 edge tile exercises the staircase

    key = jax.random.PRNGKey(0)
    keys = jax.random.split(key, 16)

    x_s = jax.random.normal(keys[0], (N, NS), jnp.float32)
    x_v = jax.random.normal(keys[1], (3, N, NV), jnp.float32)   # component-major
    e_s = jax.random.normal(keys[2], (E, SE), jnp.float32)
    e_v = jax.random.normal(keys[3], (3, E, VE), jnp.float32)
    src = jax.random.randint(keys[4], (E,), 0, N, jnp.int32)
    dst = jax.random.randint(keys[5], (E,), 0, N, jnp.int32)
    edge_index = jnp.stack([src, dst], axis=0)

    # message_func: GVP((2ns+se, 2nv+ve)->(ns,nv)), GVP((ns,nv)->(ns,nv)),
    #               GVP((ns,nv)->(ns,nv), activations=(None,None))
    msg_w = (make_gvp_params(keys[6], 2 * NS + SE, 2 * NV + VE, NS, NV)
             + make_gvp_params(keys[7], NS, NV, NS, NV)
             + make_gvp_params(keys[8], NS, NV, NS, NV))
    # ff_func: GVP((ns,nv)->(4ns,2nv)), GVP((4ns,2nv)->(ns,nv), acts=(None,None))
    HS, HV = 4 * NS, 2 * NV
    ff_w = (make_gvp_params(keys[9], NS, NV, HS, HV)
            + make_gvp_params(keys[10], HS, HV, NS, NV))
    ln0 = (1.0 + 0.05 * jax.random.normal(keys[11], (1, NS), jnp.float32),
           0.05 * jax.random.normal(keys[12], (1, NS), jnp.float32))
    ln1 = (1.0 + 0.05 * jax.random.normal(keys[13], (1, NS), jnp.float32),
           0.05 * jax.random.normal(keys[14], (1, NS), jnp.float32))
    params = (msg_w, ff_w, ln0, ln1)

    out_s, out_v = gvp_conv_layer(x_s, x_v, edge_index, e_s, e_v, params,
                                  edge_tile=1024, node_tile=128)
    out_s, out_v = jax.block_until_ready((out_s, out_v))

    ref_s, ref_v = reference_forward(x_s, x_v, edge_index, e_s, e_v, params)
    assert out_s.shape == (N, NS) and out_v.shape == (3, N, NV)
    # Kernel uses bf16 MXU operands (inputs, weights, packed messages) with f32
    # accumulation -> looser tolerance than a pure-f32 comparison.
    assert jnp.allclose(out_s, ref_s, atol=5e-2, rtol=5e-2), "scalar mismatch"
    assert jnp.allclose(out_v, ref_v, atol=5e-2, rtol=5e-2), "vector mismatch"

    print("KERNEL_OK")
</pallas_src>

<mosaic_0001>
module attributes {stable_mosaic.version = 11 : i64} {
  func.func @_message_kernel(%arg0: i32, %arg1: memref<50x1024xbf16, #tpu.memory_space<vmem>>, %arg2: memref<10x10xbf16, #tpu.memory_space<vmem>>, %arg3: memref<4x10xbf16, #tpu.memory_space<vmem>>, %arg4: memref<8x20xbf16, #tpu.memory_space<vmem>>, %arg5: memref<8x10xbf16, #tpu.memory_space<vmem>>, %arg6: memref<8x1xf32, #tpu.memory_space<vmem>>, %arg7: memref<4x4xbf16, #tpu.memory_space<vmem>>, %arg8: memref<4x4xbf16, #tpu.memory_space<vmem>>, %arg9: memref<8x8xbf16, #tpu.memory_space<vmem>>, %arg10: memref<8x4xbf16, #tpu.memory_space<vmem>>, %arg11: memref<8x1xf32, #tpu.memory_space<vmem>>, %arg12: memref<4x4xbf16, #tpu.memory_space<vmem>>, %arg13: memref<4x4xbf16, #tpu.memory_space<vmem>>, %arg14: memref<8x8xbf16, #tpu.memory_space<vmem>>, %arg15: memref<8x4xbf16, #tpu.memory_space<vmem>>, %arg16: memref<8x1xf32, #tpu.memory_space<vmem>>, %arg17: memref<20x1024xbf16, #tpu.memory_space<vmem>>) attributes {dimension_semantics = [#tpu.dimension_semantics<parallel>], iteration_bounds = array<i64: 3>, scalar_prefetch = 0 : i64, scratch_operands = 0 : i64, tpu.core_type = #tpu.core_type<tc>, window_params = [{transform_indices = @transform_0, window_bounds = array<i64: 50, 1024>}, {pipeline_mode = #tpu.pipeline_mode<synchronous>, transform_indices = @transform_1, window_bounds = array<i64: 10, 10>}, {pipeline_mode = #tpu.pipeline_mode<synchronous>, transform_indices = @transform_2, window_bounds = array<i64: 4, 10>}, {pipeline_mode = #tpu.pipeline_mode<synchronous>, transform_indices = @transform_3, window_bounds = array<i64: 8, 20>}, {pipeline_mode = #tpu.pipeline_mode<synchronous>, transform_indices = @transform_4, window_bounds = array<i64: 8, 10>}, {pipeline_mode = #tpu.pipeline_mode<synchronous>, transform_indices = @transform_5, window_bounds = array<i64: 8, 1>}, {pipeline_mode = #tpu.pipeline_mode<synchronous>, transform_indices = @transform_6, window_bounds = array<i64: 4, 4>}, {pipeline_mode = #tpu.pipeline_mode<synchronous>, transform_indices = @transform_7, window_bounds = array<i64: 4, 4>}, {pipeline_mode = #tpu.pipeline_mode<synchronous>, transform_indices = @transform_8, window_bounds = array<i64: 8, 8>}, {pipeline_mode = #tpu.pipeline_mode<synchronous>, transform_indices = @transform_9, window_bounds = array<i64: 8, 4>}, {pipeline_mode = #tpu.pipeline_mode<synchronous>, transform_indices = @transform_10, window_bounds = array<i64: 8, 1>}, {pipeline_mode = #tpu.pipeline_mode<synchronous>, transform_indices = @transform_11, window_bounds = array<i64: 4, 4>}, {pipeline_mode = #tpu.pipeline_mode<synchronous>, transform_indices = @transform_12, window_bounds = array<i64: 4, 4>}, {pipeline_mode = #tpu.pipeline_mode<synchronous>, transform_indices = @transform_13, window_bounds = array<i64: 8, 8>}, {pipeline_mode = #tpu.pipeline_mode<synchronous>, transform_indices = @transform_14, window_bounds = array<i64: 8, 4>}, {pipeline_mode = #tpu.pipeline_mode<synchronous>, transform_indices = @transform_15, window_bounds = array<i64: 8, 1>}, {transform_indices = @transform_16, window_bounds = array<i64: 20, 1024>}]} {
    %c0 = arith.constant 0 : index
    %c0_0 = arith.constant 0 : index
    %0 = vector.load %arg2[%c0, %c0_0] : memref<10x10xbf16, #tpu.memory_space<vmem>>, vector<10x10xbf16>
    %c0_1 = arith.constant 0 : index
    %c0_2 = arith.constant 0 : index
    %1 = vector.load %arg3[%c0_1, %c0_2] : memref<4x10xbf16, #tpu.memory_space<vmem>>, vector<4x10xbf16>
    %c0_3 = arith.constant 0 : index
    %c0_4 = arith.constant 0 : index
    %2 = vector.load %arg4[%c0_3, %c0_4] : memref<8x20xbf16, #tpu.memory_space<vmem>>, vector<8x20xbf16>
    %c0_5 = arith.constant 0 : index
    %c0_6 = arith.constant 0 : index
    %3 = vector.load %arg5[%c0_5, %c0_6] : memref<8x10xbf16, #tpu.memory_space<vmem>>, vector<8x10xbf16>
    %c0_7 = arith.constant 0 : index
    %c0_8 = arith.constant 0 : index
    %4 = vector.load %arg6[%c0_7, %c0_8] : memref<8x1xf32, #tpu.memory_space<vmem>>, vector<8x1xf32>
    %c0_9 = arith.constant 0 : index
    %c0_10 = arith.constant 0 : index
    %5 = vector.load %arg7[%c0_9, %c0_10] : memref<4x4xbf16, #tpu.memory_space<vmem>>, vector<4x4xbf16>
    %c0_11 = arith.constant 0 : index
    %c0_12 = arith.constant 0 : index
    %6 = vector.load %arg8[%c0_11, %c0_12] : memref<4x4xbf16, #tpu.memory_space<vmem>>, vector<4x4xbf16>
    %c0_13 = arith.constant 0 : index
    %c0_14 = arith.constant 0 : index
    %7 = vector.load %arg9[%c0_13, %c0_14] : memref<8x8xbf16, #tpu.memory_space<vmem>>, vector<8x8xbf16>
    %c0_15 = arith.constant 0 : index
    %c0_16 = arith.constant 0 : index
    %8 = vector.load %arg10[%c0_15, %c0_16] : memref<8x4xbf16, #tpu.memory_space<vmem>>, vector<8x4xbf16>
    %c0_17 = arith.constant 0 : index
    %c0_18 = arith.constant 0 : index
    %9 = vector.load %arg11[%c0_17, %c0_18] : memref<8x1xf32, #tpu.memory_space<vmem>>, vector<8x1xf32>
    %c0_19 = arith.constant 0 : index
    %c0_20 = arith.constant 0 : index
    %10 = vector.load %arg12[%c0_19, %c0_20] : memref<4x4xbf16, #tpu.memory_space<vmem>>, vector<4x4xbf16>
    %c0_21 = arith.constant 0 : index
    %c0_22 = arith.constant 0 : index
    %11 = vector.load %arg13[%c0_21, %c0_22] : memref<4x4xbf16, #tpu.memory_space<vmem>>, vector<4x4xbf16>
    %c0_23 = arith.constant 0 : index
    %c0_24 = arith.constant 0 : index
    %12 = vector.load %arg14[%c0_23, %c0_24] : memref<8x8xbf16, #tpu.memory_space<vmem>>, vector<8x8xbf16>
    %c0_25 = arith.constant 0 : index
    %c0_26 = arith.constant 0 : index
    %13 = vector.load %arg15[%c0_25, %c0_26] : memref<8x4xbf16, #tpu.memory_space<vmem>>, vector<8x4xbf16>
    %c0_27 = arith.constant 0 : index
    %c0_28 = arith.constant 0 : index
    %14 = vector.load %arg16[%c0_27, %c0_28] : memref<8x1xf32, #tpu.memory_space<vmem>>, vector<8x1xf32>
    %c0_29 = arith.constant 0 : index
    %c0_30 = arith.constant 0 : index
    %15 = vector.load %arg1[%c0_29, %c0_30] : memref<50x1024xbf16, #tpu.memory_space<vmem>>, vector<20x1024xbf16>
    %c20 = arith.constant 20 : index
    %c0_31 = arith.constant 0 : index
    %16 = vector.load %arg1[%c20, %c0_31] : memref<50x1024xbf16, #tpu.memory_space<vmem>>, vector<10x1024xbf16>
    %c30 = arith.constant 30 : index
    %c0_32 = arith.constant 0 : index
    %17 = vector.load %arg1[%c30, %c0_32] : memref<50x1024xbf16, #tpu.memory_space<vmem>>, vector<10x1024xbf16>
    %c40 = arith.constant 40 : index
    %c0_33 = arith.constant 0 : index
    %18 = vector.load %arg1[%c40, %c0_33] : memref<50x1024xbf16, #tpu.memory_space<vmem>>, vector<10x1024xbf16>
    %cst = arith.constant dense<0.000000e+00> : vector<10x1024xf32>
    %19 = tpu.matmul %0, %16, %cst {dimension_numbers = #tpu.dot_dimension_numbers<[1], [0], [0], [1], [0, 0, 1, 1], [], []>} : vector<10x10xbf16>, vector<10x1024xbf16>, vector<10x1024xf32> -> vector<10x1024xf32>
    %cst_34 = arith.constant dense<0.000000e+00> : vector<10x1024xf32>
    %20 = tpu.matmul %0, %17, %cst_34 {dimension_numbers = #tpu.dot_dimension_numbers<[1], [0], [0], [1], [0, 0, 1, 1], [], []>} : vector<10x10xbf16>, vector<10x1024xbf16>, vector<10x1024xf32> -> vector<10x1024xf32>
    %cst_35 = arith.constant dense<0.000000e+00> : vector<10x1024xf32>
    %21 = tpu.matmul %0, %18, %cst_35 {dimension_numbers = #tpu.dot_dimension_numbers<[1], [0], [0], [1], [0, 0, 1, 1], [], []>} : vector<10x10xbf16>, vector<10x1024xbf16>, vector<10x1024xf32> -> vector<10x1024xf32>
    %22 = arith.mulf %19, %19 : vector<10x1024xf32>
    %23 = arith.mulf %20, %20 : vector<10x1024xf32>
    %24 = arith.addf %22, %23 : vector<10x1024xf32>
    %25 = arith.mulf %21, %21 : vector<10x1024xf32>
    %26 = arith.addf %24, %25 : vector<10x1024xf32>
    %cst_36 = arith.constant 9.99999993E-9 : f32
    %27 = vector.broadcast %cst_36 : f32 to vector<10x1024xf32>
    %28 = arith.maximumf %26, %27 : vector<10x1024xf32>
    %29 = math.sqrt %28 : vector<10x1024xf32>
    %cst_37 = arith.constant dense<0.000000e+00> : vector<8x1024xf32>
    %30 = tpu.matmul %2, %15, %cst_37 {dimension_numbers = #tpu.dot_dimension_numbers<[1], [0], [0], [1], [0, 0, 1, 1], [], []>} : vector<8x20xbf16>, vector<20x1024xbf16>, vector<8x1024xf32> -> vector<8x1024xf32>
    %31 = arith.truncf %29 : vector<10x1024xf32> to vector<10x1024xbf16>
    %cst_38 = arith.constant dense<0.000000e+00> : vector<8x1024xf32>
    %32 = tpu.matmul %3, %31, %cst_38 {dimension_numbers = #tpu.dot_dimension_numbers<[1], [0], [0], [1], [0, 0, 1, 1], [], []>} : vector<8x10xbf16>, vector<10x1024xbf16>, vector<8x1024xf32> -> vector<8x1024xf32>
    %33 = arith.addf %30, %32 : vector<8x1024xf32>
    %34 = vector.broadcast %4 : vector<8x1xf32> to vector<8x1024xf32>
    %35 = arith.addf %33, %34 : vector<8x1024xf32>
    %36 = arith.truncf %19 : vector<10x1024xf32> to vector<10x1024xbf16>
    %cst_39 = arith.constant dense<0.000000e+00> : vector<4x1024xf32>
    %37 = tpu.matmul %1, %36, %cst_39 {dimension_numbers = #tpu.dot_dimension_numbers<[1], [0], [0], [1], [0, 0, 1, 1], [], []>} : vector<4x10xbf16>, vector<10x1024xbf16>, vector<4x1024xf32> -> vector<4x1024xf32>
    %38 = arith.truncf %20 : vector<10x1024xf32> to vector<10x1024xbf16>
    %cst_40 = arith.constant dense<0.000000e+00> : vector<4x1024xf32>
    %39 = tpu.matmul %1, %38, %cst_40 {dimension_numbers = #tpu.dot_dimension_numbers<[1], [0], [0], [1], [0, 0, 1, 1], [], []>} : vector<4x10xbf16>, vector<10x1024xbf16>, vector<4x1024xf32> -> vector<4x1024xf32>
    %40 = arith.truncf %21 : vector<10x1024xf32> to vector<10x1024xbf16>
    %cst_41 = arith.constant dense<0.000000e+00> : vector<4x1024xf32>
    %41 = tpu.matmul %1, %40, %cst_41 {dimension_numbers = #tpu.dot_dimension_numbers<[1], [0], [0], [1], [0, 0, 1, 1], [], []>} : vector<4x10xbf16>, vector<10x1024xbf16>, vector<4x1024xf32> -> vector<4x1024xf32>
    %42 = arith.mulf %37, %37 : vector<4x1024xf32>
    %43 = arith.mulf %39, %39 : vector<4x1024xf32>
    %44 = arith.addf %42, %43 : vector<4x1024xf32>
    %45 = arith.mulf %41, %41 : vector<4x1024xf32>
    %46 = arith.addf %44, %45 : vector<4x1024xf32>
    %cst_42 = arith.constant 9.99999993E-9 : f32
    %47 = vector.broadcast %cst_42 : f32 to vector<4x1024xf32>
    %48 = arith.maximumf %46, %47 : vector<4x1024xf32>
    %49 = math.sqrt %48 : vector<4x1024xf32>
    %50 = arith.negf %49 : vector<4x1024xf32>
    %51 = math.exp %50 : vector<4x1024xf32>
    %cst_43 = arith.constant 1.000000e+00 : f32
    %52 = vector.broadcast %cst_43 : f32 to vector<4x1024xf32>
    %53 = arith.addf %52, %51 : vector<4x1024xf32>
    %54 = arith.divf %52, %53 : vector<4x1024xf32>
    %55 = arith.mulf %37, %54 : vector<4x1024xf32>
    %56 = arith.mulf %39, %54 : vector<4x1024xf32>
    %57 = arith.mulf %41, %54 : vector<4x1024xf32>
    %cst_44 = arith.constant 0.000000e+00 : f32
    %58 = vector.broadcast %cst_44 : f32 to vector<8x1024xf32>
    %59 = arith.maximumf %35, %58 : vector<8x1024xf32>
    %60 = arith.truncf %55 : vector<4x1024xf32> to vector<4x1024xbf16>
    %cst_45 = arith.constant dense<0.000000e+00> : vector<4x1024xf32>
    %61 = tpu.matmul %5, %60, %cst_45 {dimension_numbers = #tpu.dot_dimension_numbers<[1], [0], [0], [1], [0, 0, 1, 1], [], []>} : vector<4x4xbf16>, vector<4x1024xbf16>, vector<4x1024xf32> -> vector<4x1024xf32>
    %62 = arith.truncf %56 : vector<4x1024xf32> to vector<4x1024xbf16>
    %cst_46 = arith.constant dense<0.000000e+00> : vector<4x1024xf32>
    %63 = tpu.matmul %5, %62, %cst_46 {dimension_numbers = #tpu.dot_dimension_numbers<[1], [0], [0], [1], [0, 0, 1, 1], [], []>} : vector<4x4xbf16>, vector<4x1024xbf16>, vector<4x1024xf32> -> vector<4x1024xf32>
    %64 = arith.truncf %57 : vector<4x1024xf32> to vector<4x1024xbf16>
    %cst_47 = arith.constant dense<0.000000e+00> : vector<4x1024xf32>
    %65 = tpu.matmul %5, %64, %cst_47 {dimension_numbers = #tpu.dot_dimension_numbers<[1], [0], [0], [1], [0, 0, 1, 1], [], []>} : vector<4x4xbf16>, vector<4x1024xbf16>, vector<4x1024xf32> -> vector<4x1024xf32>
    %66 = arith.mulf %61, %61 : vector<4x1024xf32>
    %67 = arith.mulf %63, %63 : vector<4x1024xf32>
    %68 = arith.addf %66, %67 : vector<4x1024xf32>
    %69 = arith.mulf %65, %65 : vector<4x1024xf32>
    %70 = arith.addf %68, %69 : vector<4x1024xf32>
    %cst_48 = arith.constant 9.99999993E-9 : f32
    %71 = vector.broadcast %cst_48 : f32 to vector<4x1024xf32>
    %72 = arith.maximumf %70, %71 : vector<4x1024xf32>
    %73 = math.sqrt %72 : vector<4x1024xf32>
    %74 = arith.truncf %59 : vector<8x1024xf32> to vector<8x1024xbf16>
    %cst_49 = arith.constant dense<0.000000e+00> : vector<8x1024xf32>
    %75 = tpu.matmul %7, %74, %cst_49 {dimension_numbers = #tpu.dot_dimension_numbers<[1], [0], [0], [1], [0, 0, 1, 1], [], []>} : vector<8x8xbf16>, vector<8x1024xbf16>, vector<8x1024xf32> -> vector<8x1024xf32>
    %76 = arith.truncf %73 : vector<4x1024xf32> to vector<4x1024xbf16>
    %cst_50 = arith.constant dense<0.000000e+00> : vector<8x1024xf32>
    %77 = tpu.matmul %8, %76, %cst_50 {dimension_numbers = #tpu.dot_dimension_numbers<[1], [0], [0], [1], [0, 0, 1, 1], [], []>} : vector<8x4xbf16>, vector<4x1024xbf16>, vector<8x1024xf32> -> vector<8x1024xf32>
    %78 = arith.addf %75, %77 : vector<8x1024xf32>
    %79 = vector.broadcast %9 : vector<8x1xf32> to vector<8x1024xf32>
    %80 = arith.addf %78, %79 : vector<8x1024xf32>
    %81 = arith.truncf %61 : vector<4x1024xf32> to vector<4x1024xbf16>
    %cst_51 = arith.constant dense<0.000000e+00> : vector<4x1024xf32>
    %82 = tpu.matmul %6, %81, %cst_51 {dimension_numbers = #tpu.dot_dimension_numbers<[1], [0], [0], [1], [0, 0, 1, 1], [], []>} : vector<4x4xbf16>, vector<4x1024xbf16>, vector<4x1024xf32> -> vector<4x1024xf32>
    %83 = arith.truncf %63 : vector<4x1024xf32> to vector<4x1024xbf16>
    %cst_52 = arith.constant dense<0.000000e+00> : vector<4x1024xf32>
    %84 = tpu.matmul %6, %83, %cst_52 {dimension_numbers = #tpu.dot_dimension_numbers<[1], [0], [0], [1], [0, 0, 1, 1], [], []>} : vector<4x4xbf16>, vector<4x1024xbf16>, vector<4x1024xf32> -> vector<4x1024xf32>
    %85 = arith.truncf %65 : vector<4x1024xf32> to vector<4x1024xbf16>
    %cst_53 = arith.constant dense<0.000000e+00> : vector<4x1024xf32>
    %86 = tpu.matmul %6, %85, %cst_53 {dimension_numbers = #tpu.dot_dimension_numbers<[1], [0], [0], [1], [0, 0, 1, 1], [], []>} : vector<4x4xbf16>, vector<4x1024xbf16>, vector<4x1024xf32> -> vector<4x1024xf32>
    %87 = arith.mulf %82, %82 : vector<4x1024xf32>
    %88 = arith.mulf %84, %84 : vector<4x1024xf32>
    %89 = arith.addf %87, %88 : vector<4x1024xf32>
    %90 = arith.mulf %86, %86 : vector<4x1024xf32>
    %91 = arith.addf %89, %90 : vector<4x1024xf32>
    %cst_54 = arith.constant 9.99999993E-9 : f32
    %92 = vector.broadcast %cst_54 : f32 to vector<4x1024xf32>
    %93 = arith.maximumf %91, %92 : vector<4x1024xf32>
    %94 = math.sqrt %93 : vector<4x1024xf32>
    %95 = arith.negf %94 : vector<4x1024xf32>
    %96 = math.exp %95 : vector<4x1024xf32>
    %cst_55 = arith.constant 1.000000e+00 : f32
    %97 = vector.broadcast %cst_55 : f32 to vector<4x1024xf32>
    %98 = arith.addf %97, %96 : vector<4x1024xf32>
    %99 = arith.divf %97, %98 : vector<4x1024xf32>
    %100 = arith.mulf %82, %99 : vector<4x1024xf32>
    %101 = arith.mulf %84, %99 : vector<4x1024xf32>
    %102 = arith.mulf %86, %99 : vector<4x1024xf32>
    %cst_56 = arith.constant 0.000000e+00 : f32
    %103 = vector.broadcast %cst_56 : f32 to vector<8x1024xf32>
    %104 = arith.maximumf %80, %103 : vector<8x1024xf32>
    %105 = arith.truncf %100 : vector<4x1024xf32> to vector<4x1024xbf16>
    %cst_57 = arith.constant dense<0.000000e+00> : vector<4x1024xf32>
    %106 = tpu.matmul %10, %105, %cst_57 {dimension_numbers = #tpu.dot_dimension_numbers<[1], [0], [0], [1], [0, 0, 1, 1], [], []>} : vector<4x4xbf16>, vector<4x1024xbf16>, vector<4x1024xf32> -> vector<4x1024xf32>
    %107 = arith.truncf %101 : vector<4x1024xf32> to vector<4x1024xbf16>
    %cst_58 = arith.constant dense<0.000000e+00> : vector<4x1024xf32>
    %108 = tpu.matmul %10, %107, %cst_58 {dimension_numbers = #tpu.dot_dimension_numbers<[1], [0], [0], [1], [0, 0, 1, 1], [], []>} : vector<4x4xbf16>, vector<4x1024xbf16>, vector<4x1024xf32> -> vector<4x1024xf32>
    %109 = arith.truncf %102 : vector<4x1024xf32> to vector<4x1024xbf16>
    %cst_59 = arith.constant dense<0.000000e+00> : vector<4x1024xf32>
    %110 = tpu.matmul %10, %109, %cst_59 {dimension_numbers = #tpu.dot_dimension_numbers<[1], [0], [0], [1], [0, 0, 1, 1], [], []>} : vector<4x4xbf16>, vector<4x1024xbf16>, vector<4x1024xf32> -> vector<4x1024xf32>
    %111 = arith.mulf %106, %106 : vector<4x1024xf32>
    %112 = arith.mulf %108, %108 : vector<4x1024xf32>
    %113 = arith.addf %111, %112 : vector<4x1024xf32>
    %114 = arith.mulf %110, %110 : vector<4x1024xf32>
    %115 = arith.addf %113, %114 : vector<4x1024xf32>
    %cst_60 = arith.constant 9.99999993E-9 : f32
    %116 = vector.broadcast %cst_60 : f32 to vector<4x1024xf32>
    %117 = arith.maximumf %115, %116 : vector<4x1024xf32>
    %118 = math.sqrt %117 : vector<4x1024xf32>
    %119 = arith.truncf %104 : vector<8x1024xf32> to vector<8x1024xbf16>
    %cst_61 = arith.constant dense<0.000000e+00> : vector<8x1024xf32>
    %120 = tpu.matmul %12, %119, %cst_61 {dimension_numbers = #tpu.dot_dimension_numbers<[1], [0], [0], [1], [0, 0, 1, 1], [], []>} : vector<8x8xbf16>, vector<8x1024xbf16>, vector<8x1024xf32> -> vector<8x1024xf32>
    %121 = arith.truncf %118 : vector<4x1024xf32> to vector<4x1024xbf16>
    %cst_62 = arith.constant dense<0.000000e+00> : vector<8x1024xf32>
    %122 = tpu.matmul %13, %121, %cst_62 {dimension_numbers = #tpu.dot_dimension_numbers<[1], [0], [0], [1], [0, 0, 1, 1], [], []>} : vector<8x4xbf16>, vector<4x1024xbf16>, vector<8x1024xf32> -> vector<8x1024xf32>
    %123 = arith.addf %120, %122 : vector<8x1024xf32>
    %124 = vector.broadcast %14 : vector<8x1xf32> to vector<8x1024xf32>
    %125 = arith.addf %123, %124 : vector<8x1024xf32>
    %126 = arith.truncf %106 : vector<4x1024xf32> to vector<4x1024xbf16>
    %cst_63 = arith.constant dense<0.000000e+00> : vector<4x1024xf32>
    %127 = tpu.matmul %11, %126, %cst_63 {dimension_numbers = #tpu.dot_dimension_numbers<[1], [0], [0], [1], [0, 0, 1, 1], [], []>} : vector<4x4xbf16>, vector<4x1024xbf16>, vector<4x1024xf32> -> vector<4x1024xf32>
    %128 = arith.truncf %108 : vector<4x1024xf32> to vector<4x1024xbf16>
    %cst_64 = arith.constant dense<0.000000e+00> : vector<4x1024xf32>
    %129 = tpu.matmul %11, %128, %cst_64 {dimension_numbers = #tpu.dot_dimension_numbers<[1], [0], [0], [1], [0, 0, 1, 1], [], []>} : vector<4x4xbf16>, vector<4x1024xbf16>, vector<4x1024xf32> -> vector<4x1024xf32>
    %130 = arith.truncf %110 : vector<4x1024xf32> to vector<4x1024xbf16>
    %cst_65 = arith.constant dense<0.000000e+00> : vector<4x1024xf32>
    %131 = tpu.matmul %11, %130, %cst_65 {dimension_numbers = #tpu.dot_dimension_numbers<[1], [0], [0], [1], [0, 0, 1, 1], [], []>} : vector<4x4xbf16>, vector<4x1024xbf16>, vector<4x1024xf32> -> vector<4x1024xf32>
    %132 = arith.truncf %125 : vector<8x1024xf32> to vector<8x1024xbf16>
    %c0_66 = arith.constant 0 : index
    %c0_67 = arith.constant 0 : index
    %133 = vector.load %arg17[%c0_66, %c0_67] : memref<20x1024xbf16, #tpu.memory_space<vmem>>, vector<8x1024xbf16>
    tpu.vector_store %arg17[%c0_66, %c0_67], %132 {strides = array<i32>} : memref<20x1024xbf16, #tpu.memory_space<vmem>>, vector<8x1024xbf16>,
    %134 = arith.truncf %127 : vector<4x1024xf32> to vector<4x1024xbf16>
    %c8 = arith.constant 8 : index
    %c0_68 = arith.constant 0 : index
    %135 = vector.load %arg17[%c8, %c0_68] : memref<20x1024xbf16, #tpu.memory_space<vmem>>, vector<4x1024xbf16>
    tpu.vector_store %arg17[%c8, %c0_68], %134 {strides = array<i32>} : memref<20x1024xbf16, #tpu.memory_space<vmem>>, vector<4x1024xbf16>,
    %136 = arith.truncf %129 : vector<4x1024xf32> to vector<4x1024xbf16>
    %c12 = arith.constant 12 : index
    %c0_69 = arith.constant 0 : index
    %137 = vector.load %arg17[%c12, %c0_69] : memref<20x1024xbf16, #tpu.memory_space<vmem>>, vector<4x1024xbf16>
    tpu.vector_store %arg17[%c12, %c0_69], %136 {strides = array<i32>} : memref<20x1024xbf16, #tpu.memory_space<vmem>>, vector<4x1024xbf16>,
    %138 = arith.truncf %131 : vector<4x1024xf32> to vector<4x1024xbf16>
    %c16 = arith.constant 16 : index
    %c0_70 = arith.constant 0 : index
    %139 = vector.load %arg17[%c16, %c0_70] : memref<20x1024xbf16, #tpu.memory_space<vmem>>, vector<4x1024xbf16>
    tpu.vector_store %arg17[%c16, %c0_70], %138 {strides = array<i32>} : memref<20x1024xbf16, #tpu.memory_space<vmem>>, vector<4x1024xbf16>,
    return
  }
  func.func @transform_0(%arg0: i32) -> (i32, i32) {
    %c0_i32 = arith.constant 0 : i32
    %c0_i32_0 = arith.constant 0 : i32
    return %c0_i32, %arg0 : i32, i32
  }
  func.func @transform_1(%arg0: i32) -> (i32, i32) {
    %c0_i32 = arith.constant 0 : i32
    %c0_i32_0 = arith.constant 0 : i32
    %c0_i32_1 = arith.constant 0 : i32
    return %c0_i32, %c0_i32_0 : i32, i32
  }
  func.func @transform_2(%arg0: i32) -> (i32, i32) {
    %c0_i32 = arith.constant 0 : i32
    %c0_i32_0 = arith.constant 0 : i32
    %c0_i32_1 = arith.constant 0 : i32
    return %c0_i32, %c0_i32_0 : i32, i32
  }
  func.func @transform_3(%arg0: i32) -> (i32, i32) {
    %c0_i32 = arith.constant 0 : i32
    %c0_i32_0 = arith.constant 0 : i32
    %c0_i32_1 = arith.constant 0 : i32
    return %c0_i32, %c0_i32_0 : i32, i32
  }
  func.func @transform_4(%arg0: i32) -> (i32, i32) {
    %c0_i32 = arith.constant 0 : i32
    %c0_i32_0 = arith.constant 0 : i32
    %c0_i32_1 = arith.constant 0 : i32
    return %c0_i32, %c0_i32_0 : i32, i32
  }
  func.func @transform_5(%arg0: i32) -> (i32, i32) {
    %c0_i32 = arith.constant 0 : i32
    %c0_i32_0 = arith.constant 0 : i32
    %c0_i32_1 = arith.constant 0 : i32
    return %c0_i32, %c0_i32_0 : i32, i32
  }
  func.func @transform_6(%arg0: i32) -> (i32, i32) {
    %c0_i32 = arith.constant 0 : i32
    %c0_i32_0 = arith.constant 0 : i32
    %c0_i32_1 = arith.constant 0 : i32
    return %c0_i32, %c0_i32_0 : i32, i32
  }
  func.func @transform_7(%arg0: i32) -> (i32, i32) {
    %c0_i32 = arith.constant 0 : i32
    %c0_i32_0 = arith.constant 0 : i32
    %c0_i32_1 = arith.constant 0 : i32
    return %c0_i32, %c0_i32_0 : i32, i32
  }
  func.func @transform_8(%arg0: i32) -> (i32, i32) {
    %c0_i32 = arith.constant 0 : i32
    %c0_i32_0 = arith.constant 0 : i32
    %c0_i32_1 = arith.constant 0 : i32
    return %c0_i32, %c0_i32_0 : i32, i32
  }
  func.func @transform_9(%arg0: i32) -> (i32, i32) {
    %c0_i32 = arith.constant 0 : i32
    %c0_i32_0 = arith.constant 0 : i32
    %c0_i32_1 = arith.constant 0 : i32
    return %c0_i32, %c0_i32_0 : i32, i32
  }
  func.func @transform_10(%arg0: i32) -> (i32, i32) {
    %c0_i32 = arith.constant 0 : i32
    %c0_i32_0 = arith.constant 0 : i32
    %c0_i32_1 = arith.constant 0 : i32
    return %c0_i32, %c0_i32_0 : i32, i32
  }
  func.func @transform_11(%arg0: i32) -> (i32, i32) {
    %c0_i32 = arith.constant 0 : i32
    %c0_i32_0 = arith.constant 0 : i32
    %c0_i32_1 = arith.constant 0 : i32
    return %c0_i32, %c0_i32_0 : i32, i32
  }
  func.func @transform_12(%arg0: i32) -> (i32, i32) {
    %c0_i32 = arith.constant 0 : i32
    %c0_i32_0 = arith.constant 0 : i32
    %c0_i32_1 = arith.constant 0 : i32
    return %c0_i32, %c0_i32_0 : i32, i32
  }
  func.func @transform_13(%arg0: i32) -> (i32, i32) {
    %c0_i32 = arith.constant 0 : i32
    %c0_i32_0 = arith.constant 0 : i32
    %c0_i32_1 = arith.constant 0 : i32
    return %c0_i32, %c0_i32_0 : i32, i32
  }
  func.func @transform_14(%arg0: i32) -> (i32, i32) {
    %c0_i32 = arith.constant 0 : i32
    %c0_i32_0 = arith.constant 0 : i32
    %c0_i32_1 = arith.constant 0 : i32
    return %c0_i32, %c0_i32_0 : i32, i32
  }
  func.func @transform_15(%arg0: i32) -> (i32, i32) {
    %c0_i32 = arith.constant 0 : i32
    %c0_i32_0 = arith.constant 0 : i32
    %c0_i32_1 = arith.constant 0 : i32
    return %c0_i32, %c0_i32_0 : i32, i32
  }
  func.func @transform_16(%arg0: i32) -> (i32, i32) {
    %c0_i32 = arith.constant 0 : i32
    %c0_i32_0 = arith.constant 0 : i32
    return %c0_i32, %arg0 : i32, i32
  }
}

</mosaic_0001>

<bundles_post_ra>
// kernel: tpu_custom_call.1
= control target key start
LH: loop header
LB: loop body
LE: loop exit
PB: predicated region body
PF: predicated region fallthrough
CT: control target
= control target key end

     0   :  { %s9319_s0 = inlined_call_operand.hbm [shape: bf16[50,3072], index: 0, kind: input, shape index: {}]   ;;  %s9320_s1 = inlined_call_operand.vmem [shape: bf16[10,10], index: 1, kind: input, shape index: {}]   ;;  %s9321_s2 = inlined_call_operand.vmem [shape: bf16[4,10], index: 2, kind: input, shape index: {}]   ;;  %s9322_s3 = inlined_call_operand.vmem [shape: bf16[8,20], index: 3, kind: input, shape index: {}]   ;;  %s9323_s4 = inlined_call_operand.vmem [shape: bf16[8,10], index: 4, kind: input, shape index: {}]   ;;  %s9324_s5 = inlined_call_operand.vmem [shape: f32[8,1], index: 5, kind: input, shape index: {}]   ;;  %s9325_s6 = inlined_call_operand.vmem [shape: bf16[4,4], index: 6, kind: input, shape index: {}]   ;;  %s9326_s7 = inlined_call_operand.vmem [shape: bf16[4,4], index: 7, kind: input, shape index: {}]   ;;  %s9327_s8 = inlined_call_operand.vmem [shape: bf16[8,8], index: 8, kind: input, shape index: {}]   ;;  %s9328_s9 = inlined_call_operand.vmem [shape: bf16[8,4], index: 9, kind: input, shape index: {}]   ;;  %s9329_s10 = inlined_call_operand.vmem [shape: f32[8,1], index: 10, kind: input, shape index: {}]   ;;  %s9330_s11 = inlined_call_operand.vmem [shape: bf16[4,4], index: 11, kind: input, shape index: {}]   ;;  %s9331_s12 = inlined_call_operand.vmem [shape: bf16[4,4], index: 12, kind: input, shape index: {}]   ;;  %s9332_s13 = inlined_call_operand.vmem [shape: bf16[8,8], index: 13, kind: input, shape index: {}]   ;;  %s9333_s14 = inlined_call_operand.vmem [shape: bf16[8,4], index: 14, kind: input, shape index: {}]   ;;  %s9334_s15 = inlined_call_operand.vmem [shape: f32[8,1], index: 15, kind: input, shape index: {}]   ;;  %s9335_s16 = inlined_call_operand.hbm [shape: bf16[20,3072], index: 16, kind: output, shape index: {}]  }
   0x1   :  { %9372 = sst [smem:[#allocation37_spill]] %s9319_s0 }
   0x2   :  { %9373 = sst [smem:[#allocation38_spill]] %s9320_s1 }
   0x3   :  { %9374 = sst [smem:[#allocation39_spill]] %s9331_s12 }
   0x4   :  { %9375 = sst [smem:[#allocation40_spill]] %s9335_s16 }
   0x5   :  { %21 = vsyncpa [#allocation3], 0 }
   0x6   :  { %23 = vsyncpa [#allocation3 + $0x1], 0 }
   0x7   :  { %24 = vsyncpa [#allocation4], 0 }
   0x8   :  { %26 = vsyncpa [#allocation4 + $0x1], 0  ;;  %s7277_s21 = smov 0   ;;  %s7279_s22 = smov 0  }
   0x9   :  { %s7281_s23 = smov 0   ;;  %s7283_s24 = smov 0  }
   0xa LB: > { %9376 = sst [smem:[#allocation8_spill]] %s7169_s21  ;;  %s7298_s25 = sadd.s32 4294967295, %s7181_s24   ;;  %s7181_s24 = sphi %s7283_s24, %s9459_s24   ;;  %s7177_s23 = sphi %s7281_s23, %s9461_s23   ;;  %s7173_s22 = sphi %s7279_s22, %s9463_s22   ;;  %s7169_s21 = sphi %s7277_s21, %s9462_s21  }
   0xb   : > { %9377 = sst [smem:[#allocation9_spill]] %s7177_s23  ;;  %s6569_s26 = sadd.s32 4294967294, %s7181_s24  }
   0xc   : > { %9378 = sst [smem:[#allocation10_spill]] %s7298_s25  ;;  %s7302_s27 = sadd.s32 1, %s7181_s24  }
   0xd   : > { %9379 = sst [smem:[#allocation11_spill]] %s7302_s27  ;;  %s39_s28 = sadd.s32 1, %s7177_s23 }
   0xe   : > { %s36_s29 = ssub.s32 %s7181_s24, %s7302_s27  ;;  %p46_p0 = scmp.ne.s32.totalorder %s7177_s23, %s7173_s22 }
   0xf   : > { %p37_p1 = scmp.eq.s32.totalorder %s36_s29, 0  ;;  %p47_p2 = scmp.eq.s32.totalorder %s7181_s24, 0 }
  0x10   : > { %p52_p3 = scmp.ne.s32.totalorder %s7173_s22, %s7169_s21  ;;  %p53_p4 = scmp.eq.s32.totalorder %s7298_s25, 0 }
  0x11   : > { %s7314_s30 = scalar_select %p37_p1, %s7177_s23, %s39_s28  }
  0x12   : > { %p48_p5 = por %p47_p2, %p46_p0  ;;  %p7316_p6 = por %p53_p4, %p52_p3 }
  0x13   : > { %9380 = sst [smem:[#allocation12_spill]] %s7314_s30  ;;  %p391_p7 = scmp.eq.s32.totalorder %s7298_s25, 2 }
  0x14   : > { %s9381_s0 = scalar_select %p7316_p6, 1, 0 }
  0x15   : > { %p397_p8 = scmp.eq.s32.totalorder %s6569_s26, 2  ;;  %p6877_p9 = scmp.lt.s32.totalorder %s7181_s24, 3 }
  0x16   : > { %p7322_p10 = por %p391_p7, %p46_p0  ;;  %s462_s19 = sand.u32 1, %s7177_s23  }
  0x17   : > { %p7326_p11 = por %p397_p8, %p52_p3  ;;  %s6844_s20 = sshll.u32 %s7181_s24, 9 }
  0x18   : > { %s9382_s17 = scalar_select %p7322_p10, 1, 0 }
  0x19   : > { %s9384_s18 = scalar_select %p7326_p11, 1, 0 }
  0x1a   : > { %9383 = sst [smem:[#allocation13_spill]] %s9382_s17  ;;  %s6862_s28 = smul.u32 224, %s462_s19 }
  0x1b   : > { %9385 = sst [smem:[#allocation14_spill]] %s9384_s18  ;;  %p7337_p12 = pnand %p6877_p9, %p48_p5 }
  0x1c   : > { %s9386_s27 = sld [smem:[#allocation37_spill]]  ;;  %s466_s16 = scalar_lea.vmem [#allocation2], %s6862_s28 }
  0x1d   : > { %s473_s17 = sshll.u32 %s466_s16, 4  ;;  %s7344_s23 = scalar_lea.sflag [#allocation3], %s462_s19  ;;  %s7341_s17 = int_to_ptr.vmem [resolvable:$true] %s473_s17 }
  0x1e   : > { %p7091_p1 = pneg %p7337_p12 }
  0x22   : > { %s7335_s21 = scalar_lea.hbm %s9386_s27, %s6844_s20  ;;  %s7094_s29 = scalar_lea.hbm %s9386_s27, 10752 }
  0x23   : > { %s7089_s18 = scalar_lea.hbm %s7335_s21, 3584  ;;  %p7095_p4 = scmp.lt.s32.totalorder %s7335_s21, %s9386_s27 }
  0x24   : > { %p7090_p0 = scmp.ne.s32.totalorder %s7335_s21, %s7089_s18  ;;  %p7096_p5 = scmp.lt.s32.totalorder %s7094_s29, %s7089_s18 }
  0x26   : > { %p7092_p2 = pnand %p7091_p1, %p7090_p0  ;;  %p7097_p7 = por %p7096_p5, %p7095_p4 }
  0x28   : > { %p7093_p3 = pneg %p7092_p2 }
  0x2a   : > { %p7098_p8 = pnand %p7097_p7, %p7093_p3 }
  0x2c   : > { %7101 = shalt.err (!%p7098_p8)
}
  0x2d   : > { %s7102_s16 = scalar_lea.vmem %s7341_s17, 3584  ;;  %s7183_s19 = smov [#allocation2]  }
  0x2e   : > { %p7103_p9 = scmp.ne.s32.totalorder %s7341_s17, %s7102_s16  ;;  %s7107_s28 = sshll.u32 %s7183_s19, 4  ;;  %s7108_s28 = int_to_ptr.vmem [resolvable:$false] %s7107_s28 }
  0x2f   : > { %s7109_s30 = scalar_lea.vmem %s7108_s28, 7168  ;;  %p7110_p2 = scmp.lt.s32.totalorder %s7341_s17, %s7108_s28 }
  0x30   : > { %p7105_p13 = pnand %p7103_p9, %p7091_p1  ;;  %p7111_p11 = scmp.lt.s32.totalorder %s7109_s30, %s7102_s16 }
  0x32   : > { %p7106_p0 = pneg %p7105_p13  ;;  %p7112_p10 = por %p7111_p11, %p7110_p2 }
  0x34   : > { %p7113_p6 = pnand %p7112_p10, %p7106_p0 }
  0x36   : > { %7116 = shalt.err (!%p7113_p6)
}
  0x37   : > { %s7184_s12 = smov 1536   ;;  %s7185_s25 = smov 512  }
  0x38   : > { %s7186_s18 = smov 32   ;;  %p481_p13 = scmp.lt.s32.totalorder %s7181_s24, 4 }
  0x39   : > { %6872 = dma.hbm_to_vmem [thread:$0]  (!%p7337_p12), %s7335_s21, 3584, %s7341_s17, %s7344_s23, %s7184_s12, %s7185_s25, %s7186_s18  }
  0x3a   : > { %p9388_p1 = scmp.ge.s32.totalorder %s7181_s24, 1 }
  0x3c   : > { %p482_p3 = pnand %p9388_p1, %p481_p13 }
  0x3e   : > { %485 = sbr.rel (%p482_p3) target bundleno = 1803 (0x70b), region = 84 }
  0x43   : > { %s7369_s20 = sand.u32 1, %s7173_s22   ;;  %p9389_p6 = scmp.ne.s32.totalorder %s9381_s0, 0 }
  0x44   : > { %s6863_s29 = smul.u32 224, %s7369_s20  ;;  %s488_s16 = scalar_lea.sflag [#allocation3], %s7369_s20 }
  0x46   : > { %s7373_s19 = scalar_lea.vmem [#allocation2], %s6863_s29 }
  0x47   : > { %7160 = dma.done.wait (%p9389_p6), %s488_s16, 3584  }
  0x48   : > { %7162 = vsyncadd (%p9389_p6), %s488_s16, 4294963712  ;;  %v9348_v0 = vmov 0   ;;  %v571_v1 = vld [vmem:[%s7373_s19 + $0x40] sm:$0xcc]  ;;  %v572_v3 = vld [vmem:[%s7373_s19 + $0x48] sm:$0xcc] }
  0x49   : > { %701 = vmatprep.mubr.bf16.mxu0 %v9348_v0  ;;  %744 = vmatprep.mubr.bf16.mxu1 %v9348_v0  ;;  %v575_v2 = vld [vmem:[%s7373_s19 + $0x60] sm:$0x77]  ;;  %v576_v5 = vld [vmem:[%s7373_s19 + $0x68] sm:$0x77]  ;;  %vm644_vm0 = vcmask 1044480   ;;  %vm640_vm1 = vcmask 80896  }
  0x4a   : > { %6918 = vset.pattern.permute.xlu0 %v9348_v0  ;;  %6919 = vset.pattern.permute.xlu1 %v9348_v0  ;;  %v6577_v4 = vcombine.high %v571_v1, %v575_v2  ;;  %v6576_v6 = vcombine.low %v571_v1, %v575_v2  ;;  %v6579_v7 = vcombine.high %v572_v3, %v576_v5  ;;  %v573_v9 = vld [vmem:[%s7373_s19 + $0x50] sm:$0xcc]  ;;  %s9390_s1 = sld [smem:[#allocation38_spill]]  ;;  %v574_v15 = vld [vmem:[%s7373_s19 + $0x58] sm:$0xcc]  ;;  %v583_v23 = vld [vmem:[%s7373_s19 + $0x80] sm:$0xff] }
  0x4b   : > { %v6578_v8 = vcombine.low %v572_v3, %v576_v5  ;;  %v577_v10 = vld [vmem:[%s7373_s19 + $0x70] sm:$0x77]  ;;  %v578_v16 = vld [vmem:[%s7373_s19 + $0x78] sm:$0x77]  ;;  %v579_v22 = vld [vmem:[%s7373_s19 + $0x60] sm:$0x88] }
  0x4c   : > { %v633_v11 = vrot.slane %v6577_v4, 2  ;;  %v632_v12 = vrot.slane %v6576_v6, 2  ;;  %v6581_v14 = vcombine.high %v573_v9, %v577_v10  ;;  %v6580_v17 = vcombine.low %v573_v9, %v577_v10  ;;  %v584_v24 = vld [vmem:[%s7373_s19 + $0x88] sm:$0xff]  ;;  %v581_v40 = vld [vmem:[%s7373_s19 + $0x70] sm:$0x88]  ;;  %v586_v43 = vld [vmem:[%s7373_s19 + $0x98] sm:$0xff] }
  0x4d   : > { %v635_v18 = vrot.slane %v6579_v7, 2  ;;  %v634_v19 = vrot.slane %v6578_v8, 2  ;;  %v6583_v20 = vcombine.high %v574_v15, %v578_v16  ;;  %v6582_v21 = vcombine.low %v574_v15, %v578_v16  ;;  %v580_v29 = vld [vmem:[%s7373_s19 + $0x68] sm:$0x88]  ;;  %v585_v41 = vld [vmem:[%s7373_s19 + $0x90] sm:$0xff]  ;;  %v587_v56 = vld [vmem:[%s7373_s19 + $0xa0] sm:$0xff] }
  0x4e   : > { %6584 = vmatprep.subr.msk.bf16.mxu0 %vm644_vm0, %v633_v11  ;;  %v646_v25 = vsel %vm644_vm0, %v632_v12, 0  ;;  %v637_v26 = vrot.slane %v6581_v14, 2  ;;  %v636_v27 = vrot.slane %v6580_v17, 2  ;;  %v6593_v28 = vcombine.high %v579_v22, %v583_v23  ;;  %v582_v42 = vld [vmem:[%s7373_s19 + $0x78] sm:$0x88]  ;;  %v588_v58 = vld [vmem:[%s7373_s19 + $0xa8] sm:$0xff] }
  0x4f   : > { %6586 = vmatprep.subr.msk.bf16.mxu1 %vm644_vm0, %v635_v18  ;;  %684 = vmatpush1.bf16.msra.mxu0 %v646_v25  ;;  %v652_v30 = vsel %vm644_vm0, %v634_v19, 0  ;;  %v639_v31 = vrot.slane %v6583_v20, 2  ;;  %v638_v32 = vrot.slane %v6582_v21, 2  ;;  %v6595_v33 = vcombine.high %v580_v29, %v584_v24  ;;  %v591_v57 = vld [vmem:[%s7373_s19 + $0xc0] sm:$0x11]  ;;  %v589_v3 = vld [vmem:[%s7373_s19 + $0xb0] sm:$0xff] }
  0x50   : > { %v7392_v13 = vld [vmem:[%s9390_s1] sm:$0x1f]   ;;  %727 = vmatpush1.bf16.msra.mxu1 %v652_v30  ;;  %6588 = vmatprep.subr.msk.bf16.mxu0 %vm644_vm0, %v637_v26  ;;  %v658_v34 = vsel %vm644_vm0, %v636_v27, 0  ;;  %v6592_v35 = vcombine.low %v579_v22, %v583_v23  ;;  %v874_v37 = vrot.slane %v6593_v28, 3  ;;  %v6594_v38 = vcombine.low %v580_v29, %v584_v24  ;;  %v592_v59 = vld [vmem:[%s7373_s19 + $0xc8] sm:$0x11] }
  0x51   : > { %6590 = vmatprep.subr.msk.bf16.mxu1 %vm644_vm0, %v639_v31  ;;  %v664_v36 = vsel %vm644_vm0, %v638_v32, 0  ;;  %v876_v39 = vrot.slane %v6595_v33, 3  ;;  %v6597_v46 = vcombine.high %v581_v40, %v585_v41  ;;  %v6599_v47 = vcombine.high %v582_v42, %v586_v43  ;;  %v593_v4 = vld [vmem:[%s7373_s19 + $0xd0] sm:$0x11]  ;;  %v590_v5 = vld [vmem:[%s7373_s19 + $0xb8] sm:$0xff]  ;;  %s9449_s26 = sld [smem:[#allocation39_spill]] }
  0x52   : > { %6585 = vmatmul.mubr.msk.bf16.vlgmr.msra.gmra.mxu0 %vm640_vm1, %v7392_v13  ;;  %v873_v44 = vrot.slane %v6592_v35, 3  ;;  %v875_v45 = vrot.slane %v6594_v38, 3  ;;  %v6596_v49 = vcombine.low %v581_v40, %v585_v41  ;;  %v6598_v52 = vcombine.low %v582_v42, %v586_v43  ;;  %v594_v6 = vld [vmem:[%s7373_s19 + $0xd8] sm:$0x11]  ;;  %s6864_s28 = smul.u32 96, %s7369_s20  ;;  %s9450_s12 = sld [smem:[#allocation10_spill]] }
  0x53   : > { %6587 = vmatmul.mubr.msk.bf16.vlgmr.msra.gmra.mxu1 %vm640_vm1, %v7392_v13  ;;  %770 = vmatpush1.bf16.msra.mxu0 %v658_v34  ;;  %v878_v51 = vrot.slane %v6597_v46, 3  ;;  %v880_v53 = vrot.slane %v6599_v47, 3  ;;  %v6609_v62 = vcombine.high %v587_v56, %v591_v57  ;;  %v6611_v63 = vcombine.high %v588_v58, %v592_v59  ;;  %v548_v46 = vld [vmem:[%s9324_s5] sm:$0xff]  ;;  %s9451_s29 = sld [smem:[#allocation13_spill]] }
  0x54   : > { %813 = vmatpush1.bf16.msra.mxu1 %v664_v36  ;;  %787 = vmatprep.mubr.bf16.mxu0 %v9348_v0  ;;  %v882_v48 = vsel %vm644_vm0, %v873_v44, 0  ;;  %v888_v50 = vsel %vm644_vm0, %v875_v45, 0  ;;  %v877_v54 = vrot.slane %v6596_v49, 3  ;;  %v879_v55 = vrot.slane %v6598_v52, 3  ;;  %s9252_s30 = scalar_lea.vmem [#allocation5], %s6864_s28  ;;  %s9452_s21 = sld [smem:[#allocation40_spill]] }
  0x55   : > { %830 = vmatprep.mubr.bf16.mxu1 %v9348_v0  ;;  %6600 = vmatprep.subr.msk.bf16.mxu0 %vm644_vm0, %v874_v37  ;;  %v6608_v1 = vcombine.low %v587_v56, %v591_v57  ;;  %v6610_v2 = vcombine.low %v588_v58, %v592_v59  ;;  %v6613_v9 = vcombine.high %v589_v3, %v593_v4  ;;  %s6496_s18 = sshll.u32 %s9252_s30, 4  ;;  %s7188_s28 = smov [#allocation5]   ;;  %s9276_s18 = int_to_ptr.vmem [resolvable:$true] %s6496_s18 }
  0x56   : > { %6602 = vmatprep.subr.msk.bf16.mxu1 %vm644_vm0, %v876_v39  ;;  %v894_v60 = vsel %vm644_vm0, %v877_v54, 0  ;;  %v900_v61 = vsel %vm644_vm0, %v879_v55, 0  ;;  %v6615_v10 = vcombine.high %v590_v5, %v594_v6  ;;  %v6612_v11 = vcombine.low %v589_v3, %v593_v4  ;;  %1967 = vperm.xlu0 %6918, %v548_v46  }
  0x57   : > { %v1110_v7 = vsel %vm644_vm0, %v6608_v1, 0  ;;  %v1116_v8 = vsel %vm644_vm0, %v6610_v2, 0  ;;  %v6614_v12 = vcombine.low %v590_v5, %v594_v6 }
  0x58   : > { %v1122_v14 = vsel %vm644_vm0, %v6612_v11, 0  ;;  %s6861_s25 = sshll.u32 %s9450_s12, 9  ;;  %s7121_s12 = sshll.u32 %s7188_s28, 4  ;;  %s7122_s12 = int_to_ptr.vmem [resolvable:$false] %s7121_s12 }
  0x59   : > { %v1128_v15 = vsel %vm644_vm0, %v6614_v12, 0  ;;  %p9454_p11 = scmp.ne.s32.totalorder %s9451_s29, 0  ;;  %p7124_p5 = scmp.lt.s32.totalorder %s9276_s18, %s7122_s12 }
  0x5a   : > { %6589 = vmatmul.mubr.msk.bf16.vlgmr.msra.gmra.mxu0 %vm640_vm1, %v7392_v13  ;;  %s9453_s0 = smov %s9452_s21  ;;  %s9273_s23 = scalar_lea.hbm %s9452_s21, %s6861_s25 }
  0x5b   : > { %6591 = vmatmul.mubr.msk.bf16.vlgmr.msra.gmra.mxu1 %vm640_vm1, %v7392_v13  ;;  %920 = vmatpush1.bf16.msra.mxu0 %v882_v48  ;;  %s7123_s25 = scalar_lea.vmem %s7122_s12, 3072 }
  0x5c   : > { %963 = vmatpush1.bf16.msra.mxu1 %v888_v50  ;;  %937 = vmatprep.mubr.bf16.mxu0 %v9348_v0 }
  0x5d   : > { %980 = vmatprep.mubr.bf16.mxu1 %v9348_v0  ;;  %6604 = vmatprep.subr.msk.bf16.mxu0 %vm644_vm0, %v878_v51 }
  0x5e   : > { %6606 = vmatprep.subr.msk.bf16.mxu1 %vm644_vm0, %v880_v53 }
  0x62   : > { %6601 = vmatmul.mubr.msk.bf16.vlgmr.msra.gmra.mxu0 %vm640_vm1, %v7392_v13 }
  0x63   : > { %6603 = vmatmul.mubr.msk.bf16.vlgmr.msra.gmra.mxu1 %vm640_vm1, %v7392_v13  ;;  %1006 = vmatpush1.bf16.msra.mxu0 %v894_v60 }
  0x64   : > { %1049 = vmatpush1.bf16.msra.mxu1 %v900_v61  ;;  %1023 = vmatprep.mubr.bf16.mxu0 %v9348_v0 }
  0x65   : > { %1066 = vmatprep.mubr.bf16.mxu1 %v9348_v0  ;;  %6616 = vmatprep.subr.msk.bf16.mxu0 %vm644_vm0, %v6609_v62 }
  0x66   : > { %6618 = vmatprep.subr.msk.bf16.mxu1 %vm644_vm0, %v6611_v63 }
  0x6a   : > { %6605 = vmatmul.mubr.msk.bf16.vlgmr.msra.gmra.mxu0 %vm640_vm1, %v7392_v13 }
  0x6b   : > { %6607 = vmatmul.mubr.msk.bf16.vlgmr.msra.gmra.mxu1 %vm640_vm1, %v7392_v13  ;;  %1148 = vmatpush1.bf16.msra.mxu0 %v1110_v7 }
  0x6c   : > { %1191 = vmatpush1.bf16.msra.mxu1 %v1116_v8  ;;  %1165 = vmatprep.mubr.bf16.mxu0 %v9348_v0 }
  0x6d   : > { %1208 = vmatprep.mubr.bf16.mxu1 %v9348_v0  ;;  %6620 = vmatprep.subr.msk.bf16.mxu0 %vm644_vm0, %v6613_v9 }
  0x6e   : > { %6622 = vmatprep.subr.msk.bf16.mxu1 %vm644_vm0, %v6615_v10 }
  0x72   : > { %6617 = vmatmul.mubr.msk.bf16.vlgmr.msra.gmra.mxu0 %vm640_vm1, %v7392_v13 }
  0x73   : > { %6619 = vmatmul.mubr.msk.bf16.vlgmr.msra.gmra.mxu1 %vm640_vm1, %v7392_v13  ;;  %1234 = vmatpush1.bf16.msra.mxu0 %v1122_v14 }
  0x74   : > { %1277 = vmatpush1.bf16.msra.mxu1 %v1128_v15  ;;  %1251 = vmatprep.mubr.bf16.mxu0 %v9348_v0 }
  0x75   : > { %1294 = vmatprep.mubr.bf16.mxu1 %v9348_v0 }
  0x7a   : > { %6621 = vmatmul.mubr.msk.bf16.vlgmr.msra.gmra.mxu0 %vm640_vm1, %v7392_v13 }
  0x7b   : > { %6623 = vmatmul.mubr.msk.bf16.vlgmr.msra.gmra.mxu1 %vm640_vm1, %v7392_v13  ;;  %1580 = vmatprep.mubr.bf16.mxu0 %v9348_v0 }
  0x7c   : > { %1621 = vmatprep.mubr.bf16.mxu1 %v9348_v0 }
 0x112   : > { %v7472_v16 = vpop.f32.mrf.mxu0 }
 0x113   : > { %v7474_v17 = vpop.f32.mrf.mxu1  ;;  %v1305_v44 = vmul.f32 %v7472_v16, %v7472_v16 }
 0x114   : > { %v7476_v18 = vpop.f32.mrf.mxu0  ;;  %v1307_v47 = vmul.f32 %v7474_v17, %v7474_v17 }
 0x115   : > { %v7478_v19 = vpop.f32.mrf.mxu1  ;;  %v1306_v48 = vmul.f32 %v7476_v18, %v7476_v18 }
 0x116   : > { %v7480_v20 = vpop.f32.mrf.mxu0  ;;  %v1308_v49 = vmul.f32 %v7478_v19, %v7478_v19 }
 0x117   : > { %v7484_v22 = vpop.f32.mrf.mxu1  ;;  %v1313_v50 = vmul.f32 %v7480_v20, %v7480_v20 }
 0x118   : > { %v7488_v23 = vpop.f32.mrf.mxu0  ;;  %v1315_v52 = vmul.f32 %v7484_v22, %v7484_v22 }
 0x119   : > { %v7490_v24 = vpop.f32.mrf.mxu1  ;;  %v1314_v53 = vmul.f32 %v7488_v23, %v7488_v23 }
 0x11a   : > { %v7492_v25 = vpop.f32.mrf.mxu0  ;;  %v1316_v54 = vmul.f32 %v7490_v24, %v7490_v24 }
 0x11b   : > { %v7494_v26 = vpop.f32.mrf.mxu1  ;;  %v1309_v55 = vmul.f32 %v7492_v25, %v7492_v25 }
 0x11c   : > { %v7496_v27 = vpop.f32.mrf.mxu0  ;;  %v1311_v57 = vmul.f32 %v7494_v26, %v7494_v26 }
 0x11d   : > { %v7498_v28 = vpop.f32.mrf.mxu1  ;;  %v1310_v58 = vmul.f32 %v7496_v27, %v7496_v27 }
 0x11e   : > { %v7500_v29 = vpop.f32.mrf.mxu0  ;;  %v1312_v59 = vmul.f32 %v7498_v28, %v7498_v28 }
 0x11f   : > { %v7504_v31 = vpop.f32.mrf.mxu1  ;;  %v1317_v60 = vmul.f32 %v7500_v29, %v7500_v29 }
 0x120   : > { %v7508_v33 = vpop.f32.mrf.mxu0  ;;  %v1319_v62 = vmul.f32 %v7504_v31, %v7504_v31 }
 0x121   : > { %v7510_v34 = vpop.f32.mrf.mxu1  ;;  %v7571_v63 = vmul.f32 %v7508_v33, %v7508_v33 }
 0x122   : > { %v7512_v35 = vpop.f32.mrf.mxu0  ;;  %v7581_v4 = vmul.f32 %v7510_v34, %v7510_v34 }
 0x123   : > { %9391 = vst [vmem:[#allocation15_spill] sm:$0xff] %v7512_v35  ;;  %v7514_v36 = vpop.f32.mrf.mxu1  ;;  %v1321_v1 = vmul.f32 %v7512_v35, %v7512_v35 }
 0x124   : > { %9392 = vst [vmem:[#allocation16_spill] sm:$0xff] %v7514_v36  ;;  %v7516_v37 = vpop.f32.mrf.mxu0  ;;  %v1323_v2 = vmul.f32 %v7514_v36, %v7514_v36 }
 0x125   : > { %v7518_v38 = vpop.f32.mrf.mxu1  ;;  %v1322_v5 = vmul.f32 %v7516_v37, %v7516_v37  ;;  %v1337_v30 = vadd.f32 %v1321_v1, %v1305_v44 }
 0x126   : > { %v7520_v39 = vpop.f32.mrf.mxu0  ;;  %v1324_v6 = vmul.f32 %v7518_v38, %v7518_v38  ;;  %v1339_v13 = vadd.f32 %v1323_v2, %v1307_v47 }
 0x127   : > { %9393 = vst [vmem:[#allocation17_spill] sm:$0xff] %v7520_v39  ;;  %v7524_v41 = vpop.f32.mrf.mxu1  ;;  %v1329_v7 = vmul.f32 %v7520_v39, %v7520_v39 }
 0x128   : > { %9394 = vst [vmem:[#allocation18_spill] sm:$0xff] %v7524_v41  ;;  %v7528_v43 = vpop.f32.mrf.mxu0  ;;  %v1331_v9 = vmul.f32 %v7524_v41, %v7524_v41  ;;  %v1340_v36 = vadd.f32 %v1324_v6, %v1308_v49 }
 0x129   : > { %v7532_v45 = vpop.f32.mrf.mxu1  ;;  %v1330_v10 = vmul.f32 %v7528_v43, %v7528_v43  ;;  %v1345_v41 = vadd.f32 %v1329_v7, %v1313_v50 }
 0x12a   : > { %v7545_v51 = vpop.f32.mrf.mxu0  ;;  %v1332_v11 = vmul.f32 %v7532_v45, %v7532_v45  ;;  %v1347_v40 = vadd.f32 %v1331_v9, %v1315_v52 }
 0x12b   : > { %9395 = vst [vmem:[#allocation19_spill] sm:$0xff] %v7545_v51  ;;  %v7555_v56 = vpop.f32.mrf.mxu1  ;;  %v1325_v15 = vmul.f32 %v7545_v51, %v7545_v51  ;;  %v1338_v51 = vadd.f32 %v1322_v5, %v1306_v48 }
 0x12c   : > { %9396 = vst [vmem:[#allocation20_spill] sm:$0xff] %v7555_v56  ;;  %v7565_v61 = vpop.f32.mrf.mxu0  ;;  %v1327_v46 = vmul.f32 %v7555_v56, %v7555_v56  ;;  %v1346_v56 = vadd.f32 %v1330_v10, %v1314_v53  ;;  %v1348_v44 = vadd.f32 %v1332_v11, %v1316_v54 }
 0x12d   : > { %v7577_v3 = vpop.f32.mrf.mxu1  ;;  %v1326_v42 = vmul.f32 %v7565_v61, %v7565_v61  ;;  %v1341_v2 = vadd.f32 %v1325_v15, %v1309_v55 }
 0x12e   : > { %9397 = vst [vmem:[#allocation21_spill] sm:$0xff] %v7577_v3  ;;  %v7589_v8 = vpop.f32.mrf.mxu0  ;;  %v1328_v12 = vmul.f32 %v7577_v3, %v7577_v3 }
 0x12f   : > { %9398 = vst [vmem:[#allocation22_spill] sm:$0xff] %v7589_v8  ;;  %v7599_v14 = vpop.f32.mrf.mxu1  ;;  %v1333_v21 = vmul.f32 %v7589_v8, %v7589_v8  ;;  %v1343_v8 = vadd.f32 %v1327_v46, %v1311_v57  ;;  %v1342_v3 = vadd.f32 %v1326_v42, %v1310_v58 }
 0x130   : > { %9399 = vst [vmem:[#allocation23_spill] sm:$0xff] %v7599_v14  ;;  %v7609_v32 = vpop.f32.mrf.mxu0  ;;  %v1335_v35 = vmul.f32 %v7599_v14, %v7599_v14  ;;  %v1344_v50 = vadd.f32 %v1328_v12, %v1312_v59 }
 0x131   : > { %v7615_v0 = vpop.f32.mrf.mxu1  ;;  %v1349_v5 = vadd.f32 %v1333_v21, %v1317_v60  ;;  %v1334_v55 = vmul.f32 %v7609_v32, %v7609_v32 }
 0x132   : > { %v7619_v39 = vpop.f32.mrf.mxu0  ;;  %v7633_v54 = vadd.f32 %v1335_v35, %v1319_v62 }
 0x133   : > { %9400 = vst [vmem:[#allocation24_spill] sm:$0xff] %v7619_v39  ;;  %v1353_v47 = vmul.f32 %v7619_v39, %v7619_v39  ;;  %v7623_v1 = vpop.f32.mrf.mxu1 }
 0x134   : > { %9401 = vst [vmem:[#allocation25_spill] sm:$0xff] %v7623_v1  ;;  %v1355_v48 = vmul.f32 %v7623_v1, %v7623_v1  ;;  %v7627_v49 = vpop.f32.mrf.mxu0 }
 0x135   : > { %v1369_v6 = vadd.f32 %v1353_v47, %v1337_v30  ;;  %v1354_v52 = vmul.f32 %v7627_v49, %v7627_v49  ;;  %v7631_v53 = vpop.f32.mrf.mxu1 }
 0x136   : > { %v1371_v57 = vadd.f32 %v1355_v48, %v1339_v13  ;;  %v1356_v42 = vmul.f32 %v7631_v53, %v7631_v53  ;;  %v7639_v58 = vpop.f32.mrf.mxu0 }
 0x137   : > { %9402 = vst [vmem:[#allocation26_spill] sm:$0xff] %v7639_v58  ;;  %v7641_v7 = vmax.f32 %v1369_v6, 1e-08  ;;  %v1370_v21 = vadd.f32 %v1354_v52, %v1338_v51  ;;  %v1361_v30 = vmul.f32 %v7639_v58, %v7639_v58  ;;  %v7647_v35 = vpop.f32.mrf.mxu1 }
 0x138   : > { %9403 = vst [vmem:[#allocation27_spill] sm:$0xff] %v7647_v35  ;;  %v7649_v60 = vmax.f32 %v1371_v57, 1e-08  ;;  %v1372_v62 = vadd.f32 %v1356_v42, %v1340_v36  ;;  %v1363_v13 = vmul.f32 %v7647_v35, %v7647_v35  ;;  %v7655_v10 = vpop.f32.mrf.mxu0  ;;  %v1336_v36 = vmul.f32 %v7615_v0, %v7615_v0 }
 0x139   : > { %6929 = vrsqrt.f32 %v7641_v7  ;;  %v7658_v51 = vmax.f32 %v1370_v21, 1e-08  ;;  %v1377_v11 = vadd.f32 %v1361_v30, %v1345_v41  ;;  %v1362_v12 = vmul.f32 %v7655_v10, %v7655_v10  ;;  %v7662_v15 = vpop.f32.mrf.mxu1 }
 0x13a   : > { %9404 = vst [vmem:[#allocation28_spill] sm:$0xff] %v7662_v15  ;;  %6931 = vrsqrt.f32 %v7649_v60  ;;  %v7667_v46 = vmax.f32 %v1372_v62, 1e-08  ;;  %v1379_v47 = vadd.f32 %v1363_v13, %v1347_v40  ;;  %v7669_v48 = vpop.f32.mrf.mxu0  ;;  %v1364_v52 = vmul.f32 %v7662_v15, %v7662_v15 }
 0x13b   : > { %9405 = vst [vmem:[#allocation29_spill] sm:$0xff] %v7669_v48  ;;  %6933 = vrsqrt.f32 %v7658_v51  ;;  %v7672_v6 = vmax.f32 %v1377_v11, 1e-08  ;;  %v1378_v41 = vadd.f32 %v1362_v12, %v1346_v56  ;;  %v7676_v57 = vpop.f32.mrf.mxu1  ;;  %v1350_v42 = vadd.f32 %v1334_v55, %v7571_v63 }
 0x13c   : > { %9406 = vst [vmem:[#allocation30_spill] sm:$0xff] %v7676_v57  ;;  %6935 = vrsqrt.f32 %v7667_v46  ;;  %v7680_v21 = vmax.f32 %v1379_v47, 1e-08  ;;  %v1357_v40 = vmul.f32 %v7669_v48, %v7669_v48  ;;  %v7684_v30 = vpop.f32.mrf.mxu0  ;;  %v1380_v56 = vadd.f32 %v1364_v52, %v1348_v44 }
 0x13d   : > { %9407 = vst [vmem:[#allocation31_spill] sm:$0xff] %v7684_v30  ;;  %6937 = vrsqrt.f32 %v7672_v6  ;;  %v7687_v62 = vmax.f32 %v1378_v41, 1e-08  ;;  %v1359_v13 = vmul.f32 %v7676_v57, %v7676_v57  ;;  %v7691_v11 = vpop.f32.mrf.mxu1  ;;  %v1358_v55 = vmul.f32 %v7684_v30, %v7684_v30 }
 0x13e   : > { %9408 = vst [vmem:[#allocation32_spill] sm:$0xff] %v7691_v11  ;;  %6939 = vrsqrt.f32 %v7680_v21  ;;  %v1373_v63 = vadd.f32 %v1357_v40, %v1341_v2  ;;  %v1360_v12 = vmul.f32 %v7691_v11, %v7691_v11  ;;  %v7698_v47 = vpop.f32.mrf.mxu0  ;;  %v7701_v41 = vmax.f32 %v1380_v56, 1e-08 }
 0x13f   : > { %9409 = vst [vmem:[#allocation33_spill] sm:$0xff] %v7698_v47  ;;  %6941 = vrsqrt.f32 %v7687_v62  ;;  %v1375_v44 = vadd.f32 %v1359_v13, %v1343_v8  ;;  %v1365_v52 = vmul.f32 %v7698_v47, %v7698_v47  ;;  %v7705_v9 = vpop.f32.mrf.mxu1  ;;  %v1374_v40 = vadd.f32 %v1358_v55, %v1342_v3  ;;  %v7728_v55 = vld [vmem:[%s7373_s19 + $0x40] sm:$0x33] }
 0x140   : > { %9410 = vst [vmem:[#allocation34_spill] sm:$0xff] %v7705_v9  ;;  %v7707_v2 = vmax.f32 %v1373_v63, 1e-08  ;;  %v1376_v59 = vadd.f32 %v1360_v12, %v1344_v50  ;;  %v7711_v35 = vpop.f32.mrf.mxu0  ;;  %6943 = vrsqrt.f32 %v7701_v41  ;;  %v1367_v13 = vmul.f32 %v7705_v9, %v7705_v9 }
 0x141   : > { %9411 = vst [vmem:[#allocation35_spill] sm:$0xff] %v7711_v35  ;;  %v7714_v56 = vmax.f32 %v1375_v44, 1e-08  ;;  %v1381_v8 = vadd.f32 %v1365_v52, %v1349_v5  ;;  %v7718_v11 = vpop.f32.mrf.mxu1  ;;  %v7721_v63 = vmax.f32 %v1374_v40, 1e-08  ;;  %v1366_v44 = vmul.f32 %v7711_v35, %v7711_v35 }
 0x142   : > { %9412 = vst [vmem:[#allocation36_spill] sm:$0xff] %v7718_v11  ;;  %6945 = vrsqrt.f32 %v7707_v2  ;;  %v7723_v3 = vmax.f32 %v1376_v59, 1e-08  ;;  %v1383_v5 = vadd.f32 %v1367_v13, %v7633_v54  ;;  %v1352_v52 = vadd.f32 %v1336_v36, %v7581_v4 }
 0x143   : > { %6947 = vrsqrt.f32 %v7714_v56  ;;  %v7731_v12 = vmax.f32 %v1381_v8, 1e-08  ;;  %v1368_v59 = vmul.f32 %v7718_v11, %v7718_v11  ;;  %v1382_v50 = vadd.f32 %v1366_v44, %v1350_v42 }
 0x144   : > { %6949 = vrsqrt.f32 %v7721_v63  ;;  %v7741_v40 = vmax.f32 %v1383_v5, 1e-08  ;;  %vm1410_vm2 = vcmp.eq.f32.partialorder %v7658_v51, inf  ;;  %vm1412_vm3 = vcmp.eq.f32.partialorder %v7658_v51, 0.0 }
 0x145   : > { %6951 = vrsqrt.f32 %v7723_v3  ;;  %v1384_v54 = vadd.f32 %v1368_v59, %v1352_v52  ;;  %v7749_v36 = vmax.f32 %v1382_v50, 1e-08  ;;  %v1413_v13 = vand.u32 2147483648, %v7658_v51 }
 0x146   : > { %v6930_v1 = vpop.eup %6929  ;;  %6953 = vrsqrt.f32 %v7731_v12  ;;  %vm1466_vm4 = vcmp.eq.f32.partialorder %v7687_v62, inf  ;;  %vm1468_vm5 = vcmp.eq.f32.partialorder %v7687_v62, 0.0  ;;  %v1469_v44 = vand.u32 2147483648, %v7687_v62 }
 0x147   : > { %v6932_v4 = vpop.eup %6931  ;;  %6955 = vrsqrt.f32 %v7741_v40  ;;  %v7753_v5 = vmax.f32 %v1384_v54, 1e-08  ;;  %vm1424_vm6 = vcmp.eq.f32.partialorder %v7667_v46, inf  ;;  %vm1426_vm7 = vcmp.eq.f32.partialorder %v7667_v46, 0.0 }
 0x148   : > { %v6934_v42 = vpop.eup %6933  ;;  %6957 = vrsqrt.f32 %v7749_v36  ;;  %v1427_v50 = vand.u32 2147483648, %v7667_v46  ;;  %vm1480_vm8 = vcmp.eq.f32.partialorder %v7701_v41, inf  ;;  %vm1482_vm9 = vcmp.eq.f32.partialorder %v7701_v41, 0.0 }
 0x149   : > { %v6936_v52 = vpop.eup %6935  ;;  %v1409_v59 = vmul.f32 %v6934_v42, %v7658_v51  ;;  %6959 = vrsqrt.f32 %v7753_v5  ;;  %v1483_v42 = vand.u32 2147483648, %v7701_v41  ;;  %v1402_v48 = vmul.f32 %v6930_v1, %v7641_v7 }
 0x14a   : > { %v6938_v8 = vpop.eup %6937  ;;  %v1423_v54 = vmul.f32 %v6936_v52, %v7667_v46  ;;  %vm1403_vm10 = vcmp.eq.f32.partialorder %v7641_v7, inf  ;;  %vm1405_vm11 = vcmp.eq.f32.partialorder %v7641_v7, 0.0  ;;  %v1406_v52 = vand.u32 2147483648, %v7641_v7 }
 0x14b   : > { %v6940_v57 = vpop.eup %6939  ;;  %v1411_v9 = vsel %vm1410_vm2, %v7658_v51, %v1409_v59  ;;  %v1458_v39 = vmul.f32 %v6938_v8, %v7672_v6  ;;  %v1404_v1 = vsel %vm1403_vm10, %v7641_v7, %v1402_v48  ;;  %vm1459_vm12 = vcmp.eq.f32.partialorder %v7672_v6, inf }
 0x14c   : > { %v6942_v47 = vpop.eup %6941  ;;  %v1414_v11 = vsel %vm1412_vm3, %v1413_v13, %v1411_v9  ;;  %v1425_v59 = vsel %vm1424_vm6, %v7667_v46, %v1423_v54  ;;  %v1407_v30 = vsel %vm1405_vm11, %v1406_v52, %v1404_v1  ;;  %vm1461_vm13 = vcmp.eq.f32.partialorder %v7672_v6, 0.0 }
 0x14d   : > { %v1465_v58 = vmul.f32 %v6942_v47, %v7687_v62  ;;  %v6944_v35 = vpop.eup %6943  ;;  %v1460_v9 = vsel %vm1459_vm12, %v7672_v6, %v1458_v39  ;;  %v1462_v51 = vand.u32 2147483648, %v7672_v6  ;;  %v1416_v54 = vmul.f32 %v6932_v4, %v7649_v60 }
 0x14e   : > { %v1479_v8 = vmul.f32 %v6944_v35, %v7701_v41  ;;  %vm1417_vm14 = vcmp.eq.f32.partialorder %v7649_v60, inf  ;;  %vm1419_vm15 = vcmp.eq.f32.partialorder %v7649_v60, 0.0  ;;  %v1420_v6 = vand.u32 2147483648, %v7649_v60 }
 0x14f   : > { %v6946_v13 = vpop.eup %6945  ;;  %v1467_v47 = vsel %vm1466_vm4, %v7687_v62, %v1465_v58  ;;  %v1463_v48 = vsel %vm1461_vm13, %v1462_v51, %v1460_v9  ;;  %v1418_v4 = vsel %vm1417_vm14, %v7649_v60, %v1416_v54  ;;  %v1428_v15 = vsel %vm1426_vm7, %v1427_v50, %v1425_v59 }
 0x150   : > { %v7792_v7 = vpop.eup %6947  ;;  %v1470_v39 = vsel %vm1468_vm5, %v1469_v44, %v1467_v47  ;;  %v1481_v58 = vsel %vm1480_vm8, %v7701_v41, %v1479_v8  ;;  %v1513_v35 = vpack.c.bf16 %v1463_v48, %v1407_v30  ;;  %v1421_v44 = vsel %vm1419_vm15, %v1420_v6, %v1418_v4 }
 0x151   : > { %v6950_v52 = vpop.eup %6949  ;;  %v1514_v1 = vpack.c.bf16 %v1470_v39, %v1414_v11  ;;  %v1484_v62 = vsel %vm1482_vm9, %v1483_v42, %v1481_v58  ;;  %v1472_v9 = vmul.f32 %v6940_v57, %v7680_v21  ;;  %vm1473_vm2 = vcmp.eq.f32.partialorder %v7680_v21, inf  ;;  %v7816_v57 = vld [vmem:[%s9323_s4] sm:$0xf] }
 0x152   : > { %v6952_v14 = vpop.eup %6951  ;;  %v1516_v11 = vpack.c.bf16 %v1484_v62, %v1428_v15  ;;  %v1525_v47 = vsel %vm644_vm0, %v1513_v35, 0  ;;  %v1476_v60 = vand.u32 2147483648, %v7680_v21  ;;  %vm1475_vm3 = vcmp.eq.f32.partialorder %v7680_v21, 0.0 }
 0x153   : > { %v6954_v51 = vpop.eup %6953  ;;  %6624 = vmatprep.subr.msk.bf16.mxu0 %vm644_vm0, %v1514_v1  ;;  %v1474_v46 = vsel %vm1473_vm2, %v7680_v21, %v1472_v9  ;;  %v1437_v41 = vmul.f32 %v6950_v52, %v7721_v63  ;;  %vm1438_vm4 = vcmp.eq.f32.partialorder %v7721_v63, inf  ;;  %vm1440_vm5 = vcmp.eq.f32.partialorder %v7721_v63, 0.0 }
 0x154   : > { %v6956_v30 = vpop.eup %6955  ;;  %1563 = vmatpush1.bf16.msra.mxu0 %v1525_v47  ;;  %6626 = vmatprep.subr.msk.bf16.mxu1 %vm644_vm0, %v1516_v11  ;;  %v1477_v15 = vsel %vm1475_vm3, %v1476_v60, %v1474_v46  ;;  %v1441_v50 = vand.u32 2147483648, %v7721_v63  ;;  %vm1494_vm6 = vcmp.eq.f32.partialorder %v7749_v36, inf  ;;  %vm1496_vm7 = vcmp.eq.f32.partialorder %v7749_v36, 0.0 }
 0x155   : > { %v6958_v42 = vpop.eup %6957  ;;  %v1515_v21 = vpack.c.bf16 %v1477_v15, %v1421_v44  ;;  %v1439_v59 = vsel %vm1438_vm4, %v7721_v63, %v1437_v41  ;;  %v1451_v8 = vmul.f32 %v6952_v14, %v7723_v3  ;;  %v1497_v6 = vand.u32 2147483648, %v7749_v36 }
 0x156   : > { %v6960_v54 = vpop.eup %6959  ;;  %v1442_v39 = vsel %vm1440_vm5, %v1441_v50, %v1439_v59  ;;  %v1493_v48 = vmul.f32 %v6958_v42, %v7749_v36  ;;  %vm1452_vm8 = vcmp.eq.f32.partialorder %v7723_v3, inf  ;;  %vm1454_vm9 = vcmp.eq.f32.partialorder %v7723_v3, 0.0 }
 0x157   : > { %6625 = vmatmul.mubr.msk.bf16.vlgmr.msra.gmra.mxu0 %vm640_vm1, %v7816_v57  ;;  %v1531_v52 = vsel %vm644_vm0, %v1515_v21, 0  ;;  %v1453_v1 = vsel %vm1452_vm8, %v7723_v3, %v1451_v8  ;;  %v1507_v63 = vmul.f32 %v6960_v54, %v7753_v5  ;;  %v9413_v14 = vmov 0   ;;  %v568_v54 = vld [vmem:[%s7373_s19 + $0x48] sm:$0x33] }
 0x158   : > { %1662 = vmatprep.mubr.bf16.mxu0 %v9413_v14  ;;  %1604 = vmatpush1.bf16.msra.mxu1 %v1531_v52  ;;  %v1495_v58 = vsel %vm1494_vm6, %v7749_v36, %v1493_v48  ;;  %v1455_v35 = vand.u32 2147483648, %v7723_v3  ;;  %vm1508_vm10 = vcmp.eq.f32.partialorder %v7753_v5, inf  ;;  %v1511_v4 = vand.u32 2147483648, %v7753_v5 }
 0x159   : > { %v1498_v62 = vsel %vm1496_vm7, %v1497_v6, %v1495_v58  ;;  %v1509_v44 = vsel %vm1508_vm10, %v7753_v5, %v1507_v63  ;;  %vm1510_vm11 = vcmp.eq.f32.partialorder %v7753_v5, 0.0  ;;  %v1430_v9 = vmul.f32 %v6946_v13, %v7707_v2 }
 0x15a   : > { %v1518_v11 = vpack.c.bf16 %v1498_v62, %v1442_v39  ;;  %v1456_v47 = vsel %vm1454_vm9, %v1455_v35, %v1453_v1  ;;  %v1512_v60 = vsel %vm1510_vm11, %v1511_v4, %v1509_v44  ;;  %vm1431_vm12 = vcmp.eq.f32.partialorder %v7707_v2, inf  ;;  %v559_v39 = vld [vmem:[%s7373_s19] sm:$0xff]  ;;  %v560_v4 = vld [vmem:[%s7373_s19 + $0x8] sm:$0xff] }
 0x15b   : > { %6627 = vmatmul.mubr.msk.bf16.vlgmr.msra.gmra.mxu1 %vm640_vm1, %v7816_v57  ;;  %v1520_v3 = vpack.c.bf16 %v1512_v60, %v1456_v47  ;;  %v1432_v46 = vsel %vm1431_vm12, %v7707_v2, %v1430_v9  ;;  %v1486_v36 = vmul.f32 %v6954_v51, %v7731_v12  ;;  %v6640_v41 = vcombine.low %v7728_v55, %v7728_v55  ;;  %v564_v62 = vld [vmem:[%s7373_s19 + $0x28] sm:$0xff]  ;;  %v569_v9 = vld [vmem:[%s7373_s19 + $0x50] sm:$0x33] }
 0x15c   : > { %6628 = vmatprep.subr.msk.bf16.mxu0 %vm644_vm0, %v1518_v11  ;;  %v1434_v5 = vand.u32 2147483648, %v7707_v2  ;;  %vm1487_vm13 = vcmp.eq.f32.partialorder %v7731_v12, inf  ;;  %v1490_v13 = vand.u32 2147483648, %v7731_v12  ;;  %v1444_v15 = vmul.f32 %v7792_v7, %v7714_v56  ;;  %1703 = vmatprep.mubr.bf16.mxu1 %v9413_v14 }
 0x15d   : > { %6630 = vmatprep.subr.msk.bf16.mxu1 %vm644_vm0, %v1520_v3  ;;  %vm1433_vm14 = vcmp.eq.f32.partialorder %v7707_v2, 0.0  ;;  %v1488_v51 = vsel %vm1487_vm13, %v7731_v12, %v1486_v36  ;;  %vm1489_vm15 = vcmp.eq.f32.partialorder %v7731_v12, 0.0  ;;  %vm1445_vm2 = vcmp.eq.f32.partialorder %v7714_v56, inf  ;;  %v570_v3 = vld [vmem:[%s7373_s19 + $0x58] sm:$0x33]  ;;  %v561_v36 = vld [vmem:[%s7373_s19 + $0x10] sm:$0xff] }
 0x15e   : > { %v1435_v50 = vsel %vm1433_vm14, %v1434_v5, %v1432_v46  ;;  %v1491_v42 = vsel %vm1489_vm15, %v1490_v13, %v1488_v51  ;;  %v1446_v21 = vsel %vm1445_vm2, %v7714_v56, %v1444_v15  ;;  %v1500_v7 = vmul.f32 %v6956_v30, %v7741_v40  ;;  %v563_v30 = vld [vmem:[%s7373_s19 + $0x20] sm:$0xff] }
 0x15f   : > { %v1517_v59 = vpack.c.bf16 %v1491_v42, %v1435_v50  ;;  %v1448_v8 = vand.u32 2147483648, %v7714_v56  ;;  %vm1501_vm3 = vcmp.eq.f32.partialorder %v7741_v40, inf  ;;  %v1504_v2 = vand.u32 2147483648, %v7741_v40  ;;  %v546_v13 = vld [vmem:[%s9322_s3] sm:$0xf]  ;;  %v562_v42 = vld [vmem:[%s7373_s19 + $0x18] sm:$0xff] }
 0x160   : > { %vm1447_vm4 = vcmp.eq.f32.partialorder %v7714_v56, 0.0  ;;  %v1502_v12 = vsel %vm1501_vm3, %v7741_v40, %v1500_v7  ;;  %vm1503_vm5 = vcmp.eq.f32.partialorder %v7741_v40, 0.0  ;;  %vm1776_vm6 = vcmask 1041408  }
 0x161   : > { %v1537_v48 = vsel %vm644_vm0, %v1517_v59, 0  ;;  %v1449_v6 = vsel %vm1447_vm4, %v1448_v8, %v1446_v21  ;;  %v1505_v52 = vsel %vm1503_vm5, %v1504_v2, %v1502_v12  ;;  %v6643_v63 = vcombine.high %v568_v54, %v568_v54  ;;  %v566_v21 = vld [vmem:[%s7373_s19 + $0x38] sm:$0xff] }
 0x162   : > { %1645 = vmatpush1.bf16.msra.mxu0 %v1537_v48  ;;  %v1519_v1 = vpack.c.bf16 %v1505_v52, %v1449_v6  ;;  %v6642_v58 = vcombine.low %v568_v54, %v568_v54  ;;  %v9414_v56 = vcombine.high %v7728_v55, %v7728_v55  ;;  %v1778_v35 = vsel %vm1776_vm6, %v6640_v41, 0  ;;  %v565_v41 = vld [vmem:[%s7373_s19 + $0x30] sm:$0xff]  ;;  %v9426_v6 = vld [vmem:[#allocation22_spill] sm:$0xff]  ;;  %v9427_v52 = vld [vmem:[#allocation19_spill] sm:$0xff] }
 0x163   : > { %v6633_v40 = vcombine.high %v559_v39, %v563_v30  ;;  %v6632_v11 = vcombine.low %v559_v39, %v563_v30  ;;  %v6635_v47 = vcombine.high %v560_v4, %v564_v62  ;;  %v6645_v60 = vcombine.high %v569_v9, %v569_v9  ;;  %v9424_v30 = vld [vmem:[#allocation16_spill] sm:$0xff] }
 0x164   : > { %6648 = vmatprep.subr.msk.bf16.mxu0 %vm1776_vm6, %v9414_v56  ;;  %v1543_v44 = vsel %vm644_vm0, %v1519_v1, 0  ;;  %v1784_v55 = vsel %vm1776_vm6, %v6642_v58, 0  ;;  %v6644_v46 = vcombine.low %v569_v9, %v569_v9  ;;  %v6634_v5 = vcombine.low %v560_v4, %v564_v62  ;;  %v9430_v56 = vld [vmem:[#allocation23_spill] sm:$0xff]  ;;  %v9436_v9 = vld [vmem:[#allocation24_spill] sm:$0xff] }
 0x165   : > { %1686 = vmatpush1.bf16.msra.mxu1 %v1543_v44  ;;  %6629 = vmatmul.mubr.msk.bf16.vlgmr.msra.gmra.mxu0 %vm640_vm1, %v7816_v57  ;;  %vm1772_vm7 = vcmask 162816   ;;  %v6647_v15 = vcombine.high %v570_v3, %v570_v3  ;;  %v6646_v51 = vcombine.low %v570_v3, %v570_v3  ;;  %v6637_v50 = vcombine.high %v561_v36, %v565_v41  ;;  %v9434_v4 = vld [vmem:[#allocation35_spill] sm:$0xff]  ;;  %v9435_v44 = vld [vmem:[#allocation26_spill] sm:$0xff] }
 0x166   : > { %6650 = vmatprep.subr.msk.bf16.mxu1 %vm1776_vm6, %v6643_v63  ;;  %1814 = vmatpush1.bf16.msra.mxu0 %v1778_v35  ;;  %v6636_v59 = vcombine.low %v561_v36, %v565_v41  ;;  %v6639_v8 = vcombine.high %v562_v42, %v566_v21  ;;  %v1979_v2 = vpack.c.bf16 %v7488_v23, %v7476_v18  ;;  %v9429_v63 = vld [vmem:[#allocation28_spill] sm:$0xff]  ;;  %v9440_v3 = vld [vmem:[#allocation27_spill] sm:$0xff] }
 0x167   : > { %1815 = vmatprep.subr.bf16.mxu0 %v6633_v40  ;;  %1833 = vmatprep.mubr.bf16.mxu0 %v9413_v14  ;;  %v1796_v7 = vsel %vm1776_vm6, %v6646_v51, 0  ;;  %v6638_v54 = vcombine.low %v562_v42, %v566_v21  ;;  %v1981_v12 = vpack.c.bf16 %v7490_v24, %v7478_v19  ;;  %v1983_v39 = vpack.c.bf16 %v7508_v33, %v7496_v27  ;;  %v9431_v35 = vld [vmem:[#allocation20_spill] sm:$0xff]  ;;  %v9433_v40 = vld [vmem:[#allocation31_spill] sm:$0xff] }
 0x168   : > { %6631 = vmatmul.mubr.msk.bf16.vlgmr.msra.gmra.mxu1 %vm640_vm1, %v7816_v57  ;;  %v1790_v57 = vsel %vm1776_vm6, %v6644_v46, 0  ;;  %v9415_v18 = vpack.c.bf16 %v7480_v20, %v7472_v16  ;;  %v1985_v19 = vpack.c.bf16 %v7510_v34, %v7498_v28  ;;  %v9416_v24 = vpack.c.bf16 %v7484_v22, %v7474_v17  ;;  %v545_v16 = vld [vmem:[%s9321_s2] sm:$0x3]  ;;  %v9441_v46 = vld [vmem:[#allocation25_spill] sm:$0xff] }
 0x169   : > { %1855 = vmatpush1.bf16.msra.mxu1 %v1784_v55  ;;  %1874 = vmatprep.mubr.bf16.mxu1 %v9413_v14  ;;  %v2178_v20 = vpack.c.bf16 %v7528_v43, %v7516_v37  ;;  %v9417_v28 = vpack.c.bf16 %v7500_v29, %v7492_v25  ;;  %v2180_v22 = vpack.c.bf16 %v7532_v45, %v7518_v38  ;;  %v9419_v29 = vld [vmem:[#allocation17_spill] sm:$0xff]  ;;  %v9420_v37 = vld [vmem:[#allocation15_spill] sm:$0xff]  ;;  %v9423_v45 = vld [vmem:[#allocation18_spill] sm:$0xff] }
 0x16a   : > { %1856 = vmatprep.subr.bf16.mxu1 %v6635_v47  ;;  %1816 = vmatpush1.bf16.msra.mxu0 %v6632_v11  ;;  %v1990_v23 = vsel %vm644_vm0, %v9415_v18, 0  ;;  %v1996_v27 = vsel %vm644_vm0, %v9416_v24, 0  ;;  %v9418_v33 = vpack.c.bf16 %v7504_v31, %v7494_v26  ;;  %v2182_v25 = vpack.c.bf16 %v7609_v32, %v7565_v61  ;;  %v9422_v26 = vld [vmem:[#allocation21_spill] sm:$0xff]  ;;  %v9438_v11 = vld [vmem:[#allocation32_spill] sm:$0xff] }
 0x16b   : > { %6652 = vmatprep.subr.msk.bf16.mxu0 %vm1776_vm6, %v6645_v60  ;;  %v2002_v17 = vsel %vm644_vm0, %v9417_v28, 0  ;;  %v9421_v38 = vpack.c.bf16 %v9419_v29, %v9420_v37  ;;  %v2184_v31 = vpack.c.bf16 %v7615_v0, %v9422_v26  ;;  %v9425_v32 = vpack.c.bf16 %v9423_v45, %v9424_v30  ;;  %v9439_v47 = vld [vmem:[#allocation36_spill] sm:$0xff] }
 0x16c   : > { %v2008_v34 = vsel %vm644_vm0, %v9418_v33, 0  ;;  %v2374_v48 = vpack.c.bf16 %v7655_v10, %v7627_v49  ;;  %v9428_v0 = vpack.c.bf16 %v9426_v6, %v9427_v52  ;;  %v2376_v58 = vpack.c.bf16 %v9429_v63, %v7631_v53 }
 0x16d   : > { %1857 = vmatpush1.bf16.msra.mxu1 %v6634_v5  ;;  %6649 = vmatmul.mubr.msk.bf16.vlgmr.msra.gmra.mxu0 %vm1772_vm7, %v546_v13  ;;  %v2186_v43 = vsel %vm644_vm0, %v9421_v38, 0  ;;  %v2192_v61 = vsel %vm644_vm0, %v9425_v32, 0  ;;  %v9432_v49 = vpack.c.bf16 %v9430_v56, %v9431_v35  ;;  %v2378_v62 = vpack.c.bf16 %v9434_v4, %v9433_v40  ;;  %v9443_v5 = vld [vmem:[#allocation33_spill] sm:$0xff] }
 0x16e   : > { %6654 = vmatprep.subr.msk.bf16.mxu1 %vm1776_vm6, %v6647_v15  ;;  %1896 = vmatpush1.bf16.msra.mxu0 %v1790_v57  ;;  %v2198_v1 = vsel %vm644_vm0, %v9428_v0, 0  ;;  %v9437_v53 = vpack.c.bf16 %v9435_v44, %v9436_v9  ;;  %v2380_v60 = vpack.c.bf16 %v9439_v47, %v9438_v11  ;;  %v9442_v36 = vpack.c.bf16 %v9440_v3, %v9441_v46  ;;  %v9446_v57 = vld [vmem:[#allocation34_spill] sm:$0xff] }
 0x16f   : > { %1897 = vmatprep.subr.bf16.mxu0 %v6637_v50  ;;  %1915 = vmatprep.mubr.bf16.mxu0 %v9413_v14  ;;  %v2204_v10 = vsel %vm644_vm0, %v9432_v49, 0  ;;  %v9447_v50 = vld [vmem:[#allocation30_spill] sm:$0xff] }
 0x170   : > { %6651 = vmatmul.mubr.msk.bf16.vlgmr.msra.gmra.mxu1 %vm1772_vm7, %v546_v13  ;;  %v2382_v55 = vsel %vm644_vm0, %v9437_v53, 0  ;;  %v2388_v41 = vsel %vm644_vm0, %v9442_v36, 0  ;;  %v9448_v42 = vpack.c.bf16 %v9446_v57, %v9447_v50 }
 0x171   : > { %1937 = vmatpush1.bf16.msra.mxu1 %v1796_v7  ;;  %1956 = vmatprep.mubr.bf16.mxu1 %v9413_v14 }
 0x172   : > { %1938 = vmatprep.subr.bf16.mxu1 %v6639_v8  ;;  %1898 = vmatpush1.bf16.msra.mxu0 %v6636_v59  ;;  %v2400_v21 = vsel %vm644_vm0, %v9448_v42, 0 }
 0x173   : > { %6656 = vmatprep.subr.msk.bf16.mxu0 %vm644_vm0, %v1979_v2 }
 0x175   : > { %1939 = vmatpush1.bf16.msra.mxu1 %v6638_v54  ;;  %6653 = vmatmul.mubr.msk.bf16.vlgmr.msra.gmra.mxu0 %vm1772_vm7, %v546_v13 }
 0x176   : > { %6658 = vmatprep.subr.msk.bf16.mxu1 %vm644_vm0, %v1981_v12  ;;  %2028 = vmatpush1.bf16.msra.mxu0 %v1990_v23 }
 0x177   : > { %6660 = vmatprep.subr.msk.bf16.mxu0 %vm644_vm0, %v1983_v39  ;;  %2045 = vmatprep.mubr.bf16.mxu0 %v9413_v14 }
 0x178   : > { %6655 = vmatmul.mubr.msk.bf16.vlgmr.msra.gmra.mxu1 %vm1772_vm7, %v546_v13  ;;  %v9444_v13 = vld [vmem:[#allocation29_spill] sm:$0xff] }
 0x179   : > { %2069 = vmatpush1.bf16.msra.mxu1 %v1996_v27  ;;  %2086 = vmatprep.mubr.bf16.mxu1 %v9413_v14  ;;  %v9445_v15 = vpack.c.bf16 %v9443_v5, %v9444_v13 }
 0x17a   : > { %6662 = vmatprep.subr.msk.bf16.mxu1 %vm644_vm0, %v1985_v19 }
 0x17b   : > { %v2394_v51 = vsel %vm644_vm0, %v9445_v15, 0 }
 0x17d   : > { %6657 = vmatmul.mubr.msk.bf16.vlgmr.msra.gmra.mxu0 %vm640_vm1, %v545_v16 }
 0x17e   : > { %2110 = vmatpush1.bf16.msra.mxu0 %v2002_v17  ;;  %2127 = vmatprep.mubr.bf16.mxu0 %v9413_v14 }
 0x17f   : > { %6664 = vmatprep.subr.msk.bf16.mxu0 %vm644_vm0, %v2178_v20 }
 0x180   : > { %6659 = vmatmul.mubr.msk.bf16.vlgmr.msra.gmra.mxu1 %vm640_vm1, %v545_v16 }
 0x181   : > { %2151 = vmatpush1.bf16.msra.mxu1 %v2008_v34  ;;  %2168 = vmatprep.mubr.bf16.mxu1 %v9413_v14 }
 0x182   : > { %6666 = vmatprep.subr.msk.bf16.mxu1 %vm644_vm0, %v2180_v22 }
 0x185   : > { %6661 = vmatmul.mubr.msk.bf16.vlgmr.msra.gmra.mxu0 %vm640_vm1, %v545_v16 }
 0x186   : > { %2224 = vmatpush1.bf16.msra.mxu0 %v2186_v43  ;;  %2241 = vmatprep.mubr.bf16.mxu0 %v9413_v14 }
 0x187   : > { %6668 = vmatprep.subr.msk.bf16.mxu0 %vm644_vm0, %v2182_v25 }
 0x188   : > { %6663 = vmatmul.mubr.msk.bf16.vlgmr.msra.gmra.mxu1 %vm640_vm1, %v545_v16 }
 0x189   : > { %2265 = vmatpush1.bf16.msra.mxu1 %v2192_v61  ;;  %2282 = vmatprep.mubr.bf16.mxu1 %v9413_v14 }
 0x18a   : > { %6670 = vmatprep.subr.msk.bf16.mxu1 %vm644_vm0, %v2184_v31 }
 0x18d   : > { %6665 = vmatmul.mubr.msk.bf16.vlgmr.msra.gmra.mxu0 %vm640_vm1, %v545_v16 }
 0x18e   : > { %2306 = vmatpush1.bf16.msra.mxu0 %v2198_v1  ;;  %2323 = vmatprep.mubr.bf16.mxu0 %v9413_v14 }
 0x18f   : > { %6672 = vmatprep.subr.msk.bf16.mxu0 %vm644_vm0, %v2374_v48 }
 0x190   : > { %6667 = vmatmul.mubr.msk.bf16.vlgmr.msra.gmra.mxu1 %vm640_vm1, %v545_v16 }
 0x191   : > { %2347 = vmatpush1.bf16.msra.mxu1 %v2204_v10  ;;  %2364 = vmatprep.mubr.bf16.mxu1 %v9413_v14 }
 0x192   : > { %6674 = vmatprep.subr.msk.bf16.mxu1 %vm644_vm0, %v2376_v58 }
 0x195   : > { %6669 = vmatmul.mubr.msk.bf16.vlgmr.msra.gmra.mxu0 %vm640_vm1, %v545_v16 }
 0x196   : > { %2420 = vmatpush1.bf16.msra.mxu0 %v2382_v55  ;;  %2437 = vmatprep.mubr.bf16.mxu0 %v9413_v14 }
 0x197   : > { %6676 = vmatprep.subr.msk.bf16.mxu0 %vm644_vm0, %v2378_v62 }
 0x198   : > { %6671 = vmatmul.mubr.msk.bf16.vlgmr.msra.gmra.mxu1 %vm640_vm1, %v545_v16 }
 0x199   : > { %2461 = vmatpush1.bf16.msra.mxu1 %v2388_v41  ;;  %2478 = vmatprep.mubr.bf16.mxu1 %v9413_v14 }
 0x19a   : > { %6678 = vmatprep.subr.msk.bf16.mxu1 %vm644_vm0, %v2380_v60 }
 0x19d   : > { %6673 = vmatmul.mubr.msk.bf16.vlgmr.msra.gmra.mxu0 %vm640_vm1, %v545_v16 }
 0x19e   : > { %2502 = vmatpush1.bf16.msra.mxu0 %v2394_v51  ;;  %2519 = vmatprep.mubr.bf16.mxu0 %v9413_v14  ;;  %v553_v51 = vld [vmem:[%s9329_s10] sm:$0xff] }
 0x19f   : > { %3851 = vperm.xlu0 %6918, %v553_v51  }
 0x1a0   : > { %6675 = vmatmul.mubr.msk.bf16.vlgmr.msra.gmra.mxu1 %vm640_vm1, %v545_v16 }
 0x1a1   : > { %2543 = vmatpush1.bf16.msra.mxu1 %v2400_v21  ;;  %2560 = vmatprep.mubr.bf16.mxu1 %v9413_v14 }
 0x1a5   : > { %6677 = vmatmul.mubr.msk.bf16.vlgmr.msra.gmra.mxu0 %vm640_vm1, %v545_v16 }
 0x1a6   : > { %2821 = vmatprep.mubr.bf16.mxu0 %v9413_v14 }
 0x1a8   : > { %6679 = vmatmul.mubr.msk.bf16.vlgmr.msra.gmra.mxu1 %vm640_vm1, %v545_v16 }
 0x1a9   : > { %2862 = vmatprep.mubr.bf16.mxu1 %v9413_v14 }
 0x217   : > { %v1582_v7 = vpop.f32.mrf.mxu0 }
 0x219   : > { %v1584_v59 = vpop.f32.mrf.mxu0 }
 0x21b   : > { %v1586_v8 = vpop.f32.mrf.mxu0  ;;  %v1623_v2 = vpop.f32.mrf.mxu1 }
 0x21d   : > { %v1587_v54 = vpop.f32.mrf.mxu0  ;;  %v1625_v12 = vpop.f32.mrf.mxu1 }
 0x21f   : > { %v1627_v39 = vpop.f32.mrf.mxu1 }
 0x221   : > { %v1628_v18 = vpop.f32.mrf.mxu1 }
 0x225   : > { %v1664_v23 = vpop.f32.mrf.mxu0 }
 0x227   : > { %v1666_v19 = vpop.f32.mrf.mxu0 }
 0x228   : > { %v1705_v24 = vpop.f32.mrf.mxu1 }
 0x229   : > { %v1668_v27 = vpop.f32.mrf.mxu0 }
 0x22a   : > { %v1707_v20 = vpop.f32.mrf.mxu1 }
 0x22b   : > { %v1669_v28 = vpop.f32.mrf.mxu0 }
 0x22c   : > { %v1709_v17 = vpop.f32.mrf.mxu1 }
 0x22d   : > { %v1835_v22 = vpop.f32.mrf.mxu0 }
 0x22e   : > { %v1710_v33 = vpop.f32.mrf.mxu1  ;;  %v8027_v16 = vadd.f32 %v1835_v22, %v1582_v7 }
 0x22f   : > { %v1837_v34 = vpop.f32.mrf.mxu0 }
 0x230   : > { %v1876_v25 = vpop.f32.mrf.mxu1  ;;  %v8029_v29 = vadd.f32 %v1837_v34, %v1584_v59 }
 0x231   : > { %v8031_v37 = vadd.f32 %v1876_v25, %v1623_v2  ;;  %v1839_v38 = vpop.f32.mrf.mxu0 }
 0x232   : > { %v1878_v43 = vpop.f32.mrf.mxu1 }
 0x233   : > { %v8033_v26 = vadd.f32 %v1878_v43, %v1625_v12  ;;  %v1840_v31 = vpop.f32.mrf.mxu0 }
 0x234   : > { %v1880_v45 = vpop.f32.mrf.mxu1 }
 0x235   : > { %v1917_v30 = vpop.f32.mrf.mxu0 }
 0x236   : > { %v1881_v32 = vpop.f32.mrf.mxu1  ;;  %v8035_v61 = vadd.f32 %v1917_v30, %v1664_v23 }
 0x237   : > { %v1919_v48 = vpop.f32.mrf.mxu0 }
 0x238   : > { %v1958_v6 = vpop.f32.mrf.mxu1  ;;  %v8037_v52 = vadd.f32 %v1919_v48, %v1666_v19 }
 0x239   : > { %v8039_v0 = vadd.f32 %v1958_v6, %v1705_v24  ;;  %v1921_v1 = vpop.f32.mrf.mxu0 }
 0x23a   : > { %v1960_v63 = vpop.f32.mrf.mxu1 }
 0x23b   : > { %v8041_v58 = vadd.f32 %v1960_v63, %v1707_v20  ;;  %v1922_v56 = vpop.f32.mrf.mxu0 }
 0x23c   : > { %v1962_v35 = vpop.f32.mrf.mxu1 }
 0x23d   : > { %v8043_v49 = vpop.f32.mrf.mxu0 }
 0x23e   : > { %v1963_v10 = vpop.f32.mrf.mxu1  ;;  %v2569_v19 = vmul.f32 %v8043_v49, %v8043_v49 }
 0x23f   : > { %v8045_v40 = vpop.f32.mrf.mxu0 }
 0x240   : > { %v8047_v4 = vpop.f32.mrf.mxu1  ;;  %v2570_v17 = vmul.f32 %v8045_v40, %v8045_v40 }
 0x241   : > { %v2051_v62 = vpop.f32.mrf.mxu0  ;;  %v2571_v25 = vmul.f32 %v8047_v4, %v8047_v4 }
 0x242   : > { %v8049_v44 = vpop.f32.mrf.mxu1 }
 0x243   : > { %v2052_v9 = vpop.f32.mrf.mxu0  ;;  %v2572_v48 = vmul.f32 %v8049_v44, %v8049_v44 }
 0x244   : > { %v2092_v53 = vpop.f32.mrf.mxu1 }
 0x245   : > { %v8051_v55 = vpop.f32.mrf.mxu0 }
 0x246   : > { %v2093_v11 = vpop.f32.mrf.mxu1 }
 0x247   : > { %v8053_v47 = vpop.f32.mrf.mxu0 }
 0x248   : > { %v8055_v60 = vpop.f32.mrf.mxu1 }
 0x249   : > { %v2133_v3 = vpop.f32.mrf.mxu0 }
 0x24a   : > { %v8057_v46 = vpop.f32.mrf.mxu1 }
 0x24b   : > { %v2134_v36 = vpop.f32.mrf.mxu0 }
 0x24c   : > { %v2174_v41 = vpop.f32.mrf.mxu1 }
 0x24d   : > { %v8059_v5 = vpop.f32.mrf.mxu0  ;;  %v2573_v41 = vmul.f32 %v8051_v55, %v8051_v55 }
 0x24e   : > { %v2175_v13 = vpop.f32.mrf.mxu1  ;;  %v2577_v39 = vmul.f32 %v8059_v5, %v8059_v5 }
 0x24f   : > { %v8061_v15 = vpop.f32.mrf.mxu0 }
 0x250   : > { %v8066_v57 = vpop.f32.mrf.mxu1  ;;  %v2578_v24 = vmul.f32 %v8061_v15, %v8061_v15  ;;  %v2585_v22 = vadd.f32 %v2577_v39, %v2569_v19 }
 0x251   : > { %v2247_v50 = vpop.f32.mrf.mxu0  ;;  %v2579_v20 = vmul.f32 %v8066_v57, %v8066_v57 }
 0x252   : > { %v8068_v42 = vpop.f32.mrf.mxu1  ;;  %v2586_v31 = vadd.f32 %v2578_v24, %v2570_v17  ;;  %v2575_v24 = vmul.f32 %v8055_v60, %v8055_v60 }
 0x253   : > { %v2248_v21 = vpop.f32.mrf.mxu0  ;;  %v2580_v38 = vmul.f32 %v8068_v42, %v8068_v42  ;;  %v2587_v6 = vadd.f32 %v2579_v20, %v2571_v25 }
 0x254   : > { %v2288_v7 = vpop.f32.mrf.mxu1 }
 0x255   : > { %v8070_v59 = vpop.f32.mrf.mxu0  ;;  %v2588_v62 = vadd.f32 %v2580_v38, %v2572_v48  ;;  %v2576_v48 = vmul.f32 %v8057_v46, %v8057_v46 }
 0x256   : > { %v2289_v8 = vpop.f32.mrf.mxu1  ;;  %v2581_v9 = vmul.f32 %v8070_v59, %v8070_v59 }
 0x257   : > { %v8072_v2 = vpop.f32.mrf.mxu0 }
 0x258   : > { %v8074_v54 = vpop.f32.mrf.mxu1  ;;  %v2582_v8 = vmul.f32 %v8072_v2, %v8072_v2 }
 0x259   : > { %v2329_v12 = vpop.f32.mrf.mxu0  ;;  %v2583_v7 = vmul.f32 %v8074_v54, %v8074_v54 }
 0x25a   : > { %v8078_v18 = vpop.f32.mrf.mxu1 }
 0x25b   : > { %v2330_v23 = vpop.f32.mrf.mxu0  ;;  %v2584_v20 = vmul.f32 %v8078_v18, %v8078_v18 }
 0x25c   : > { %v2370_v27 = vpop.f32.mrf.mxu1  ;;  %v2589_v23 = vadd.f32 %v2581_v9, %v2573_v41 }
 0x25d   : > { %v8086_v28 = vpop.f32.mrf.mxu0  ;;  %v2574_v27 = vmul.f32 %v8053_v47, %v8053_v47 }
 0x25e   : > { %v2371_v33 = vpop.f32.mrf.mxu1  ;;  %v2593_v34 = vmul.f32 %v8086_v28, %v8086_v28 }
 0x25f   : > { %v8096_v43 = vpop.f32.mrf.mxu0 }
 0x260   : > { %v2601_v45 = vadd.f32 %v2593_v34, %v2585_v22  ;;  %v8098_v30 = vpop.f32.mrf.mxu1  ;;  %v2594_v32 = vmul.f32 %v8096_v43, %v8096_v43 }
 0x261   : > { %v2595_v1 = vmul.f32 %v8098_v30, %v8098_v30  ;;  %v2443_v63 = vpop.f32.mrf.mxu0 }
 0x262   : > { %v2609_v56 = vmax.f32 %v2601_v45, 1e-08  ;;  %v2602_v35 = vadd.f32 %v2594_v32, %v2586_v31  ;;  %v8106_v10 = vpop.f32.mrf.mxu1  ;;  %v2591_v31 = vadd.f32 %v2583_v7, %v2575_v24  ;;  %v2590_v45 = vadd.f32 %v2582_v8, %v2574_v27 }
 0x263   : > { %v2603_v53 = vadd.f32 %v2595_v1, %v2587_v6  ;;  %v2596_v11 = vmul.f32 %v8106_v10, %v8106_v10  ;;  %v2444_v3 = vpop.f32.mrf.mxu0 }
 0x264   : > { %6961 = vrsqrt.f32 %v2609_v56  ;;  %v2484_v36 = vpop.f32.mrf.mxu1  ;;  %v8116_v51 = vmax.f32 %v2602_v35, 1e-08  ;;  %vm2619_vm0 = vcmp.eq.f32.partialorder %v2609_v56, inf  ;;  %v2622_v8 = vand.u32 2147483648, %v2609_v56 }
 0x265   : > { %v8114_v13 = vmax.f32 %v2603_v53, 1e-08  ;;  %v2604_v50 = vadd.f32 %v2596_v11, %v2588_v62  ;;  %v8118_v21 = vpop.f32.mrf.mxu0  ;;  %v2592_v53 = vadd.f32 %v2584_v20, %v2576_v48  ;;  %vm2621_vm1 = vcmp.eq.f32.partialorder %v2609_v56, 0.0 }
 0x266   : > { %v2485_v12 = vpop.f32.mrf.mxu1  ;;  %v2597_v39 = vmul.f32 %v8118_v21, %v8118_v21  ;;  %vm2626_vm10 = vcmp.eq.f32.partialorder %v8116_v51, inf  ;;  %vm2628_vm11 = vcmp.eq.f32.partialorder %v8116_v51, 0.0 }
 0x267   : > { %6963 = vrsqrt.f32 %v8114_v13  ;;  %v8127_v19 = vpop.f32.mrf.mxu0  ;;  %v2612_v22 = vmax.f32 %v2604_v50, 1e-08  ;;  %vm2633_vm8 = vcmp.eq.f32.partialorder %v8114_v13, inf  ;;  %vm2635_vm9 = vcmp.eq.f32.partialorder %v8114_v13, 0.0 }
 0x268   : > { %6965 = vrsqrt.f32 %v8116_v51  ;;  %v8136_v17 = vpop.f32.mrf.mxu1  ;;  %v2605_v33 = vadd.f32 %v2597_v39, %v2589_v23  ;;  %v2598_v25 = vmul.f32 %v8127_v19, %v8127_v19 }
 0x269   : > { %v2599_v34 = vmul.f32 %v8136_v17, %v8136_v17  ;;  %v2525_v38 = vpop.f32.mrf.mxu0  ;;  %6967 = vrsqrt.f32 %v2612_v22  ;;  %vm2640_vm12 = vcmp.eq.f32.partialorder %v2612_v22, inf  ;;  %vm2642_vm13 = vcmp.eq.f32.partialorder %v2612_v22, 0.0 }
 0x26a   : > { %v8142_v32 = vpop.f32.mrf.mxu1  ;;  %v2613_v1 = vmax.f32 %v2605_v33, 1e-08  ;;  %v2606_v35 = vadd.f32 %v2598_v25, %v2590_v45 }
 0x26b   : > { %v2526_v6 = vpop.f32.mrf.mxu0  ;;  %v2607_v63 = vadd.f32 %v2599_v34, %v2591_v31  ;;  %v2600_v62 = vmul.f32 %v8142_v32, %v8142_v32  ;;  %v2636_v34 = vand.u32 2147483648, %v8114_v13 }
 0x26c   : > { %v2566_v9 = vpop.f32.mrf.mxu1  ;;  %6969 = vrsqrt.f32 %v2613_v1  ;;  %v8150_v36 = vmax.f32 %v2606_v35, 1e-08  ;;  %vm2647_vm14 = vcmp.eq.f32.partialorder %v2613_v1, inf  ;;  %vm2649_vm15 = vcmp.eq.f32.partialorder %v2613_v1, 0.0 }
 0x26d   : > { %v8148_v3 = vmax.f32 %v2607_v63, 1e-08  ;;  %v2608_v41 = vadd.f32 %v2600_v62, %v2592_v53  ;;  %v2643_v9 = vand.u32 2147483648, %v2612_v22 }
 0x26e   : > { %v2567_v11 = vpop.f32.mrf.mxu1  ;;  %vm2654_vm4 = vcmp.eq.f32.partialorder %v8150_v36, inf  ;;  %vm2656_vm5 = vcmp.eq.f32.partialorder %v8150_v36, 0.0 }
 0x26f   : > { %6971 = vrsqrt.f32 %v8148_v3  ;;  %v8154_v12 = vmax.f32 %v2608_v41, 1e-08  ;;  %vm2661_vm2 = vcmp.eq.f32.partialorder %v8148_v3, inf  ;;  %vm2663_vm3 = vcmp.eq.f32.partialorder %v8148_v3, 0.0 }
 0x270   : > { %6973 = vrsqrt.f32 %v8150_v36 }
 0x271   : > { %v6962_v50 = vpop.eup %6961  ;;  %6975 = vrsqrt.f32 %v8154_v12  ;;  %vm2668_vm7 = vcmp.eq.f32.partialorder %v8154_v12, inf }
 0x272   : > { %v2618_v7 = vmul.f32 %v6962_v50, %v2609_v56 }
 0x274   : > { %v6964_v39 = vpop.eup %6963  ;;  %v2620_v23 = vsel %vm2619_vm0, %v2609_v56, %v2618_v7  ;;  %v2629_v56 = vand.u32 2147483648, %v8116_v51  ;;  %v2650_v7 = vand.u32 2147483648, %v2613_v1  ;;  %vm2670_vm0 = vcmp.eq.f32.partialorder %v8154_v12, 0.0 }
 0x275   : > { %v6966_v24 = vpop.eup %6965  ;;  %v2623_v27 = vsel %vm2621_vm1, %v2622_v8, %v2620_v23  ;;  %v2632_v20 = vmul.f32 %v6964_v39, %v8114_v13  ;;  %vm2761_vm1 = vcmask 31744  }
 0x276   : > { %v6680_v33 = vmul.f32 -1.442695, %v2623_v27  ;;  %v2625_v25 = vmul.f32 %v6966_v24, %v8116_v51  ;;  %v6968_v31 = vpop.eup %6967 }
 0x277   : > { %v2634_v38 = vsel %vm2633_vm8, %v8114_v13, %v2632_v20  ;;  %v2639_v35 = vmul.f32 %v6968_v31, %v2612_v22  ;;  %v2664_v20 = vand.u32 2147483648, %v8148_v3 }
 0x278   : > { %6977 = vpow2.f32 %v6680_v33  ;;  %v2637_v45 = vsel %vm2635_vm9, %v2636_v34, %v2634_v38  ;;  %v2627_v48 = vsel %vm2626_vm10, %v8116_v51, %v2625_v25 }
 0x279   : > { %v6682_v6 = vmul.f32 -1.442695, %v2637_v45  ;;  %v2630_v63 = vsel %vm2628_vm11, %v2629_v56, %v2627_v48  ;;  %v6970_v53 = vpop.eup %6969  ;;  %v2641_v13 = vsel %vm2640_vm12, %v2612_v22, %v2639_v35 }
 0x27a   : > { %v6681_v62 = vmul.f32 -1.442695, %v2630_v63  ;;  %v2644_v11 = vsel %vm2642_vm13, %v2643_v9, %v2641_v13  ;;  %v2646_v41 = vmul.f32 %v6970_v53, %v2613_v1 }
 0x27b   : > { %6979 = vpow2.f32 %v6682_v6  ;;  %v6683_v50 = vmul.f32 -1.442695, %v2644_v11 }
 0x27c   : > { %6981 = vpow2.f32 %v6681_v62  ;;  %v6972_v8 = vpop.eup %6971  ;;  %v2648_v39 = vsel %vm2647_vm14, %v2613_v1, %v2646_v41  ;;  %v2657_v1 = vand.u32 2147483648, %v8150_v36 }
 0x27d   : > { %v6974_v51 = vpop.eup %6973  ;;  %6983 = vpow2.f32 %v6683_v50  ;;  %v2651_v23 = vsel %vm2649_vm15, %v2650_v7, %v2648_v39  ;;  %v2660_v24 = vmul.f32 %v6972_v8, %v8148_v3 }
 0x27e   : > { %v6684_v27 = vmul.f32 -1.442695, %v2651_v23  ;;  %v2653_v22 = vmul.f32 %v6974_v51, %v8150_v36  ;;  %v6976_v34 = vpop.eup %6975 }
 0x27f   : > { %v2662_v33 = vsel %vm2661_vm2, %v8148_v3, %v2660_v24  ;;  %v2667_v45 = vmul.f32 %v6976_v34, %v8154_v12  ;;  %v2671_v3 = vand.u32 2147483648, %v8154_v12 }
 0x280   : > { %6985 = vpow2.f32 %v6684_v27  ;;  %v2665_v25 = vsel %vm2663_vm3, %v2664_v20, %v2662_v33  ;;  %v2655_v38 = vsel %vm2654_vm4, %v8150_v36, %v2653_v22 }
 0x281   : > { %v6686_v56 = vmul.f32 -1.442695, %v2665_v25  ;;  %v2658_v31 = vsel %vm2656_vm5, %v2657_v1, %v2655_v38  ;;  %v2669_v63 = vsel %vm2668_vm7, %v8154_v12, %v2667_v45 }
 0x282   : > { %v6685_v48 = vmul.f32 -1.442695, %v2658_v31  ;;  %v2672_v62 = vsel %vm2670_vm0, %v2671_v3, %v2669_v63 }
 0x283   : > { %6987 = vpow2.f32 %v6686_v56  ;;  %v6687_v9 = vmul.f32 -1.442695, %v2672_v62 }
 0x284   : > { %6989 = vpow2.f32 %v6685_v48 }
 0x285   : > { %v6978_v6 = vpop.eup %6977 }
 0x286   : > { %v2697_v35 = vadd.f32 1.0, %v6978_v6 }
 0x288   : > { %v6980_v36 = vpop.eup %6979  ;;  %6991 = vrcp.f32 %v2697_v35 }
 0x289   : > { %v6982_v53 = vpop.eup %6981  ;;  %v2699_v13 = vadd.f32 1.0, %v6980_v36  ;;  %6993 = vpow2.f32 %v6687_v9 }
 0x28a   : > { %v2698_v11 = vadd.f32 1.0, %v6982_v53  ;;  %v6984_v41 = vpop.eup %6983 }
 0x28b   : > { %6995 = vrcp.f32 %v2699_v13  ;;  %v2700_v50 = vadd.f32 1.0, %v6984_v41 }
 0x28c   : > { %6997 = vrcp.f32 %v2698_v11 }
 0x28d   : > { %v6986_v7 = vpop.eup %6985  ;;  %6999 = vrcp.f32 %v2700_v50 }
 0x28e   : > { %v2701_v8 = vadd.f32 1.0, %v6986_v7 }
 0x290   : > { %v6988_v39 = vpop.eup %6987  ;;  %7001 = vrcp.f32 %v2701_v8 }
 0x291   : > { %v6990_v12 = vpop.eup %6989  ;;  %v2703_v51 = vadd.f32 1.0, %v6988_v39 }
 0x292   : > { %v2702_v23 = vadd.f32 1.0, %v6990_v12 }
 0x293   : > { %7003 = vrcp.f32 %v2703_v51 }
 0x294   : > { %7005 = vrcp.f32 %v2702_v23 }
 0x295   : > { %v8182_v24 = vpop.eup %6991 }
 0x296   : > { %v6994_v27 = vpop.eup %6993  ;;  %v2721_v20 = vmul.f32 %v8182_v24, %v8043_v49  ;;  %v2729_v53 = vmul.f32 %v8182_v24, %v8059_v5 }
 0x297   : > { %v2704_v22 = vadd.f32 1.0, %v6994_v27 }
 0x298   : > { %v8186_v33 = vpop.eup %6995  ;;  %v2753_v38 = vpack.c.bf16 %v2721_v20, %v2721_v20  ;;  %v2953_v7 = vpack.c.bf16 %v2729_v53, %v2729_v53 }
 0x299   : > { %v8188_v1 = vpop.eup %6997  ;;  %7007 = vrcp.f32 %v2704_v22  ;;  %v2723_v34 = vmul.f32 %v8186_v33, %v8047_v4  ;;  %v2731_v50 = vmul.f32 %v8186_v33, %v8066_v57 }
 0x29a   : > { %v2722_v25 = vmul.f32 %v8188_v1, %v8045_v40  ;;  %v8194_v56 = vpop.eup %6999  ;;  %v2766_v48 = vsel %vm1776_vm6, %v2753_v38, 0  ;;  %v8205_v40 = vld [vmem:[%s9325_s6] sm:$0x3]  ;;  %v2962_v51 = vsel %vm1776_vm6, %v2953_v7, 0  ;;  %v2738_v22 = vmul.f32 %v8188_v1, %v8096_v43 }
 0x29b   : > { %v2724_v45 = vmul.f32 %v8194_v56, %v8049_v44  ;;  %v2755_v49 = vpack.c.bf16 %v2723_v34, %v2723_v34  ;;  %v2955_v12 = vpack.c.bf16 %v2731_v50, %v2731_v50  ;;  %v2740_v34 = vmul.f32 %v8194_v56, %v8106_v10 }
 0x29c   : > { %v2754_v31 = vpack.c.bf16 %v2722_v25, %v2722_v25  ;;  %v2737_v38 = vmul.f32 %v8182_v24, %v8086_v28  ;;  %v2739_v43 = vmul.f32 %v8186_v33, %v8098_v30 }
 0x29d   : > { %v8200_v3 = vpop.eup %7001  ;;  %v2756_v6 = vpack.c.bf16 %v2724_v45, %v2724_v45  ;;  %v2772_v44 = vsel %vm1776_vm6, %v2755_v49, 0 }
 0x29e   : > { %6688 = vmatprep.subr.msk.bf16.mxu0 %vm1776_vm6, %v2754_v31  ;;  %v2725_v4 = vmul.f32 %v8200_v3, %v8051_v55  ;;  %v2730_v55 = vmul.f32 %v8188_v1, %v8061_v15  ;;  %v3150_v31 = vpack.c.bf16 %v2738_v22, %v2738_v22  ;;  %v3152_v1 = vpack.c.bf16 %v2740_v34, %v2740_v34 }
 0x29f   : > { %2804 = vmatpush1.bf16.msra.mxu0 %v2766_v48  ;;  %6690 = vmatprep.subr.msk.bf16.mxu1 %vm1776_vm6, %v2756_v6  ;;  %v3149_v10 = vpack.c.bf16 %v2737_v38, %v2737_v38  ;;  %v2741_v30 = vmul.f32 %v8200_v3, %v8118_v21 }
 0x2a0   : > { %v8211_v63 = vpop.eup %7003  ;;  %2845 = vmatpush1.bf16.msra.mxu1 %v2772_v44  ;;  %v2757_v36 = vpack.c.bf16 %v2725_v4, %v2725_v4  ;;  %v2954_v15 = vpack.c.bf16 %v2730_v55, %v2730_v55 }
 0x2a1   : > { %v7006_v35 = vpop.eup %7005  ;;  %v2727_v62 = vmul.f32 %v8211_v63, %v8055_v60  ;;  %v2735_v20 = vmul.f32 %v8211_v63, %v8074_v54  ;;  %v3158_v49 = vsel %vm1776_vm6, %v3149_v10, 0 }
 0x2a2   : > { %6689 = vmatmul.mubr.msk.bf16.vlgmr.msra.gmra.mxu0 %vm2761_vm1, %v8205_v40  ;;  %v2726_v9 = vmul.f32 %v7006_v35, %v8053_v47  ;;  %v2732_v47 = vmul.f32 %v8194_v56, %v8068_v42  ;;  %v2778_v5 = vsel %vm1776_vm6, %v2757_v36, 0  ;;  %v2734_v8 = vmul.f32 %v7006_v35, %v8072_v2 }
 0x2a3   : > { %2903 = vmatprep.mubr.bf16.mxu0 %v9413_v14  ;;  %6691 = vmatmul.mubr.msk.bf16.vlgmr.msra.gmra.mxu1 %vm2761_vm1, %v8205_v40  ;;  %v2759_v41 = vpack.c.bf16 %v2727_v62, %v2727_v62  ;;  %v2733_v2 = vmul.f32 %v8200_v3, %v8070_v59  ;;  %v2959_v25 = vpack.c.bf16 %v2735_v20, %v2735_v20 }
 0x2a4   : > { %v2758_v11 = vpack.c.bf16 %v2726_v9, %v2726_v9  ;;  %2944 = vmatprep.mubr.bf16.mxu1 %v9413_v14  ;;  %v2956_v42 = vpack.c.bf16 %v2732_v47, %v2732_v47  ;;  %v2958_v23 = vpack.c.bf16 %v2734_v8, %v2734_v8  ;;  %v2742_v24 = vmul.f32 %v7006_v35, %v8127_v19 }
 0x2a5   : > { %v2957_v59 = vpack.c.bf16 %v2733_v2, %v2733_v2  ;;  %v2980_v28 = vsel %vm1776_vm6, %v2959_v25, 0  ;;  %v3151_v56 = vpack.c.bf16 %v2739_v43, %v2739_v43  ;;  %v2743_v19 = vmul.f32 %v8211_v63, %v8136_v17 }
 0x2a6   : > { %v7008_v13 = vpop.eup %7007  ;;  %6692 = vmatprep.subr.msk.bf16.mxu0 %vm1776_vm6, %v2758_v11  ;;  %v3154_v33 = vpack.c.bf16 %v2742_v24, %v2742_v24 }
 0x2a7   : > { %v2728_v60 = vmul.f32 %v7008_v13, %v8057_v46  ;;  %2886 = vmatpush1.bf16.msra.mxu0 %v2778_v5  ;;  %v2784_v46 = vsel %vm1776_vm6, %v2759_v41, 0  ;;  %v2736_v57 = vmul.f32 %v7008_v13, %v8078_v18  ;;  %v2968_v18 = vsel %vm1776_vm6, %v2955_v12, 0 }
 0x2a8   : > { %6696 = vmatprep.subr.msk.bf16.mxu0 %vm1776_vm6, %v2954_v15  ;;  %v2974_v54 = vsel %vm1776_vm6, %v2957_v59, 0  ;;  %v2744_v45 = vmul.f32 %v7008_v13, %v8142_v32  ;;  %v3164_v21 = vsel %vm1776_vm6, %v3151_v56, 0  ;;  %v3153_v32 = vpack.c.bf16 %v2741_v30, %v2741_v30 }
 0x2a9   : > { %v2760_v39 = vpack.c.bf16 %v2728_v60, %v2728_v60  ;;  %v2960_v27 = vpack.c.bf16 %v2736_v57, %v2736_v57  ;;  %v3155_v3 = vpack.c.bf16 %v2743_v19, %v2743_v19 }
 0x2aa   : > { %6693 = vmatmul.mubr.msk.bf16.vlgmr.msra.gmra.mxu0 %vm2761_vm1, %v8205_v40  ;;  %v3156_v48 = vpack.c.bf16 %v2744_v45, %v2744_v45  ;;  %v3170_v6 = vsel %vm1776_vm6, %v3153_v32, 0 }
 0x2ab   : > { %6694 = vmatprep.subr.msk.bf16.mxu1 %vm1776_vm6, %v2760_v39  ;;  %3000 = vmatpush1.bf16.msra.mxu0 %v2962_v51  ;;  %v3176_v17 = vsel %vm1776_vm6, %v3155_v3, 0 }
 0x2ac   : > { %2927 = vmatpush1.bf16.msra.mxu1 %v2784_v46  ;;  %6700 = vmatprep.subr.msk.bf16.mxu0 %vm1776_vm6, %v2958_v23 }
 0x2ad   : > { %6698 = vmatprep.subr.msk.bf16.mxu1 %vm1776_vm6, %v2956_v42  ;;  %3017 = vmatprep.mubr.bf16.mxu0 %v9413_v14 }
 0x2af   : > { %6695 = vmatmul.mubr.msk.bf16.vlgmr.msra.gmra.mxu1 %vm2761_vm1, %v8205_v40 }
 0x2b0   : > { %3041 = vmatpush1.bf16.msra.mxu1 %v2968_v18  ;;  %3058 = vmatprep.mubr.bf16.mxu1 %v9413_v14 }
 0x2b1   : > { %6702 = vmatprep.subr.msk.bf16.mxu1 %vm1776_vm6, %v2960_v27 }
 0x2b2   : > { %6697 = vmatmul.mubr.msk.bf16.vlgmr.msra.gmra.mxu0 %vm2761_vm1, %v8205_v40 }
 0x2b3   : > { %3082 = vmatpush1.bf16.msra.mxu0 %v2974_v54  ;;  %3099 = vmatprep.mubr.bf16.mxu0 %v9413_v14 }
 0x2b4   : > { %6704 = vmatprep.subr.msk.bf16.mxu0 %vm1776_vm6, %v3150_v31 }
 0x2b7   : > { %6699 = vmatmul.mubr.msk.bf16.vlgmr.msra.gmra.mxu1 %vm2761_vm1, %v8205_v40 }
 0x2b8   : > { %3123 = vmatpush1.bf16.msra.mxu1 %v2980_v28  ;;  %3140 = vmatprep.mubr.bf16.mxu1 %v9413_v14 }
 0x2b9   : > { %6706 = vmatprep.subr.msk.bf16.mxu1 %vm1776_vm6, %v3152_v1 }
 0x2ba   : > { %6701 = vmatmul.mubr.msk.bf16.vlgmr.msra.gmra.mxu0 %vm2761_vm1, %v8205_v40 }
 0x2bb   : > { %3196 = vmatpush1.bf16.msra.mxu0 %v3158_v49  ;;  %3213 = vmatprep.mubr.bf16.mxu0 %v9413_v14 }
 0x2bc   : > { %6708 = vmatprep.subr.msk.bf16.mxu0 %vm1776_vm6, %v3154_v33 }
 0x2bf   : > { %6703 = vmatmul.mubr.msk.bf16.vlgmr.msra.gmra.mxu1 %vm2761_vm1, %v8205_v40 }
 0x2c0   : > { %3237 = vmatpush1.bf16.msra.mxu1 %v3164_v21  ;;  %3254 = vmatprep.mubr.bf16.mxu1 %v9413_v14 }
 0x2c1   : > { %6710 = vmatprep.subr.msk.bf16.mxu1 %vm1776_vm6, %v3156_v48 }
 0x2c2   : > { %6705 = vmatmul.mubr.msk.bf16.vlgmr.msra.gmra.mxu0 %vm2761_vm1, %v8205_v40 }
 0x2c3   : > { %3278 = vmatpush1.bf16.msra.mxu0 %v3170_v6  ;;  %3295 = vmatprep.mubr.bf16.mxu0 %v9413_v14 }
 0x2c7   : > { %6707 = vmatmul.mubr.msk.bf16.vlgmr.msra.gmra.mxu1 %vm2761_vm1, %v8205_v40 }
 0x2c8   : > { %3319 = vmatpush1.bf16.msra.mxu1 %v3176_v17  ;;  %3336 = vmatprep.mubr.bf16.mxu1 %v9413_v14 }
 0x2ca   : > { %6709 = vmatmul.mubr.msk.bf16.vlgmr.msra.gmra.mxu0 %vm2761_vm1, %v8205_v40 }
 0x2cb   : > { %3524 = vmatprep.mubr.bf16.mxu0 %v9413_v14 }
 0x2cf   : > { %6711 = vmatmul.mubr.msk.bf16.vlgmr.msra.gmra.mxu1 %vm2761_vm1, %v8205_v40 }
 0x2d0   : > { %3565 = vmatprep.mubr.bf16.mxu1 %v9413_v14 }
 0x362   : > { %v8301_v4 = vpop.f32.mrf.mxu0 }
 0x363   : > { %v8305_v63 = vpop.f32.mrf.mxu1  ;;  %v3345_v22 = vmul.f32 %v8301_v4, %v8301_v4 }
 0x364   : > { %v8303_v44 = vpop.f32.mrf.mxu0  ;;  %v3347_v28 = vmul.f32 %v8305_v63, %v8305_v63 }
 0x365   : > { %v8307_v62 = vpop.f32.mrf.mxu1  ;;  %v3346_v31 = vmul.f32 %v8303_v44, %v8303_v44 }
 0x366   : > { %v2827_v35 = vpop.f32.mrf.mxu0  ;;  %v3348_v49 = vmul.f32 %v8307_v62, %v8307_v62 }
 0x367   : > { %v2868_v36 = vpop.f32.mrf.mxu1 }
 0x368   : > { %v2828_v9 = vpop.f32.mrf.mxu0 }
 0x369   : > { %v2869_v55 = vpop.f32.mrf.mxu1 }
 0x36a   : > { %v8309_v53 = vpop.f32.mrf.mxu0 }
 0x36c   : > { %v8311_v13 = vpop.f32.mrf.mxu0 }
 0x36e   : > { %v2909_v40 = vpop.f32.mrf.mxu0 }
 0x36f   : > { %v8313_v11 = vpop.f32.mrf.mxu1  ;;  %v3349_v40 = vmul.f32 %v8309_v53, %v8309_v53 }
 0x370   : > { %v2910_v41 = vpop.f32.mrf.mxu0 }
 0x371   : > { %v8315_v60 = vpop.f32.mrf.mxu1 }
 0x372   : > { %v8317_v50 = vpop.f32.mrf.mxu0 }
 0x373   : > { %v2950_v47 = vpop.f32.mrf.mxu1  ;;  %v3353_v18 = vmul.f32 %v8317_v50, %v8317_v50 }
 0x374   : > { %v8319_v15 = vpop.f32.mrf.mxu0 }
 0x375   : > { %v2951_v5 = vpop.f32.mrf.mxu1  ;;  %v3354_v59 = vmul.f32 %v8319_v15, %v8319_v15  ;;  %v3361_v54 = vadd.f32 %v3353_v18, %v3345_v22 }
 0x376   : > { %v3023_v8 = vpop.f32.mrf.mxu0 }
 0x377   : > { %v8321_v7 = vpop.f32.mrf.mxu1  ;;  %v3362_v56 = vadd.f32 %v3354_v59, %v3346_v31  ;;  %v8387_v59 = vpop.permute.xlu0 %1967 }
 0x378   : > { %v3024_v46 = vpop.f32.mrf.mxu0  ;;  %v3355_v25 = vmul.f32 %v8321_v7, %v8321_v7 }
 0x379   : > { %v8323_v39 = vpop.f32.mrf.mxu1 }
 0x37a   : > { %v8325_v12 = vpop.f32.mrf.mxu0  ;;  %v3356_v10 = vmul.f32 %v8323_v39, %v8323_v39  ;;  %v3363_v19 = vadd.f32 %v3355_v25, %v3347_v28 }
 0x37b   : > { %v3064_v42 = vpop.f32.mrf.mxu1  ;;  %v3357_v32 = vmul.f32 %v8325_v12, %v8325_v12 }
 0x37c   : > { %v8327_v51 = vpop.f32.mrf.mxu0  ;;  %v3364_v35 = vadd.f32 %v3356_v10, %v3348_v49 }
 0x37d   : > { %v3065_v57 = vpop.f32.mrf.mxu1  ;;  %v3358_v41 = vmul.f32 %v8327_v51, %v8327_v51  ;;  %v3365_v18 = vadd.f32 %v3357_v32, %v3349_v40  ;;  %v1970_v32 = vadd.f32 %v8387_v59, %v8027_v16 }
 0x37e   : > { %v3105_v2 = vpop.f32.mrf.mxu0 }
 0x37f   : > { %v8329_v23 = vpop.f32.mrf.mxu1  ;;  %v3350_v2 = vmul.f32 %v8311_v13, %v8311_v13 }
 0x380   : > { %v3106_v20 = vpop.f32.mrf.mxu0  ;;  %v3359_v8 = vmul.f32 %v8329_v23, %v8329_v23 }
 0x381   : > { %v8333_v27 = vpop.f32.mrf.mxu1 }
 0x382   : > { %v8341_v38 = vpop.f32.mrf.mxu0  ;;  %v3360_v25 = vmul.f32 %v8333_v27, %v8333_v27 }
 0x383   : > { %v3146_v34 = vpop.f32.mrf.mxu1  ;;  %v3369_v1 = vmul.f32 %v8341_v38, %v8341_v38 }
 0x384   : > { %v8351_v24 = vpop.f32.mrf.mxu0  ;;  %v3351_v34 = vmul.f32 %v8313_v11, %v8313_v11 }
 0x385   : > { %v3147_v43 = vpop.f32.mrf.mxu1  ;;  %v3377_v45 = vadd.f32 %v3369_v1, %v3361_v54  ;;  %v3370_v33 = vmul.f32 %v8351_v24, %v8351_v24 }
 0x386   : > { %v3219_v21 = vpop.f32.mrf.mxu0  ;;  %v3366_v43 = vadd.f32 %v3358_v41, %v3350_v2 }
 0x387   : > { %v8353_v30 = vpop.f32.mrf.mxu1  ;;  %v8363_v3 = vmax.f32 %v3377_v45, 1e-08  ;;  %v3378_v6 = vadd.f32 %v3370_v33, %v3362_v56  ;;  %v3352_v56 = vmul.f32 %v8315_v60, %v8315_v60  ;;  %v3367_v45 = vadd.f32 %v3359_v8, %v3351_v34 }
 0x388   : > { %v3371_v48 = vmul.f32 %v8353_v30, %v8353_v30  ;;  %v3220_v55 = vpop.f32.mrf.mxu0 }
 0x389   : > { %v8365_v17 = vpop.f32.mrf.mxu1  ;;  %7009 = vrsqrt.f32 %v8363_v3  ;;  %v8374_v47 = vmax.f32 %v3378_v6, 1e-08  ;;  %v1971_v6 = vadd.f32 %v8387_v59, %v8029_v29  ;;  %vm3395_vm8 = vcmp.eq.f32.partialorder %v8363_v3, inf }
 0x38a   : > { %v3379_v9 = vadd.f32 %v3371_v48, %v3363_v19  ;;  %v3372_v36 = vmul.f32 %v8365_v17, %v8365_v17  ;;  %v8380_v57 = vpop.f32.mrf.mxu0  ;;  %vm3397_vm10 = vcmp.eq.f32.partialorder %v8363_v3, 0.0 }
 0x38b   : > { %v3260_v5 = vpop.f32.mrf.mxu1  ;;  %7011 = vrsqrt.f32 %v8374_v47  ;;  %v3373_v22 = vmul.f32 %v8380_v57, %v8380_v57  ;;  %v2746_v2 = vmax.f32 %v1971_v6, 0.0  ;;  %vm3402_vm9 = vcmp.eq.f32.partialorder %v8374_v47, inf }
 0x38c   : > { %v8378_v46 = vmax.f32 %v3379_v9, 1e-08  ;;  %v3380_v42 = vadd.f32 %v3372_v36, %v3364_v35  ;;  %v8396_v54 = vpop.f32.mrf.mxu0  ;;  %v3368_v35 = vadd.f32 %v3360_v25, %v3352_v56  ;;  %vm3404_vm11 = vcmp.eq.f32.partialorder %v8374_v47, 0.0 }
 0x38d   : > { %v3261_v20 = vpop.f32.mrf.mxu1  ;;  %v3381_v1 = vadd.f32 %v3373_v22, %v3365_v18  ;;  %v3374_v10 = vmul.f32 %v8396_v54, %v8396_v54  ;;  %v8428_v18 = vadd.f32 %v8387_v59, %v8031_v37  ;;  %v8433_v22 = vadd.f32 %v8387_v59, %v8033_v26 }
 0x38e   : > { %7013 = vrsqrt.f32 %v8378_v46  ;;  %v8394_v31 = vmax.f32 %v3380_v42, 1e-08  ;;  %v3301_v49 = vpop.f32.mrf.mxu0  ;;  %v2745_v42 = vmax.f32 %v1970_v32, 0.0  ;;  %vm3409_vm12 = vcmp.eq.f32.partialorder %v8378_v46, inf }
 0x38f   : > { %v8398_v28 = vpop.f32.mrf.mxu1  ;;  %v8407_v19 = vmax.f32 %v3381_v1, 1e-08  ;;  %v3382_v48 = vadd.f32 %v3374_v10, %v3366_v43  ;;  %v8438_v1 = vpack.c.bf16 %v2746_v2, %v2746_v2  ;;  %v3398_v10 = vand.u32 2147483648, %v8363_v3 }
 0x390   : > { %7015 = vrsqrt.f32 %v8394_v31  ;;  %v3375_v33 = vmul.f32 %v8398_v28, %v8398_v28  ;;  %v3302_v55 = vpop.f32.mrf.mxu0  ;;  %v8436_v25 = vpack.c.bf16 %v2745_v42, %v2745_v42  ;;  %v2747_v37 = vmax.f32 %v8428_v18, 0.0 }
 0x391   : > { %v8409_v21 = vpop.f32.mrf.mxu1  ;;  %7017 = vrsqrt.f32 %v8407_v19  ;;  %v8418_v40 = vmax.f32 %v3382_v48, 1e-08  ;;  %vm3411_vm13 = vcmp.eq.f32.partialorder %v8378_v46, 0.0  ;;  %vm3416_vm14 = vcmp.eq.f32.partialorder %v8394_v31, inf }
 0x392   : > { %v3383_v9 = vadd.f32 %v3375_v33, %v3367_v45  ;;  %v3376_v36 = vmul.f32 %v8409_v21, %v8409_v21  ;;  %v3405_v33 = vand.u32 2147483648, %v8374_v47  ;;  %vm3418_vm15 = vcmp.eq.f32.partialorder %v8394_v31, 0.0 }
 0x393   : > { %v3342_v41 = vpop.f32.mrf.mxu1  ;;  %7019 = vrsqrt.f32 %v8418_v40  ;;  %vm3423_vm2 = vcmp.eq.f32.partialorder %v8407_v19, inf  ;;  %vm3425_vm3 = vcmp.eq.f32.partialorder %v8407_v19, 0.0  ;;  %vm3430_vm4 = vcmp.eq.f32.partialorder %v8418_v40, inf }
 0x394   : > { %v8420_v5 = vmax.f32 %v3383_v9, 1e-08  ;;  %v3384_v8 = vadd.f32 %v3376_v36, %v3368_v35  ;;  %v3412_v9 = vand.u32 2147483648, %v8378_v46  ;;  %vm3432_vm5 = vcmp.eq.f32.partialorder %v8418_v40, 0.0 }
 0x395   : > { %v3343_v16 = vpop.f32.mrf.mxu1 }
 0x396   : > { %7021 = vrsqrt.f32 %v8420_v5  ;;  %v8424_v29 = vmax.f32 %v3384_v8, 1e-08  ;;  %v7010_v20 = vpop.eup %7009  ;;  %v3419_v8 = vand.u32 2147483648, %v8394_v31  ;;  %vm3437_vm7 = vcmp.eq.f32.partialorder %v8420_v5, inf }
 0x397   : > { %v3394_v34 = vmul.f32 %v7010_v20, %v8363_v3  ;;  %vm3439_vm0 = vcmp.eq.f32.partialorder %v8420_v5, 0.0 }
 0x398   : > { %7023 = vrsqrt.f32 %v8424_v29  ;;  %v7012_v43 = vpop.eup %7011 }
 0x399   : > { %v3401_v45 = vmul.f32 %v7012_v43, %v8374_v47  ;;  %v3396_v26 = vsel %vm3395_vm8, %v8363_v3, %v3394_v34  ;;  %v1975_v34 = vadd.f32 %v8387_v59, %v8037_v52  ;;  %v3426_v52 = vand.u32 2147483648, %v8407_v19 }
 0x39a   : > { %v3399_v49 = vsel %vm3397_vm10, %v3398_v10, %v3396_v26  ;;  %vm3444_vm8 = vcmp.eq.f32.partialorder %v8424_v29, inf  ;;  %vm3660_vm10 = vcmask 1043456  }
 0x39b   : > { %v7014_v56 = vpop.eup %7013  ;;  %v3403_v6 = vsel %vm3402_vm9, %v8374_v47, %v3401_v45  ;;  %v3457_v35 = vpack.c.bf16 %v3399_v49, %v3399_v49  ;;  %v2748_v47 = vmax.f32 %v8433_v22, 0.0  ;;  %v552_v22 = vld [vmem:[%s9328_s9] sm:$0xf]  ;;  %vm3446_vm9 = vcmp.eq.f32.partialorder %v8424_v29, 0.0 }
 0x39c   : > { %v3408_v48 = vmul.f32 %v7014_v56, %v8378_v46  ;;  %v3406_v36 = vsel %vm3404_vm11, %v3405_v33, %v3403_v6  ;;  %vm3656_vm11 = vcmask 64512  }
 0x39d   : > { %v7016_v32 = vpop.eup %7015  ;;  %v3458_v41 = vpack.c.bf16 %v3406_v36, %v3406_v36  ;;  %v3469_v43 = vsel %vm1776_vm6, %v3457_v35, 0 }
 0x39e   : > { %v3415_v55 = vmul.f32 %v7016_v32, %v8394_v31  ;;  %v3410_v3 = vsel %vm3409_vm12, %v8378_v46, %v3408_v48  ;;  %v7018_v42 = vpop.eup %7017  ;;  %v3433_v48 = vand.u32 2147483648, %v8418_v40 }
 0x39f   : > { %v3413_v16 = vsel %vm3411_vm13, %v3412_v9, %v3410_v3  ;;  %6712 = vmatprep.subr.msk.bf16.mxu0 %vm1776_vm6, %v3458_v41  ;;  %v3422_v10 = vmul.f32 %v7018_v42, %v8407_v19  ;;  %v1977_v42 = vadd.f32 %v8387_v59, %v8041_v58  ;;  %v3451_v58 = vpack.c.bf16 %v2747_v37, %v2747_v37 }
 0x3a0   : > { %v3417_v2 = vsel %vm3416_vm14, %v8394_v31, %v3415_v55  ;;  %v3459_v20 = vpack.c.bf16 %v3413_v16, %v3413_v16  ;;  %v7020_v56 = vpop.eup %7019  ;;  %3507 = vmatpush1.bf16.msra.mxu0 %v3469_v43  ;;  %v3447_v16 = vand.u32 2147483648, %v8424_v29 }
 0x3a1   : > { %v3420_v46 = vsel %vm3418_vm15, %v3419_v8, %v3417_v2  ;;  %v3429_v26 = vmul.f32 %v7020_v56, %v8418_v40  ;;  %v3424_v33 = vsel %vm3423_vm2, %v8407_v19, %v3422_v10  ;;  %v3440_v19 = vand.u32 2147483648, %v8420_v5 }
 0x3a2   : > { %v3460_v45 = vpack.c.bf16 %v3420_v46, %v3420_v46  ;;  %v3475_v49 = vsel %vm1776_vm6, %v3459_v20, 0  ;;  %v3427_v32 = vsel %vm3425_vm3, %v3426_v52, %v3424_v33  ;;  %v2750_v46 = vmax.f32 %v1975_v34, 0.0 }
 0x3a3   : > { %v7022_v31 = vpop.eup %7021  ;;  %6713 = vmatmul.mubr.msk.bf16.vlgmr.msra.gmra.mxu0 %vm2761_vm1, %v552_v22  ;;  %v3431_v9 = vsel %vm3430_vm4, %v8418_v40, %v3429_v26  ;;  %v3461_v36 = vpack.c.bf16 %v3427_v32, %v3427_v32  ;;  %v2752_v34 = vmax.f32 %v1977_v42, 0.0  ;;  %v3668_v18 = vsel %vm3660_vm10, %v3451_v58, 0 }
 0x3a4   : > { %6714 = vmatprep.subr.msk.bf16.mxu1 %vm1776_vm6, %v3460_v45  ;;  %v3436_v6 = vmul.f32 %v7022_v31, %v8420_v5  ;;  %v3434_v55 = vsel %vm3432_vm5, %v3433_v48, %v3431_v9  ;;  %3606 = vmatprep.mubr.bf16.mxu0 %v9413_v14  ;;  %v3454_v31 = vpack.c.bf16 %v2750_v46, %v2750_v46 }
 0x3a5   : > { %v7024_v35 = vpop.eup %7023  ;;  %3548 = vmatpush1.bf16.msra.mxu1 %v3475_v49  ;;  %v3462_v8 = vpack.c.bf16 %v3434_v55, %v3434_v55  ;;  %v3481_v10 = vsel %vm1776_vm6, %v3461_v36, 0  ;;  %v3863_v26 = vpack.c.bf16 %v8303_v44, %v8303_v44  ;;  %v3865_v33 = vpack.c.bf16 %v8307_v62, %v8307_v62 }
 0x3a6   : > { %v3443_v3 = vmul.f32 %v7024_v35, %v8424_v29  ;;  %v3438_v41 = vsel %vm3437_vm7, %v8420_v5, %v3436_v6  ;;  %v1974_v5 = vadd.f32 %v8387_v59, %v8035_v61  ;;  %v1976_v61 = vadd.f32 %v8387_v59, %v8039_v0 }
 0x3a7   : > { %v3441_v40 = vsel %vm3439_vm0, %v3440_v19, %v3438_v41  ;;  %6716 = vmatprep.subr.msk.bf16.mxu0 %vm1776_vm6, %v3462_v8  ;;  %v3456_v59 = vpack.c.bf16 %v2752_v34, %v2752_v34  ;;  %v3862_v48 = vpack.c.bf16 %v8301_v4, %v8301_v4  ;;  %v3864_v44 = vpack.c.bf16 %v8305_v63, %v8305_v63 }
 0x3a8   : > { %6715 = vmatmul.mubr.msk.bf16.vlgmr.msra.gmra.mxu1 %vm2761_vm1, %v552_v22  ;;  %v3445_v2 = vsel %vm3444_vm8, %v8424_v29, %v3443_v3  ;;  %v3463_v20 = vpack.c.bf16 %v3441_v40, %v3441_v40  ;;  %3589 = vmatpush1.bf16.msra.mxu0 %v3481_v10  ;;  %v3452_v29 = vpack.c.bf16 %v2748_v47, %v2748_v47  ;;  %v2749_v52 = vmax.f32 %v1974_v5, 0.0 }
 0x3a9   : > { %v3448_v43 = vsel %vm3446_vm9, %v3447_v16, %v3445_v2  ;;  %3647 = vmatprep.mubr.bf16.mxu1 %v9413_v14  ;;  %6720 = vmatprep.subr.msk.bf16.mxu0 %vm3660_vm10, %v8438_v1  ;;  %v3662_v1 = vsel %vm3660_vm10, %v8436_v25, 0  ;;  %v2751_v0 = vmax.f32 %v1976_v61, 0.0  ;;  %v551_v25 = vld [vmem:[%s9327_s8] sm:$0xf]  ;;  %v3867_v32 = vpack.c.bf16 %v8311_v13, %v8311_v13 }
 0x3aa   : > { %v3464_v56 = vpack.c.bf16 %v3448_v43, %v3448_v43  ;;  %v3487_v45 = vsel %vm1776_vm6, %v3463_v20, 0  ;;  %v3453_v37 = vpack.c.bf16 %v2749_v52, %v2749_v52  ;;  %v3874_v62 = vsel %vm1776_vm6, %v3862_v48, 0  ;;  %v8555_v13 = vld [vmem:[%s9326_s7] sm:$0x3] }
 0x3ab   : > { %6717 = vmatmul.mubr.msk.bf16.vlgmr.msra.gmra.mxu0 %vm2761_vm1, %v552_v22  ;;  %v3455_v47 = vpack.c.bf16 %v2751_v0, %v2751_v0  ;;  %v3869_v4 = vpack.c.bf16 %v8315_v60, %v8315_v60  ;;  %v3880_v6 = vsel %vm1776_vm6, %v3864_v44, 0  ;;  %v3866_v63 = vpack.c.bf16 %v8309_v53, %v8309_v53 }
 0x3ac   : > { %6718 = vmatprep.subr.msk.bf16.mxu1 %vm1776_vm6, %v3464_v56  ;;  %3700 = vmatpush1.bf16.msra.mxu0 %v3662_v1  ;;  %v3868_v60 = vpack.c.bf16 %v8313_v11, %v8313_v11  ;;  %v4062_v35 = vpack.c.bf16 %v8319_v15, %v8319_v15  ;;  %v4064_v9 = vpack.c.bf16 %v8323_v39, %v8323_v39 }
 0x3ad   : > { %3630 = vmatpush1.bf16.msra.mxu1 %v3487_v45  ;;  %6724 = vmatprep.subr.msk.bf16.mxu0 %vm3660_vm10, %v3454_v31  ;;  %v3680_v49 = vsel %vm3660_vm10, %v3455_v47, 0  ;;  %v3886_v53 = vsel %vm1776_vm6, %v3866_v63, 0  ;;  %v4061_v15 = vpack.c.bf16 %v8317_v50, %v8317_v50  ;;  %v4063_v36 = vpack.c.bf16 %v8321_v7, %v8321_v7 }
 0x3ae   : > { %6722 = vmatprep.subr.msk.bf16.mxu1 %vm3660_vm10, %v3452_v29  ;;  %3717 = vmatprep.mubr.bf16.mxu0 %v9413_v14  ;;  %v3892_v11 = vsel %vm1776_vm6, %v3868_v60, 0  ;;  %v4066_v19 = vpack.c.bf16 %v8327_v51, %v8327_v51  ;;  %v4068_v50 = vpack.c.bf16 %v8333_v27, %v8333_v27  ;;  %v4065_v51 = vpack.c.bf16 %v8325_v12, %v8325_v12 }
 0x3af   : > { %v4070_v39 = vsel %vm1776_vm6, %v4061_v15, 0  ;;  %v4076_v7 = vsel %vm1776_vm6, %v4063_v36, 0  ;;  %v4067_v55 = vpack.c.bf16 %v8329_v23, %v8329_v23  ;;  %v4258_v3 = vpack.c.bf16 %v8351_v24, %v8351_v24 }
 0x3b0   : > { %6719 = vmatmul.mubr.msk.bf16.vlgmr.msra.gmra.mxu1 %vm2761_vm1, %v552_v22  ;;  %v3674_v22 = vsel %vm3660_vm10, %v3453_v37, 0  ;;  %v4082_v27 = vsel %vm1776_vm6, %v4065_v51, 0  ;;  %v4260_v12 = vpack.c.bf16 %v8365_v17, %v8365_v17  ;;  %v4257_v24 = vpack.c.bf16 %v8341_v38, %v8341_v38 }
 0x3b1   : > { %3741 = vmatpush1.bf16.msra.mxu1 %v3668_v18  ;;  %3758 = vmatprep.mubr.bf16.mxu1 %v9413_v14  ;;  %v4088_v23 = vsel %vm1776_vm6, %v4067_v55, 0  ;;  %v4259_v41 = vpack.c.bf16 %v8353_v30, %v8353_v30  ;;  %v4262_v8 = vpack.c.bf16 %v8396_v54, %v8396_v54  ;;  %v4264_v38 = vpack.c.bf16 %v8409_v21, %v8409_v21 }
 0x3b2   : > { %6726 = vmatprep.subr.msk.bf16.mxu1 %vm3660_vm10, %v3456_v59  ;;  %v4266_v17 = vsel %vm1776_vm6, %v4257_v24, 0  ;;  %v4261_v54 = vpack.c.bf16 %v8380_v57, %v8380_v57  ;;  %v4263_v16 = vpack.c.bf16 %v8398_v28, %v8398_v28 }
 0x3b3   : > { %6721 = vmatmul.mubr.msk.bf16.vlgmr.msra.gmra.mxu0 %vm3656_vm11, %v551_v25  ;;  %v4272_v30 = vsel %vm1776_vm6, %v4259_v41, 0 }
 0x3b4   : > { %3782 = vmatpush1.bf16.msra.mxu0 %v3674_v22  ;;  %3799 = vmatprep.mubr.bf16.mxu0 %v9413_v14  ;;  %v4278_v21 = vsel %vm1776_vm6, %v4261_v54, 0  ;;  %v4284_v57 = vsel %vm1776_vm6, %v4263_v16, 0 }
 0x3b5   : > { %6728 = vmatprep.subr.msk.bf16.mxu0 %vm1776_vm6, %v3863_v26 }
 0x3b8   : > { %6723 = vmatmul.mubr.msk.bf16.vlgmr.msra.gmra.mxu1 %vm3656_vm11, %v551_v25 }
 0x3b9   : > { %3823 = vmatpush1.bf16.msra.mxu1 %v3680_v49  ;;  %3840 = vmatprep.mubr.bf16.mxu1 %v9413_v14 }
 0x3ba   : > { %6730 = vmatprep.subr.msk.bf16.mxu1 %vm1776_vm6, %v3865_v33 }
 0x3bb   : > { %6725 = vmatmul.mubr.msk.bf16.vlgmr.msra.gmra.mxu0 %vm3656_vm11, %v551_v25 }
 0x3bc   : > { %3912 = vmatpush1.bf16.msra.mxu0 %v3874_v62  ;;  %3929 = vmatprep.mubr.bf16.mxu0 %v9413_v14 }
 0x3bd   : > { %6732 = vmatprep.subr.msk.bf16.mxu0 %vm1776_vm6, %v3867_v32 }
 0x3c0   : > { %6727 = vmatmul.mubr.msk.bf16.vlgmr.msra.gmra.mxu1 %vm3656_vm11, %v551_v25 }
 0x3c1   : > { %3953 = vmatpush1.bf16.msra.mxu1 %v3880_v6  ;;  %3970 = vmatprep.mubr.bf16.mxu1 %v9413_v14 }
 0x3c2   : > { %6734 = vmatprep.subr.msk.bf16.mxu1 %vm1776_vm6, %v3869_v4 }
 0x3c3   : > { %6729 = vmatmul.mubr.msk.bf16.vlgmr.msra.gmra.mxu0 %vm2761_vm1, %v8555_v13 }
 0x3c4   : > { %3994 = vmatpush1.bf16.msra.mxu0 %v3886_v53  ;;  %4011 = vmatprep.mubr.bf16.mxu0 %v9413_v14 }
 0x3c5   : > { %6736 = vmatprep.subr.msk.bf16.mxu0 %vm1776_vm6, %v4062_v35 }
 0x3c8   : > { %6731 = vmatmul.mubr.msk.bf16.vlgmr.msra.gmra.mxu1 %vm2761_vm1, %v8555_v13 }
 0x3c9   : > { %4035 = vmatpush1.bf16.msra.mxu1 %v3892_v11  ;;  %4052 = vmatprep.mubr.bf16.mxu1 %v9413_v14 }
 0x3ca   : > { %6738 = vmatprep.subr.msk.bf16.mxu1 %vm1776_vm6, %v4064_v9 }
 0x3cb   : > { %6733 = vmatmul.mubr.msk.bf16.vlgmr.msra.gmra.mxu0 %vm2761_vm1, %v8555_v13 }
 0x3cc   : > { %4108 = vmatpush1.bf16.msra.mxu0 %v4070_v39  ;;  %4125 = vmatprep.mubr.bf16.mxu0 %v9413_v14 }
 0x3cd   : > { %6740 = vmatprep.subr.msk.bf16.mxu0 %vm1776_vm6, %v4066_v19 }
 0x3d0   : > { %6735 = vmatmul.mubr.msk.bf16.vlgmr.msra.gmra.mxu1 %vm2761_vm1, %v8555_v13 }
 0x3d1   : > { %4149 = vmatpush1.bf16.msra.mxu1 %v4076_v7  ;;  %4166 = vmatprep.mubr.bf16.mxu1 %v9413_v14 }
 0x3d2   : > { %6742 = vmatprep.subr.msk.bf16.mxu1 %vm1776_vm6, %v4068_v50 }
 0x3d3   : > { %6737 = vmatmul.mubr.msk.bf16.vlgmr.msra.gmra.mxu0 %vm2761_vm1, %v8555_v13 }
 0x3d4   : > { %4190 = vmatpush1.bf16.msra.mxu0 %v4082_v27  ;;  %4207 = vmatprep.mubr.bf16.mxu0 %v9413_v14 }
 0x3d5   : > { %6744 = vmatprep.subr.msk.bf16.mxu0 %vm1776_vm6, %v4258_v3 }
 0x3d8   : > { %6739 = vmatmul.mubr.msk.bf16.vlgmr.msra.gmra.mxu1 %vm2761_vm1, %v8555_v13 }
 0x3d9   : > { %4231 = vmatpush1.bf16.msra.mxu1 %v4088_v23  ;;  %4248 = vmatprep.mubr.bf16.mxu1 %v9413_v14 }
 0x3da   : > { %6746 = vmatprep.subr.msk.bf16.mxu1 %vm1776_vm6, %v4260_v12 }
 0x3db   : > { %6741 = vmatmul.mubr.msk.bf16.vlgmr.msra.gmra.mxu0 %vm2761_vm1, %v8555_v13 }
 0x3dc   : > { %4304 = vmatpush1.bf16.msra.mxu0 %v4266_v17  ;;  %4321 = vmatprep.mubr.bf16.mxu0 %v9413_v14 }
 0x3dd   : > { %6748 = vmatprep.subr.msk.bf16.mxu0 %vm1776_vm6, %v4262_v8 }
 0x3e0   : > { %6743 = vmatmul.mubr.msk.bf16.vlgmr.msra.gmra.mxu1 %vm2761_vm1, %v8555_v13 }
 0x3e1   : > { %4345 = vmatpush1.bf16.msra.mxu1 %v4272_v30  ;;  %4362 = vmatprep.mubr.bf16.mxu1 %v9413_v14 }
 0x3e2   : > { %6750 = vmatprep.subr.msk.bf16.mxu1 %vm1776_vm6, %v4264_v38 }
 0x3e3   : > { %6745 = vmatmul.mubr.msk.bf16.vlgmr.msra.gmra.mxu0 %vm2761_vm1, %v8555_v13 }
 0x3e4   : > { %4386 = vmatpush1.bf16.msra.mxu0 %v4278_v21  ;;  %4403 = vmatprep.mubr.bf16.mxu0 %v9413_v14 }
 0x3e8   : > { %6747 = vmatmul.mubr.msk.bf16.vlgmr.msra.gmra.mxu1 %vm2761_vm1, %v8555_v13 }
 0x3e9   : > { %4427 = vmatpush1.bf16.msra.mxu1 %v4284_v57  ;;  %4444 = vmatprep.mubr.bf16.mxu1 %v9413_v14 }
 0x3eb   : > { %6749 = vmatmul.mubr.msk.bf16.vlgmr.msra.gmra.mxu0 %vm2761_vm1, %v8555_v13 }
 0x3ec   : > { %4704 = vmatprep.mubr.bf16.mxu0 %v9413_v14 }
 0x3f0   : > { %6751 = vmatmul.mubr.msk.bf16.vlgmr.msra.gmra.mxu1 %vm2761_vm1, %v8555_v13 }
 0x3f1   : > { %4745 = vmatprep.mubr.bf16.mxu1 %v9413_v14 }
 0x463   : > { %v3526_v28 = vpop.f32.mrf.mxu0 }
 0x465   : > { %v3528_v40 = vpop.f32.mrf.mxu0 }
 0x467   : > { %v3530_v2 = vpop.f32.mrf.mxu0 }
 0x468   : > { %v3567_v42 = vpop.f32.mrf.mxu1 }
 0x469   : > { %v3531_v5 = vpop.f32.mrf.mxu0 }
 0x46a   : > { %v3569_v20 = vpop.f32.mrf.mxu1 }
 0x46b   : > { %v3608_v43 = vpop.f32.mrf.mxu0 }
 0x46c   : > { %v3571_v46 = vpop.f32.mrf.mxu1 }
 0x46d   : > { %v3610_v56 = vpop.f32.mrf.mxu0 }
 0x46e   : > { %v3572_v10 = vpop.f32.mrf.mxu1 }
 0x46f   : > { %v3612_v29 = vpop.f32.mrf.mxu0 }
 0x470   : > { %v3649_v58 = vpop.f32.mrf.mxu1 }
 0x471   : > { %v3613_v34 = vpop.f32.mrf.mxu0 }
 0x472   : > { %v3651_v61 = vpop.f32.mrf.mxu1 }
 0x473   : > { %v3719_v52 = vpop.f32.mrf.mxu0 }
 0x474   : > { %v3653_v45 = vpop.f32.mrf.mxu1  ;;  %v8645_v1 = vadd.f32 %v3719_v52, %v3526_v28 }
 0x475   : > { %v3721_v0 = vpop.f32.mrf.mxu0 }
 0x476   : > { %v3654_v31 = vpop.f32.mrf.mxu1  ;;  %v8647_v18 = vadd.f32 %v3721_v0, %v3528_v40 }
 0x477   : > { %v3723_v25 = vpop.f32.mrf.mxu0 }
 0x478   : > { %v3760_v59 = vpop.f32.mrf.mxu1 }
 0x479   : > { %v8649_v37 = vadd.f32 %v3760_v59, %v3567_v42  ;;  %v3724_v22 = vpop.f32.mrf.mxu0 }
 0x47a   : > { %v3762_v47 = vpop.f32.mrf.mxu1 }
 0x47b   : > { %v8651_v26 = vadd.f32 %v3762_v47, %v3569_v20  ;;  %v3801_v49 = vpop.f32.mrf.mxu0 }
 0x47c   : > { %v3764_v33 = vpop.f32.mrf.mxu1  ;;  %v8653_v44 = vadd.f32 %v3801_v49, %v3608_v43 }
 0x47d   : > { %v3803_v32 = vpop.f32.mrf.mxu0 }
 0x47e   : > { %v3765_v48 = vpop.f32.mrf.mxu1  ;;  %v8655_v4 = vadd.f32 %v3803_v32, %v3610_v56 }
 0x47f   : > { %v3805_v63 = vpop.f32.mrf.mxu0 }
 0x480   : > { %v3842_v62 = vpop.f32.mrf.mxu1 }
 0x481   : > { %v8657_v6 = vadd.f32 %v3842_v62, %v3649_v58  ;;  %v3806_v35 = vpop.f32.mrf.mxu0 }
 0x482   : > { %v3844_v13 = vpop.f32.mrf.mxu1 }
 0x483   : > { %v8659_v60 = vadd.f32 %v3844_v13, %v3651_v61  ;;  %v8661_v9 = vpop.f32.mrf.mxu0 }
 0x484   : > { %v3846_v53 = vpop.f32.mrf.mxu1  ;;  %v4453_v10 = vmul.f32 %v8661_v9, %v8661_v9 }
 0x485   : > { %v8663_v15 = vpop.f32.mrf.mxu0 }
 0x486   : > { %v3847_v11 = vpop.f32.mrf.mxu1  ;;  %v4454_v34 = vmul.f32 %v8663_v15, %v8663_v15 }
 0x487   : > { %v3935_v19 = vpop.f32.mrf.mxu0 }
 0x488   : > { %v8665_v36 = vpop.f32.mrf.mxu1 }
 0x489   : > { %v3936_v50 = vpop.f32.mrf.mxu0  ;;  %v4455_v0 = vmul.f32 %v8665_v36, %v8665_v36 }
 0x48a   : > { %v8667_v39 = vpop.f32.mrf.mxu1 }
 0x48b   : > { %v8669_v51 = vpop.f32.mrf.mxu0  ;;  %v4456_v48 = vmul.f32 %v8667_v39, %v8667_v39 }
 0x48c   : > { %v3976_v7 = vpop.f32.mrf.mxu1 }
 0x48d   : > { %v8671_v3 = vpop.f32.mrf.mxu0 }
 0x48e   : > { %v3977_v55 = vpop.f32.mrf.mxu1 }
 0x48f   : > { %v4017_v12 = vpop.f32.mrf.mxu0 }
 0x490   : > { %v8673_v27 = vpop.f32.mrf.mxu1 }
 0x491   : > { %v4018_v24 = vpop.f32.mrf.mxu0 }
 0x492   : > { %v8675_v23 = vpop.f32.mrf.mxu1  ;;  %v4457_v24 = vmul.f32 %v8669_v51, %v8669_v51 }
 0x493   : > { %v8677_v8 = vpop.f32.mrf.mxu0 }
 0x494   : > { %v4058_v41 = vpop.f32.mrf.mxu1  ;;  %v4461_v5 = vmul.f32 %v8677_v8, %v8677_v8 }
 0x495   : > { %v8679_v38 = vpop.f32.mrf.mxu0 }
 0x496   : > { %v4059_v17 = vpop.f32.mrf.mxu1  ;;  %v4462_v56 = vmul.f32 %v8679_v38, %v8679_v38  ;;  %v4469_v45 = vadd.f32 %v4461_v5, %v4453_v10 }
 0x497   : > { %v4131_v54 = vpop.f32.mrf.mxu0 }
 0x498   : > { %v8681_v30 = vpop.f32.mrf.mxu1  ;;  %v4470_v47 = vadd.f32 %v4462_v56, %v4454_v34  ;;  %v4459_v56 = vmul.f32 %v8673_v27, %v8673_v27 }
 0x499   : > { %v4132_v21 = vpop.f32.mrf.mxu0  ;;  %v4463_v29 = vmul.f32 %v8681_v30, %v8681_v30 }
 0x49a   : > { %v8683_v16 = vpop.f32.mrf.mxu1 }
 0x49b   : > { %v8685_v28 = vpop.f32.mrf.mxu0  ;;  %v4464_v59 = vmul.f32 %v8683_v16, %v8683_v16  ;;  %v4471_v32 = vadd.f32 %v4463_v29, %v4455_v0 }
 0x49c   : > { %v4172_v57 = vpop.f32.mrf.mxu1  ;;  %v4465_v19 = vmul.f32 %v8685_v28, %v8685_v28 }
 0x49d   : > { %v8687_v42 = vpop.f32.mrf.mxu0  ;;  %v4472_v11 = vadd.f32 %v4464_v59, %v4456_v48  ;;  %v4460_v48 = vmul.f32 %v8675_v23, %v8675_v23 }
 0x49e   : > { %v4173_v40 = vpop.f32.mrf.mxu1 }
 0x49f   : > { %v4213_v20 = vpop.f32.mrf.mxu0  ;;  %v4466_v40 = vmul.f32 %v8687_v42, %v8687_v42 }
 0x4a0   : > { %v8689_v2 = vpop.f32.mrf.mxu1 }
 0x4a1   : > { %v4214_v43 = vpop.f32.mrf.mxu0  ;;  %v4467_v57 = vmul.f32 %v8689_v2, %v8689_v2 }
 0x4a2   : > { %v8693_v46 = vpop.f32.mrf.mxu1  ;;  %v4473_v43 = vadd.f32 %v4465_v19, %v4457_v24 }
 0x4a3   : > { %v8701_v61 = vpop.f32.mrf.mxu0  ;;  %v4468_v29 = vmul.f32 %v8693_v46, %v8693_v46 }
 0x4a4   : > { %v4254_v58 = vpop.f32.mrf.mxu1  ;;  %v4477_v31 = vmul.f32 %v8701_v61, %v8701_v61 }
 0x4a5   : > { %v8711_v25 = vpop.f32.mrf.mxu0  ;;  %v4458_v58 = vmul.f32 %v8671_v3, %v8671_v3 }
 0x4a6   : > { %v4255_v52 = vpop.f32.mrf.mxu1  ;;  %v4485_v22 = vadd.f32 %v4477_v31, %v4469_v45  ;;  %v4478_v49 = vmul.f32 %v8711_v25, %v8711_v25 }
 0x4a7   : > { %v4327_v63 = vpop.f32.mrf.mxu0 }
 0x4a8   : > { %v8713_v33 = vpop.f32.mrf.mxu1  ;;  %v4493_v13 = vmax.f32 %v4485_v22, 1e-08  ;;  %v4486_v35 = vadd.f32 %v4478_v49, %v4470_v47  ;;  %v4475_v47 = vadd.f32 %v4467_v57, %v4459_v56  ;;  %v4474_v22 = vadd.f32 %v4466_v40, %v4458_v58 }
 0x4a9   : > { %v4479_v62 = vmul.f32 %v8713_v33, %v8713_v33  ;;  %v4328_v55 = vpop.f32.mrf.mxu0 }
 0x4aa   : > { %v8721_v53 = vpop.f32.mrf.mxu1  ;;  %7025 = vrsqrt.f32 %v4493_v13  ;;  %v8731_v17 = vmax.f32 %v4486_v35, 1e-08  ;;  %vm4503_vm12 = vcmp.eq.f32.partialorder %v4493_v13, inf  ;;  %v4506_v40 = vand.u32 2147483648, %v4493_v13 }
 0x4ab   : > { %v4487_v50 = vadd.f32 %v4479_v62, %v4471_v32  ;;  %v4480_v7 = vmul.f32 %v8721_v53, %v8721_v53  ;;  %v8733_v21 = vpop.f32.mrf.mxu0  ;;  %vm4505_vm13 = vcmp.eq.f32.partialorder %v4493_v13, 0.0 }
 0x4ac   : > { %v4368_v12 = vpop.f32.mrf.mxu1  ;;  %v4481_v5 = vmul.f32 %v8733_v21, %v8733_v21  ;;  %vm4510_vm2 = vcmp.eq.f32.partialorder %v8731_v17, inf  ;;  %vm4512_vm3 = vcmp.eq.f32.partialorder %v8731_v17, 0.0 }
 0x4ad   : > { %v8729_v41 = vmax.f32 %v4487_v50, 1e-08  ;;  %v4488_v54 = vadd.f32 %v4480_v7, %v4472_v11  ;;  %v8742_v10 = vpop.f32.mrf.mxu0  ;;  %v4476_v50 = vadd.f32 %v4468_v29, %v4460_v48 }
 0x4ae   : > { %v4369_v20 = vpop.f32.mrf.mxu1  ;;  %v4489_v52 = vadd.f32 %v4481_v5, %v4473_v43  ;;  %v4482_v0 = vmul.f32 %v8742_v10, %v8742_v10 }
 0x4af   : > { %7027 = vrsqrt.f32 %v8729_v41  ;;  %v4496_v45 = vmax.f32 %v4488_v54, 1e-08  ;;  %v4409_v59 = vpop.f32.mrf.mxu0  ;;  %vm4517_vm14 = vcmp.eq.f32.partialorder %v8729_v41, inf  ;;  %vm4519_vm15 = vcmp.eq.f32.partialorder %v8729_v41, 0.0 }
 0x4b0   : > { %7029 = vrsqrt.f32 %v8731_v17  ;;  %v8751_v34 = vpop.f32.mrf.mxu1  ;;  %v4497_v62 = vmax.f32 %v4489_v52, 1e-08  ;;  %v4490_v35 = vadd.f32 %v4482_v0, %v4474_v22 }
 0x4b1   : > { %v4483_v31 = vmul.f32 %v8751_v34, %v8751_v34  ;;  %7031 = vrsqrt.f32 %v4496_v45  ;;  %v4410_v32 = vpop.f32.mrf.mxu0  ;;  %vm4524_vm4 = vcmp.eq.f32.partialorder %v4496_v45, inf  ;;  %vm4526_vm5 = vcmp.eq.f32.partialorder %v4496_v45, 0.0 }
 0x4b2   : > { %v8757_v49 = vpop.f32.mrf.mxu1  ;;  %7033 = vrsqrt.f32 %v4497_v62  ;;  %v8765_v12 = vmax.f32 %v4490_v35, 1e-08  ;;  %vm4531_vm7 = vcmp.eq.f32.partialorder %v4497_v62, inf  ;;  %vm4533_vm0 = vcmp.eq.f32.partialorder %v4497_v62, 0.0 }
 0x4b3   : > { %v4491_v63 = vadd.f32 %v4483_v31, %v4475_v47  ;;  %v4484_v11 = vmul.f32 %v8757_v49, %v8757_v49  ;;  %v4520_v31 = vand.u32 2147483648, %v8729_v41 }
 0x4b4   : > { %v4450_v19 = vpop.f32.mrf.mxu1 }
 0x4b5   : > { %v8763_v55 = vmax.f32 %v4491_v63, 1e-08  ;;  %v4492_v24 = vadd.f32 %v4484_v11, %v4476_v50  ;;  %v4527_v19 = vand.u32 2147483648, %v4496_v45 }
 0x4b6   : > { %v4451_v7 = vpop.f32.mrf.mxu1 }
 0x4b7   : > { %v7026_v54 = vpop.eup %7025  ;;  %7035 = vrsqrt.f32 %v8763_v55  ;;  %v8769_v20 = vmax.f32 %v4492_v24, 1e-08  ;;  %vm4545_vm8 = vcmp.eq.f32.partialorder %v8763_v55, inf  ;;  %vm4547_vm9 = vcmp.eq.f32.partialorder %v8763_v55, 0.0 }
 0x4b8   : > { %v4502_v57 = vmul.f32 %v7026_v54, %v4493_v13  ;;  %7037 = vrsqrt.f32 %v8765_v12 }
 0x4b9   : > { %7039 = vrsqrt.f32 %v8769_v20 }
 0x4ba   : > { %v4504_v43 = vsel %vm4503_vm12, %v4493_v13, %v4502_v57  ;;  %v4513_v13 = vand.u32 2147483648, %v8731_v17  ;;  %v4534_v57 = vand.u32 2147483648, %v4497_v62  ;;  %vm4538_vm12 = vcmp.eq.f32.partialorder %v8765_v12, inf }
 0x4bb   : > { %v4507_v58 = vsel %vm4505_vm13, %v4506_v40, %v4504_v43  ;;  %vm4540_vm13 = vcmp.eq.f32.partialorder %v8765_v12, 0.0 }
 0x4bc   : > { %v7028_v5 = vpop.eup %7027  ;;  %v6752_v52 = vmul.f32 -1.442695, %v4507_v58 }
 0x4bd   : > { %v7030_v56 = vpop.eup %7029  ;;  %v4516_v29 = vmul.f32 %v7028_v5, %v8729_v41 }
 0x4be   : > { %v4509_v0 = vmul.f32 %v7030_v56, %v8731_v17  ;;  %v7032_v47 = vpop.eup %7031  ;;  %7041 = vpow2.f32 %v6752_v52 }
 0x4bf   : > { %v4518_v59 = vsel %vm4517_vm14, %v8729_v41, %v4516_v29  ;;  %v4523_v35 = vmul.f32 %v7032_v47, %v4496_v45  ;;  %v7034_v50 = vpop.eup %7033  ;;  %v4548_v29 = vand.u32 2147483648, %v8763_v55  ;;  %vm4552_vm14 = vcmp.eq.f32.partialorder %v8769_v20, inf }
 0x4c0   : > { %v4521_v22 = vsel %vm4519_vm15, %v4520_v31, %v4518_v59  ;;  %v4511_v48 = vsel %vm4510_vm2, %v8731_v17, %v4509_v0  ;;  %v4530_v24 = vmul.f32 %v7034_v50, %v4497_v62  ;;  %vm4554_vm15 = vcmp.eq.f32.partialorder %v8769_v20, 0.0 }
 0x4c1   : > { %v6754_v32 = vmul.f32 -1.442695, %v4521_v22  ;;  %v4514_v63 = vsel %vm4512_vm3, %v4513_v13, %v4511_v48  ;;  %v4525_v41 = vsel %vm4524_vm4, %v4496_v45, %v4523_v35 }
 0x4c2   : > { %v6753_v11 = vmul.f32 -1.442695, %v4514_v63  ;;  %v4528_v7 = vsel %vm4526_vm5, %v4527_v19, %v4525_v41  ;;  %v4532_v5 = vsel %vm4531_vm7, %v4497_v62, %v4530_v24  ;;  %v4541_v62 = vand.u32 2147483648, %v8765_v12 }
 0x4c3   : > { %7043 = vpow2.f32 %v6754_v32  ;;  %v6755_v54 = vmul.f32 -1.442695, %v4528_v7  ;;  %v4535_v43 = vsel %vm4533_vm0, %v4534_v57, %v4532_v5 }
 0x4c4   : > { %7045 = vpow2.f32 %v6753_v11  ;;  %v7036_v40 = vpop.eup %7035  ;;  %v6756_v58 = vmul.f32 -1.442695, %v4535_v43 }
 0x4c5   : > { %v7038_v17 = vpop.eup %7037  ;;  %7047 = vpow2.f32 %v6755_v54  ;;  %v4544_v56 = vmul.f32 %v7036_v40, %v8763_v55 }
 0x4c6   : > { %v4537_v45 = vmul.f32 %v7038_v17, %v8765_v12  ;;  %v7040_v31 = vpop.eup %7039  ;;  %7049 = vpow2.f32 %v6756_v58 }
 0x4c7   : > { %v4546_v52 = vsel %vm4545_vm8, %v8763_v55, %v4544_v56  ;;  %v4551_v22 = vmul.f32 %v7040_v31, %v8769_v20  ;;  %v4555_v55 = vand.u32 2147483648, %v8769_v20 }
 0x4c8   : > { %v4549_v0 = vsel %vm4547_vm9, %v4548_v29, %v4546_v52  ;;  %v4539_v59 = vsel %vm4538_vm12, %v8765_v12, %v4537_v45 }
 0x4c9   : > { %v6758_v13 = vmul.f32 -1.442695, %v4549_v0  ;;  %v4542_v47 = vsel %vm4540_vm13, %v4541_v62, %v4539_v59  ;;  %v4553_v63 = vsel %vm4552_vm14, %v8769_v20, %v4551_v22 }
 0x4ca   : > { %v6757_v48 = vmul.f32 -1.442695, %v4542_v47  ;;  %v4556_v11 = vsel %vm4554_vm15, %v4555_v55, %v4553_v63 }
 0x4cb   : > { %v7042_v32 = vpop.eup %7041  ;;  %7051 = vpow2.f32 %v6758_v13  ;;  %v6759_v19 = vmul.f32 -1.442695, %v4556_v11 }
 0x4cc   : > { %v4581_v35 = vadd.f32 1.0, %v7042_v32  ;;  %7053 = vpow2.f32 %v6757_v48 }
 0x4ce   : > { %7055 = vrcp.f32 %v4581_v35 }
 0x4cf   : > { %7057 = vpow2.f32 %v6759_v19 }
 0x4d0   : > { %v7044_v12 = vpop.eup %7043 }
 0x4d1   : > { %v7046_v50 = vpop.eup %7045  ;;  %v4583_v41 = vadd.f32 1.0, %v7044_v12 }
 0x4d2   : > { %v4582_v7 = vadd.f32 1.0, %v7046_v50  ;;  %v7048_v24 = vpop.eup %7047 }
 0x4d3   : > { %7059 = vrcp.f32 %v4583_v41  ;;  %v4584_v54 = vadd.f32 1.0, %v7048_v24  ;;  %v7050_v57 = vpop.eup %7049 }
 0x4d4   : > { %7061 = vrcp.f32 %v4582_v7  ;;  %v4585_v40 = vadd.f32 1.0, %v7050_v57 }
 0x4d5   : > { %7063 = vrcp.f32 %v4584_v54 }
 0x4d6   : > { %7065 = vrcp.f32 %v4585_v40 }
 0x4d8   : > { %v7052_v5 = vpop.eup %7051 }
 0x4d9   : > { %v7054_v20 = vpop.eup %7053  ;;  %v4587_v17 = vadd.f32 1.0, %v7052_v5 }
 0x4da   : > { %v4586_v43 = vadd.f32 1.0, %v7054_v20 }
 0x4db   : > { %v8797_v56 = vpop.eup %7055  ;;  %7067 = vrcp.f32 %v4587_v17 }
 0x4dc   : > { %v7058_v58 = vpop.eup %7057  ;;  %7069 = vrcp.f32 %v4586_v43  ;;  %v4605_v29 = vmul.f32 %v8797_v56, %v8661_v9  ;;  %v4613_v50 = vmul.f32 %v8797_v56, %v8677_v8 }
 0x4dd   : > { %v4588_v45 = vadd.f32 1.0, %v7058_v58 }
 0x4de   : > { %v4637_v59 = vpack.c.bf16 %v4605_v29, %v4605_v29  ;;  %v4836_v57 = vpack.c.bf16 %v4613_v50, %v4613_v50 }
 0x4df   : > { %7071 = vrcp.f32 %v4588_v45 }
 0x4e0   : > { %v8801_v52 = vpop.eup %7059  ;;  %v4649_v9 = vsel %vm1776_vm6, %v4637_v59, 0  ;;  %v4845_v17 = vsel %vm1776_vm6, %v4836_v57, 0  ;;  %v4621_v59 = vmul.f32 %v8797_v56, %v8701_v61 }
 0x4e1   : > { %v7062_v62 = vpop.eup %7061  ;;  %v4607_v31 = vmul.f32 %v8801_v52, %v8665_v36  ;;  %v8814_v36 = vld [vmem:[%s9330_s11] sm:$0x3] }
 0x4e2   : > { %v4606_v0 = vmul.f32 %v7062_v62, %v8663_v15  ;;  %v7064_v13 = vpop.eup %7063  ;;  %v4622_v45 = vmul.f32 %v7062_v62, %v8711_v25  ;;  %v4623_v25 = vmul.f32 %v8801_v52, %v8713_v33 }
 0x4e3   : > { %v4608_v22 = vmul.f32 %v7064_v13, %v8667_v39  ;;  %v4639_v48 = vpack.c.bf16 %v4607_v31, %v4607_v31  ;;  %v8809_v55 = vpop.eup %7065  ;;  %v4616_v54 = vmul.f32 %v7064_v13, %v8683_v16  ;;  %v4624_v31 = vmul.f32 %v7064_v13, %v8721_v53 }
 0x4e4   : > { %v4638_v47 = vpack.c.bf16 %v4606_v0, %v4606_v0  ;;  %v4609_v15 = vmul.f32 %v8809_v55, %v8669_v51  ;;  %v4614_v51 = vmul.f32 %v7062_v62, %v8679_v38  ;;  %v5032_v53 = vpack.c.bf16 %v4621_v59, %v4621_v59 }
 0x4e5   : > { %v4640_v32 = vpack.c.bf16 %v4608_v22, %v4608_v22  ;;  %v4655_v39 = vsel %vm1776_vm6, %v4639_v48, 0  ;;  %v4839_v16 = vpack.c.bf16 %v4616_v54, %v4616_v54  ;;  %v5035_v62 = vpack.c.bf16 %v4624_v31, %v4624_v31 }
 0x4e6   : > { %6760 = vmatprep.subr.msk.bf16.mxu0 %vm1776_vm6, %v4638_v47  ;;  %v4641_v12 = vpack.c.bf16 %v4609_v15, %v4609_v15  ;;  %v4837_v8 = vpack.c.bf16 %v4614_v51, %v4614_v51  ;;  %v5033_v47 = vpack.c.bf16 %v4622_v45, %v4622_v45  ;;  %v5034_v13 = vpack.c.bf16 %v4623_v25, %v4623_v25 }
 0x4e7   : > { %4687 = vmatpush1.bf16.msra.mxu0 %v4649_v9  ;;  %6762 = vmatprep.subr.msk.bf16.mxu1 %vm1776_vm6, %v4640_v32  ;;  %v4625_v33 = vmul.f32 %v8809_v55, %v8733_v21  ;;  %v5041_v48 = vsel %vm1776_vm6, %v5032_v53, 0 }
 0x4e8   : > { %v8820_v63 = vpop.eup %7067  ;;  %4728 = vmatpush1.bf16.msra.mxu1 %v4655_v39  ;;  %v4661_v38 = vsel %vm1776_vm6, %v4641_v12, 0  ;;  %v5047_v21 = vsel %vm1776_vm6, %v5034_v13, 0 }
 0x4e9   : > { %v7070_v35 = vpop.eup %7069  ;;  %v4611_v11 = vmul.f32 %v8820_v63, %v8673_v27  ;;  %v4619_v29 = vmul.f32 %v8820_v63, %v8689_v2 }
 0x4ea   : > { %6761 = vmatmul.mubr.msk.bf16.vlgmr.msra.gmra.mxu0 %vm2761_vm1, %v8814_v36  ;;  %v4610_v19 = vmul.f32 %v7070_v35, %v8671_v3  ;;  %v4615_v3 = vmul.f32 %v8801_v52, %v8681_v30  ;;  %v4618_v40 = vmul.f32 %v7070_v35, %v8687_v42  ;;  %v4617_v42 = vmul.f32 %v8809_v55, %v8685_v28 }
 0x4eb   : > { %4786 = vmatprep.mubr.bf16.mxu0 %v9413_v14  ;;  %6763 = vmatmul.mubr.msk.bf16.vlgmr.msra.gmra.mxu1 %vm2761_vm1, %v8814_v36  ;;  %v4643_v27 = vpack.c.bf16 %v4611_v11, %v4611_v11  ;;  %v4842_v0 = vpack.c.bf16 %v4619_v29, %v4619_v29  ;;  %v4626_v56 = vmul.f32 %v7070_v35, %v8742_v10 }
 0x4ec   : > { %v7072_v41 = vpop.eup %7071  ;;  %v4642_v7 = vpack.c.bf16 %v4610_v19, %v4610_v19  ;;  %4827 = vmatprep.mubr.bf16.mxu1 %v9413_v14  ;;  %v4838_v20 = vpack.c.bf16 %v4615_v3, %v4615_v3  ;;  %v4841_v43 = vpack.c.bf16 %v4618_v40, %v4618_v40  ;;  %v4840_v28 = vpack.c.bf16 %v4617_v42, %v4617_v42 }
 0x4ed   : > { %v4612_v24 = vmul.f32 %v7072_v41, %v8675_v23  ;;  %v4667_v23 = vsel %vm1776_vm6, %v4643_v27, 0  ;;  %v4620_v30 = vmul.f32 %v7072_v41, %v8693_v46  ;;  %v4863_v61 = vsel %vm1776_vm6, %v4842_v0, 0 }
 0x4ee   : > { %6764 = vmatprep.subr.msk.bf16.mxu0 %vm1776_vm6, %v4642_v7  ;;  %v4851_v46 = vsel %vm1776_vm6, %v4838_v20, 0  ;;  %v4857_v2 = vsel %vm1776_vm6, %v4840_v28, 0  ;;  %v4628_v22 = vmul.f32 %v7072_v41, %v8757_v49  ;;  %v5037_v52 = vpack.c.bf16 %v4626_v56, %v4626_v56 }
 0x4ef   : > { %v4644_v5 = vpack.c.bf16 %v4612_v24, %v4612_v24  ;;  %4769 = vmatpush1.bf16.msra.mxu0 %v4661_v38  ;;  %v4843_v58 = vpack.c.bf16 %v4620_v30, %v4620_v30  ;;  %v4627_v10 = vmul.f32 %v8820_v63, %v8751_v34  ;;  %v5036_v49 = vpack.c.bf16 %v4625_v33, %v4625_v33  ;;  %v558_v24 = vld [vmem:[%s9334_s15] sm:$0xff] }
 0x4f0   : > { %6768 = vmatprep.subr.msk.bf16.mxu0 %vm1776_vm6, %v4837_v8  ;;  %v5039_v9 = vpack.c.bf16 %v4628_v22, %v4628_v22  ;;  %5732 = vperm.xlu1 %6919, %v558_v24  }
 0x4f1   : > { %6766 = vmatprep.subr.msk.bf16.mxu1 %vm1776_vm6, %v4644_v5  ;;  %v5038_v55 = vpack.c.bf16 %v4627_v10, %v4627_v10  ;;  %v5053_v32 = vsel %vm1776_vm6, %v5036_v49, 0 }
 0x4f2   : > { %4810 = vmatpush1.bf16.msra.mxu1 %v4667_v23  ;;  %6765 = vmatmul.mubr.msk.bf16.vlgmr.msra.gmra.mxu0 %vm2761_vm1, %v8814_v36 }
 0x4f3   : > { %6770 = vmatprep.subr.msk.bf16.mxu1 %vm1776_vm6, %v4839_v16  ;;  %4883 = vmatpush1.bf16.msra.mxu0 %v4845_v17  ;;  %v5059_v34 = vsel %vm1776_vm6, %v5038_v55, 0 }
 0x4f4   : > { %6772 = vmatprep.subr.msk.bf16.mxu0 %vm1776_vm6, %v4841_v43  ;;  %4900 = vmatprep.mubr.bf16.mxu0 %v9413_v14 }
 0x4f5   : > { %6767 = vmatmul.mubr.msk.bf16.vlgmr.msra.gmra.mxu1 %vm2761_vm1, %v8814_v36 }
 0x4f6   : > { %4924 = vmatpush1.bf16.msra.mxu1 %v4851_v46  ;;  %4941 = vmatprep.mubr.bf16.mxu1 %v9413_v14 }
 0x4f7   : > { %6774 = vmatprep.subr.msk.bf16.mxu1 %vm1776_vm6, %v4843_v58 }
 0x4fa   : > { %6769 = vmatmul.mubr.msk.bf16.vlgmr.msra.gmra.mxu0 %vm2761_vm1, %v8814_v36 }
 0x4fb   : > { %4965 = vmatpush1.bf16.msra.mxu0 %v4857_v2  ;;  %4982 = vmatprep.mubr.bf16.mxu0 %v9413_v14 }
 0x4fc   : > { %6776 = vmatprep.subr.msk.bf16.mxu0 %vm1776_vm6, %v5033_v47 }
 0x4fd   : > { %6771 = vmatmul.mubr.msk.bf16.vlgmr.msra.gmra.mxu1 %vm2761_vm1, %v8814_v36 }
 0x4fe   : > { %5006 = vmatpush1.bf16.msra.mxu1 %v4863_v61  ;;  %5023 = vmatprep.mubr.bf16.mxu1 %v9413_v14 }
 0x4ff   : > { %6778 = vmatprep.subr.msk.bf16.mxu1 %vm1776_vm6, %v5035_v62 }
 0x502   : > { %6773 = vmatmul.mubr.msk.bf16.vlgmr.msra.gmra.mxu0 %vm2761_vm1, %v8814_v36 }
 0x503   : > { %5079 = vmatpush1.bf16.msra.mxu0 %v5041_v48  ;;  %5096 = vmatprep.mubr.bf16.mxu0 %v9413_v14 }
 0x504   : > { %6780 = vmatprep.subr.msk.bf16.mxu0 %vm1776_vm6, %v5037_v52 }
 0x505   : > { %6775 = vmatmul.mubr.msk.bf16.vlgmr.msra.gmra.mxu1 %vm2761_vm1, %v8814_v36 }
 0x506   : > { %5120 = vmatpush1.bf16.msra.mxu1 %v5047_v21  ;;  %5137 = vmatprep.mubr.bf16.mxu1 %v9413_v14 }
 0x507   : > { %6782 = vmatprep.subr.msk.bf16.mxu1 %vm1776_vm6, %v5039_v9 }
 0x50a   : > { %6777 = vmatmul.mubr.msk.bf16.vlgmr.msra.gmra.mxu0 %vm2761_vm1, %v8814_v36 }
 0x50b   : > { %5161 = vmatpush1.bf16.msra.mxu0 %v5053_v32  ;;  %5178 = vmatprep.mubr.bf16.mxu0 %v9413_v14 }
 0x50d   : > { %6779 = vmatmul.mubr.msk.bf16.vlgmr.msra.gmra.mxu1 %vm2761_vm1, %v8814_v36 }
 0x50e   : > { %5202 = vmatpush1.bf16.msra.mxu1 %v5059_v34  ;;  %5219 = vmatprep.mubr.bf16.mxu1 %v9413_v14 }
 0x512   : > { %6781 = vmatmul.mubr.msk.bf16.vlgmr.msra.gmra.mxu0 %vm2761_vm1, %v8814_v36 }
 0x513   : > { %5407 = vmatprep.mubr.bf16.mxu0 %v9413_v14 }
 0x515   : > { %6783 = vmatmul.mubr.msk.bf16.vlgmr.msra.gmra.mxu1 %vm2761_vm1, %v8814_v36 }
 0x516   : > { %5448 = vmatprep.mubr.bf16.mxu1 %v9413_v14 }
 0x5aa   : > { %v8906_v15 = vpop.f32.mrf.mxu0 }
 0x5ab   : > { %v8910_v63 = vpop.f32.mrf.mxu1  ;;  %v5228_v28 = vmul.f32 %v8906_v15, %v8906_v15 }
 0x5ac   : > { %v8908_v39 = vpop.f32.mrf.mxu0  ;;  %v5230_v53 = vmul.f32 %v8910_v63, %v8910_v63 }
 0x5ad   : > { %v8912_v11 = vpop.f32.mrf.mxu1  ;;  %v5229_v2 = vmul.f32 %v8908_v39, %v8908_v39 }
 0x5ae   : > { %v4710_v35 = vpop.f32.mrf.mxu0  ;;  %v5231_v10 = vmul.f32 %v8912_v11, %v8912_v11 }
 0x5af   : > { %v4751_v12 = vpop.f32.mrf.mxu1 }
 0x5b0   : > { %v4711_v19 = vpop.f32.mrf.mxu0 }
 0x5b1   : > { %v4752_v51 = vpop.f32.mrf.mxu1 }
 0x5b2   : > { %v8914_v50 = vpop.f32.mrf.mxu0 }
 0x5b3   : > { %v5232_v24 = vmul.f32 %v8914_v50, %v8914_v50 }
 0x5b4   : > { %v8916_v41 = vpop.f32.mrf.mxu0 }
 0x5b5   : > { %v8918_v7 = vpop.f32.mrf.mxu1 }
 0x5b6   : > { %v4792_v36 = vpop.f32.mrf.mxu0 }
 0x5b7   : > { %v8923_v27 = vpop.f32.mrf.mxu1 }
 0x5b8   : > { %v4793_v54 = vpop.f32.mrf.mxu0 }
 0x5b9   : > { %v4833_v3 = vpop.f32.mrf.mxu1 }
 0x5ba   : > { %v8925_v38 = vpop.f32.mrf.mxu0 }
 0x5bb   : > { %v4834_v8 = vpop.f32.mrf.mxu1  ;;  %v5236_v58 = vmul.f32 %v8925_v38, %v8925_v38 }
 0x5bc   : > { %v8927_v57 = vpop.f32.mrf.mxu0 }
 0x5bd   : > { %v8929_v40 = vpop.f32.mrf.mxu1  ;;  %v5237_v31 = vmul.f32 %v8927_v57, %v8927_v57  ;;  %v5244_v25 = vadd.f32 %v5236_v58, %v5228_v28 }
 0x5be   : > { %v4906_v5 = vpop.f32.mrf.mxu0  ;;  %v5238_v59 = vmul.f32 %v8929_v40, %v8929_v40 }
 0x5bf   : > { %v8931_v23 = vpop.f32.mrf.mxu1  ;;  %v5245_v22 = vadd.f32 %v5237_v31, %v5229_v2  ;;  %v5234_v31 = vmul.f32 %v8918_v7, %v8918_v7 }
 0x5c0   : > { %v4907_v16 = vpop.f32.mrf.mxu0  ;;  %v5239_v56 = vmul.f32 %v8931_v23, %v8931_v23  ;;  %v5246_v9 = vadd.f32 %v5238_v59, %v5230_v53 }
 0x5c1   : > { %v4947_v20 = vpop.f32.mrf.mxu1 }
 0x5c2   : > { %v8933_v30 = vpop.f32.mrf.mxu0  ;;  %v5247_v19 = vadd.f32 %v5239_v56, %v5231_v10  ;;  %v9008_v56 = vpop.permute.xlu0 %3851 }
 0x5c3   : > { %v4948_v17 = vpop.f32.mrf.mxu1  ;;  %v5240_v55 = vmul.f32 %v8933_v30, %v8933_v30 }
 0x5c4   : > { %v8935_v43 = vpop.f32.mrf.mxu0 }
 0x5c5   : > { %v8937_v42 = vpop.f32.mrf.mxu1  ;;  %v5241_v54 = vmul.f32 %v8935_v43, %v8935_v43  ;;  %v5248_v58 = vadd.f32 %v5240_v55, %v5232_v24 }
 0x5c6   : > { %v4988_v46 = vpop.f32.mrf.mxu0  ;;  %v5242_v5 = vmul.f32 %v8937_v42, %v8937_v42 }
 0x5c7   : > { %v8941_v29 = vpop.f32.mrf.mxu1  ;;  %v5233_v46 = vmul.f32 %v8916_v41, %v8916_v41 }
 0x5c8   : > { %v4989_v45 = vpop.f32.mrf.mxu0 }
 0x5c9   : > { %v5029_v0 = vpop.f32.mrf.mxu1 }
 0x5ca   : > { %v8949_v47 = vpop.f32.mrf.mxu0  ;;  %v5243_v0 = vmul.f32 %v8941_v29, %v8941_v29 }
 0x5cb   : > { %v5030_v62 = vpop.f32.mrf.mxu1  ;;  %v5252_v61 = vmul.f32 %v8949_v47, %v8949_v47 }
 0x5cc   : > { %v8959_v13 = vpop.f32.mrf.mxu0 }
 0x5cd   : > { %v5260_v33 = vadd.f32 %v5252_v61, %v5244_v25  ;;  %v8961_v52 = vpop.f32.mrf.mxu1  ;;  %v5253_v48 = vmul.f32 %v8959_v13, %v8959_v13  ;;  %v5249_v25 = vadd.f32 %v5241_v54, %v5233_v46 }
 0x5ce   : > { %v5254_v21 = vmul.f32 %v8961_v52, %v8961_v52  ;;  %v5102_v49 = vpop.f32.mrf.mxu0 }
 0x5cf   : > { %v8971_v32 = vmax.f32 %v5260_v33, 1e-08  ;;  %v5261_v34 = vadd.f32 %v5253_v48, %v5245_v22  ;;  %v8973_v35 = vpop.f32.mrf.mxu1  ;;  %v5235_v22 = vmul.f32 %v8923_v27, %v8923_v27  ;;  %v5250_v33 = vadd.f32 %v5242_v5, %v5234_v31 }
 0x5d0   : > { %v5262_v12 = vadd.f32 %v5254_v21, %v5246_v9  ;;  %v5255_v51 = vmul.f32 %v8973_v35, %v8973_v35  ;;  %v5103_v36 = vpop.f32.mrf.mxu0  ;;  %v3854_v9 = vadd.f32 %v9008_v56, %v8645_v1 }
 0x5d1   : > { %7073 = vrsqrt.f32 %v8971_v32  ;;  %v8982_v3 = vmax.f32 %v5261_v34, 1e-08  ;;  %v5143_v8 = vpop.f32.mrf.mxu1  ;;  %v3855_v34 = vadd.f32 %v9008_v56, %v8647_v18  ;;  %vm5278_vm2 = vcmp.eq.f32.partialorder %v8971_v32, inf }
 0x5d2   : > { %v8986_v16 = vmax.f32 %v5262_v12, 1e-08  ;;  %v5263_v20 = vadd.f32 %v5255_v51, %v5247_v19  ;;  %v8988_v17 = vpop.f32.mrf.mxu0  ;;  %v5251_v19 = vadd.f32 %v5243_v0, %v5235_v22  ;;  %v4629_v5 = vmax.f32 %v3854_v9, 0.0 }
 0x5d3   : > { %7075 = vrsqrt.f32 %v8982_v3  ;;  %v5144_v45 = vpop.f32.mrf.mxu1  ;;  %v5256_v28 = vmul.f32 %v8988_v17, %v8988_v17  ;;  %v4630_v46 = vmax.f32 %v3855_v34, 0.0  ;;  %vm5285_vm3 = vcmp.eq.f32.partialorder %v8982_v3, inf }
 0x5d4   : > { %7077 = vrsqrt.f32 %v8986_v16  ;;  %v9000_v59 = vmax.f32 %v5263_v20, 1e-08  ;;  %v9002_v2 = vpop.f32.mrf.mxu0  ;;  %v9032_v20 = vadd.f32 %v9008_v56, %v8649_v37  ;;  %vm5280_vm4 = vcmp.eq.f32.partialorder %v8971_v32, 0.0 }
 0x5d5   : > { %v5264_v62 = vadd.f32 %v5256_v28, %v5248_v58  ;;  %v9004_v61 = vpop.f32.mrf.mxu1  ;;  %v5257_v53 = vmul.f32 %v9002_v2, %v9002_v2  ;;  %v9039_v28 = vpack.c.bf16 %v4629_v5, %v4629_v5  ;;  %v9043_v37 = vpack.c.bf16 %v4630_v46, %v4630_v46 }
 0x5d6   : > { %7079 = vrsqrt.f32 %v9000_v59  ;;  %v5258_v48 = vmul.f32 %v9004_v61, %v9004_v61  ;;  %v5184_v10 = vpop.f32.mrf.mxu0  ;;  %v4631_v31 = vmax.f32 %v9032_v20, 0.0  ;;  %vm5287_vm5 = vcmp.eq.f32.partialorder %v8982_v3, 0.0 }
 0x5d7   : > { %v9017_v21 = vmax.f32 %v5264_v62, 1e-08  ;;  %v5265_v49 = vadd.f32 %v5257_v53, %v5249_v25  ;;  %v9019_v55 = vpop.f32.mrf.mxu1  ;;  %v9047_v62 = vadd.f32 %v9008_v56, %v8651_v26  ;;  %v5281_v53 = vand.u32 2147483648, %v8971_v32 }
 0x5d8   : > { %v5266_v12 = vadd.f32 %v5258_v48, %v5250_v33  ;;  %v5259_v51 = vmul.f32 %v9019_v55, %v9019_v55  ;;  %v5185_v36 = vpop.f32.mrf.mxu0  ;;  %v5288_v10 = vand.u32 2147483648, %v8982_v3  ;;  %vm5292_vm7 = vcmp.eq.f32.partialorder %v8986_v16, inf }
 0x5d9   : > { %7081 = vrsqrt.f32 %v9017_v21  ;;  %v9026_v24 = vmax.f32 %v5265_v49, 1e-08  ;;  %v5225_v54 = vpop.f32.mrf.mxu1  ;;  %vm5294_vm0 = vcmp.eq.f32.partialorder %v8986_v16, 0.0  ;;  %vm5299_vm8 = vcmp.eq.f32.partialorder %v9000_v59, inf }
 0x5da   : > { %v9028_v1 = vmax.f32 %v5266_v12, 1e-08  ;;  %v5267_v8 = vadd.f32 %v5259_v51, %v5251_v19  ;;  %v5295_v12 = vand.u32 2147483648, %v8986_v16  ;;  %vm5301_vm9 = vcmp.eq.f32.partialorder %v9000_v59, 0.0 }
 0x5db   : > { %7083 = vrsqrt.f32 %v9026_v24  ;;  %v5226_v18 = vpop.f32.mrf.mxu1  ;;  %vm5306_vm12 = vcmp.eq.f32.partialorder %v9017_v21, inf  ;;  %vm5308_vm13 = vcmp.eq.f32.partialorder %v9017_v21, 0.0  ;;  %vm5313_vm14 = vcmp.eq.f32.partialorder %v9026_v24, inf }
 0x5dc   : > { %7085 = vrsqrt.f32 %v9028_v1  ;;  %v9036_v58 = vmax.f32 %v5267_v8, 1e-08  ;;  %v5302_v8 = vand.u32 2147483648, %v9000_v59  ;;  %vm5315_vm15 = vcmp.eq.f32.partialorder %v9026_v24, 0.0 }
 0x5dd   : > { %v5543_v20 = vsel %vm3660_vm10, %v9039_v28, 0  ;;  %v556_v28 = vld [vmem:[%s9332_s13] sm:$0xf] }
 0x5de   : > { %v7074_v45 = vpop.eup %7073  ;;  %7087 = vrsqrt.f32 %v9036_v58 }
 0x5df   : > { %v5277_v0 = vmul.f32 %v7074_v45, %v8971_v32 }
 0x5e0   : > { %v7076_v25 = vpop.eup %7075 }
 0x5e1   : > { %v7078_v22 = vpop.eup %7077  ;;  %v5284_v33 = vmul.f32 %v7076_v25, %v8982_v3  ;;  %v5279_v48 = vsel %vm5278_vm2, %v8971_v32, %v5277_v0  ;;  %v3859_v0 = vadd.f32 %v9008_v56, %v8655_v4  ;;  %v5309_v4 = vand.u32 2147483648, %v9017_v21 }
 0x5e2   : > { %v5282_v9 = vsel %vm5280_vm4, %v5281_v53, %v5279_v48  ;;  %v5291_v26 = vmul.f32 %v7078_v22, %v8986_v16  ;;  %vm5320_vm2 = vcmp.eq.f32.partialorder %v9028_v1, inf  ;;  %vm5327_vm4 = vcmp.eq.f32.partialorder %v9036_v58, inf }
 0x5e3   : > { %v7080_v49 = vpop.eup %7079  ;;  %v5286_v34 = vsel %vm5285_vm3, %v8982_v3, %v5284_v33  ;;  %v5340_v19 = vpack.c.bf16 %v5282_v9, %v5282_v9  ;;  %v4632_v3 = vmax.f32 %v9047_v62, 0.0  ;;  %v557_v62 = vld [vmem:[%s9333_s14] sm:$0xf]  ;;  %vm5322_vm3 = vcmp.eq.f32.partialorder %v9028_v1, 0.0 }
 0x5e4   : > { %v5289_v51 = vsel %vm5287_vm5, %v5288_v10, %v5286_v34  ;;  %v5298_v36 = vmul.f32 %v7080_v49, %v9000_v59  ;;  %v5293_v32 = vsel %vm5292_vm7, %v8986_v16, %v5291_v26  ;;  %v5316_v26 = vand.u32 2147483648, %v9026_v24 }
 0x5e5   : > { %v5341_v54 = vpack.c.bf16 %v5289_v51, %v5289_v51  ;;  %v5296_v5 = vsel %vm5294_vm0, %v5295_v12, %v5293_v32  ;;  %v5352_v25 = vsel %vm1776_vm6, %v5340_v19, 0  ;;  %vm5329_vm5 = vcmp.eq.f32.partialorder %v9036_v58, 0.0 }
 0x5e6   : > { %v7082_v18 = vpop.eup %7081  ;;  %v5300_v46 = vsel %vm5299_vm8, %v9000_v59, %v5298_v36  ;;  %v5342_v45 = vpack.c.bf16 %v5296_v5, %v5296_v5  ;;  %v5330_v5 = vand.u32 2147483648, %v9036_v58 }
 0x5e7   : > { %6784 = vmatprep.subr.msk.bf16.mxu0 %vm1776_vm6, %v5341_v54  ;;  %v5303_v16 = vsel %vm5301_vm9, %v5302_v8, %v5300_v46  ;;  %v5305_v53 = vmul.f32 %v7082_v18, %v9017_v21  ;;  %v3861_v18 = vadd.f32 %v9008_v56, %v8659_v60  ;;  %v5334_v60 = vpack.c.bf16 %v4631_v31, %v4631_v31 }
 0x5e8   : > { %v7084_v22 = vpop.eup %7083  ;;  %v5343_v33 = vpack.c.bf16 %v5303_v16, %v5303_v16  ;;  %5390 = vmatpush1.bf16.msra.mxu0 %v5352_v25  ;;  %v5358_v9 = vsel %vm1776_vm6, %v5342_v45, 0  ;;  %v4634_v16 = vmax.f32 %v3859_v0, 0.0 }
 0x5e9   : > { %v7086_v59 = vpop.eup %7085  ;;  %v5312_v48 = vmul.f32 %v7084_v22, %v9026_v24  ;;  %v5307_v10 = vsel %vm5306_vm12, %v9017_v21, %v5305_v53  ;;  %v5323_v21 = vand.u32 2147483648, %v9028_v1  ;;  %v4636_v0 = vmax.f32 %v3861_v18, 0.0 }
 0x5ea   : > { %6786 = vmatprep.subr.msk.bf16.mxu1 %vm1776_vm6, %v5343_v33  ;;  %v5310_v49 = vsel %vm5308_vm13, %v5309_v4, %v5307_v10  ;;  %v5319_v34 = vmul.f32 %v7086_v59, %v9028_v1  ;;  %v5337_v59 = vpack.c.bf16 %v4634_v16, %v4634_v16  ;;  %v5549_v31 = vsel %vm3660_vm10, %v5334_v60, 0 }
 0x5eb   : > { %v7088_v19 = vpop.eup %7087  ;;  %5431 = vmatpush1.bf16.msra.mxu1 %v5358_v9  ;;  %6785 = vmatmul.mubr.msk.bf16.vlgmr.msra.gmra.mxu0 %vm2761_vm1, %v557_v62  ;;  %v5314_v12 = vsel %vm5313_vm14, %v9026_v24, %v5312_v48  ;;  %v5344_v51 = vpack.c.bf16 %v5310_v49, %v5310_v49  ;;  %v5744_v48 = vpack.c.bf16 %v8908_v39, %v8908_v39 }
 0x5ec   : > { %v5317_v36 = vsel %vm5315_vm15, %v5316_v26, %v5314_v12  ;;  %v5326_v32 = vmul.f32 %v7088_v19, %v9036_v58  ;;  %v5321_v54 = vsel %vm5320_vm2, %v9028_v1, %v5319_v34  ;;  %5489 = vmatprep.mubr.bf16.mxu0 %v9413_v14  ;;  %v3858_v1 = vadd.f32 %v9008_v56, %v8653_v44 }
 0x5ed   : > { %v5345_v8 = vpack.c.bf16 %v5317_v36, %v5317_v36  ;;  %v5324_v24 = vsel %vm5322_vm3, %v5323_v21, %v5321_v54  ;;  %v5364_v53 = vsel %vm1776_vm6, %v5344_v51, 0  ;;  %v3860_v44 = vadd.f32 %v9008_v56, %v8657_v6 }
 0x5ee   : > { %6787 = vmatmul.mubr.msk.bf16.vlgmr.msra.gmra.mxu1 %vm2761_vm1, %v557_v62  ;;  %v5328_v46 = vsel %vm5327_vm4, %v9036_v58, %v5326_v32  ;;  %v5346_v45 = vpack.c.bf16 %v5324_v24, %v5324_v24  ;;  %v5335_v58 = vpack.c.bf16 %v4632_v3, %v4632_v3  ;;  %v4633_v4 = vmax.f32 %v3858_v1, 0.0 }
 0x5ef   : > { %6788 = vmatprep.subr.msk.bf16.mxu0 %vm1776_vm6, %v5345_v8  ;;  %v5331_v25 = vsel %vm5329_vm5, %v5330_v5, %v5328_v46  ;;  %5530 = vmatprep.mubr.bf16.mxu1 %v9413_v14  ;;  %v4635_v6 = vmax.f32 %v3860_v44, 0.0  ;;  %v5339_v56 = vpack.c.bf16 %v4636_v0, %v4636_v0  ;;  %v5746_v10 = vpack.c.bf16 %v8912_v11, %v8912_v11 }
 0x5f0   : > { %v5347_v22 = vpack.c.bf16 %v5331_v25, %v5331_v25  ;;  %5472 = vmatpush1.bf16.msra.mxu0 %v5364_v53  ;;  %v5370_v33 = vsel %vm1776_vm6, %v5346_v45, 0  ;;  %v5743_v26 = vpack.c.bf16 %v8906_v15, %v8906_v15  ;;  %v5745_v39 = vpack.c.bf16 %v8910_v63, %v8910_v63 }
 0x5f1   : > { %6792 = vmatprep.subr.msk.bf16.mxu0 %vm3660_vm10, %v9043_v37  ;;  %v5336_v37 = vpack.c.bf16 %v4633_v4, %v4633_v4  ;;  %v5338_v3 = vpack.c.bf16 %v4635_v6, %v4635_v6  ;;  %v5748_v49 = vpack.c.bf16 %v8916_v41, %v8916_v41  ;;  %v5750_v15 = vpack.c.bf16 %v8923_v27, %v8923_v27  ;;  %v9163_v41 = vld [vmem:[%s9449_s26] sm:$0x3]  ;;  %s7117_s26 = scalar_lea.vmem %s9276_s18, 1536 }
 0x5f2   : > { %6790 = vmatprep.subr.msk.bf16.mxu1 %vm1776_vm6, %v5347_v22  ;;  %v5755_v11 = vsel %vm1776_vm6, %v5743_v26, 0  ;;  %v5761_v34 = vsel %vm1776_vm6, %v5745_v39, 0  ;;  %v5747_v63 = vpack.c.bf16 %v8914_v50, %v8914_v50  ;;  %v5749_v27 = vpack.c.bf16 %v8918_v7, %v8918_v7  ;;  %p7118_p10 = scmp.ne.s32.totalorder %s9276_s18, %s7117_s26  ;;  %p7125_p7 = scmp.lt.s32.totalorder %s7123_s25, %s7117_s26 }
 0x5f3   : > { %5513 = vmatpush1.bf16.msra.mxu1 %v5370_v33  ;;  %6789 = vmatmul.mubr.msk.bf16.vlgmr.msra.gmra.mxu0 %vm2761_vm1, %v557_v62  ;;  %v5561_v9 = vsel %vm3660_vm10, %v5338_v3, 0  ;;  %v5943_v19 = vpack.c.bf16 %v8927_v57, %v8927_v57  ;;  %v5945_v12 = vpack.c.bf16 %v8931_v23, %v8931_v23  ;;  %v5942_v57 = vpack.c.bf16 %v8925_v38, %v8925_v38 }
 0x5f4   : > { %6794 = vmatprep.subr.msk.bf16.mxu1 %vm3660_vm10, %v5335_v58  ;;  %5581 = vmatpush1.bf16.msra.mxu0 %v5543_v20  ;;  %v5767_v50 = vsel %vm1776_vm6, %v5747_v63, 0  ;;  %v5773_v7 = vsel %vm1776_vm6, %v5749_v27, 0  ;;  %v5944_v51 = vpack.c.bf16 %v8929_v40, %v8929_v40  ;;  %v5947_v21 = vpack.c.bf16 %v8935_v43, %v8935_v43  ;;  %v5733_v20 = vpop.permute.xlu1 %5732  ;;  %p7119_p12 = pnand %p7118_p10, %p9454_p11  ;;  %p7126_p8 = por %p7125_p7, %p7124_p5 }
 0x5f5   : > { %6796 = vmatprep.subr.msk.bf16.mxu0 %vm3660_vm10, %v5337_v59  ;;  %5598 = vmatprep.mubr.bf16.mxu0 %v9413_v14  ;;  %v5951_v23 = vsel %vm1776_vm6, %v5942_v57, 0  ;;  %v5949_v38 = vpack.c.bf16 %v8941_v29, %v8941_v29  ;;  %v5946_v43 = vpack.c.bf16 %v8933_v30, %v8933_v30  ;;  %v5948_v36 = vpack.c.bf16 %v8937_v42, %v8937_v42 }
 0x5f6   : > { %6791 = vmatmul.mubr.msk.bf16.vlgmr.msra.gmra.mxu1 %vm2761_vm1, %v557_v62  ;;  %v5555_v62 = vsel %vm3660_vm10, %v5336_v37, 0  ;;  %v5957_v40 = vsel %vm1776_vm6, %v5944_v51, 0  ;;  %v6139_v32 = vpack.c.bf16 %v8959_v13, %v8959_v13  ;;  %v6141_v30 = vpack.c.bf16 %v8973_v35, %v8973_v35  ;;  %p7120_p4 = pneg %p7119_p12 }
 0x5f7   : > { %5622 = vmatpush1.bf16.msra.mxu1 %v5549_v31  ;;  %5639 = vmatprep.mubr.bf16.mxu1 %v9413_v14  ;;  %v5963_v29 = vsel %vm1776_vm6, %v5946_v43, 0  ;;  %v5969_v42 = vsel %vm1776_vm6, %v5948_v36, 0  ;;  %v6138_v13 = vpack.c.bf16 %v8949_v47, %v8949_v47  ;;  %v6140_v54 = vpack.c.bf16 %v8961_v52, %v8961_v52 }
 0x5f8   : > { %6798 = vmatprep.subr.msk.bf16.mxu1 %vm3660_vm10, %v5339_v56  ;;  %v6143_v8 = vpack.c.bf16 %v9002_v2, %v9002_v2  ;;  %v6145_v47 = vpack.c.bf16 %v9019_v55, %v9019_v55  ;;  %v6142_v2 = vpack.c.bf16 %v8988_v17, %v8988_v17  ;;  %v6144_v5 = vpack.c.bf16 %v9004_v61, %v9004_v61  ;;  %p7127_p9 = pnand %p7126_p8, %p7120_p4 }
 0x5f9   : > { %v6147_v35 = vsel %vm1776_vm6, %v6138_v13, 0  ;;  %v6153_v52 = vsel %vm1776_vm6, %v6140_v54, 0 }
 0x5fa   : > { %v6159_v55 = vsel %vm1776_vm6, %v6142_v2, 0  ;;  %v6165_v17 = vsel %vm1776_vm6, %v6144_v5, 0 }
 0x5fb   : > { %6793 = vmatmul.mubr.msk.bf16.vlgmr.msra.gmra.mxu0 %vm3656_vm11, %v556_v28 }
 0x5fc   : > { %5663 = vmatpush1.bf16.msra.mxu0 %v5555_v62  ;;  %5680 = vmatprep.mubr.bf16.mxu0 %v9413_v14 }
 0x5fd   : > { %6800 = vmatprep.subr.msk.bf16.mxu0 %vm1776_vm6, %v5744_v48 }
 0x5fe   : > { %6795 = vmatmul.mubr.msk.bf16.vlgmr.msra.gmra.mxu1 %vm3656_vm11, %v556_v28 }
 0x5ff   : > { %5704 = vmatpush1.bf16.msra.mxu1 %v5561_v9  ;;  %5721 = vmatprep.mubr.bf16.mxu1 %v9413_v14 }
 0x600   : > { %6802 = vmatprep.subr.msk.bf16.mxu1 %vm1776_vm6, %v5746_v10 }
 0x603   : > { %6797 = vmatmul.mubr.msk.bf16.vlgmr.msra.gmra.mxu0 %vm3656_vm11, %v556_v28 }
 0x604   : > { %5793 = vmatpush1.bf16.msra.mxu0 %v5755_v11  ;;  %5810 = vmatprep.mubr.bf16.mxu0 %v9413_v14 }
 0x605   : > { %6804 = vmatprep.subr.msk.bf16.mxu0 %vm1776_vm6, %v5748_v49 }
 0x606   : > { %6799 = vmatmul.mubr.msk.bf16.vlgmr.msra.gmra.mxu1 %vm3656_vm11, %v556_v28 }
 0x607   : > { %5834 = vmatpush1.bf16.msra.mxu1 %v5761_v34  ;;  %5851 = vmatprep.mubr.bf16.mxu1 %v9413_v14 }
 0x608   : > { %6806 = vmatprep.subr.msk.bf16.mxu1 %vm1776_vm6, %v5750_v15 }
 0x60b   : > { %6801 = vmatmul.mubr.msk.bf16.vlgmr.msra.gmra.mxu0 %vm2761_vm1, %v9163_v41 }
 0x60c   : > { %5875 = vmatpush1.bf16.msra.mxu0 %v5767_v50  ;;  %5892 = vmatprep.mubr.bf16.mxu0 %v9413_v14 }
 0x60d   : > { %6808 = vmatprep.subr.msk.bf16.mxu0 %vm1776_vm6, %v5943_v19 }
 0x60e   : > { %6803 = vmatmul.mubr.msk.bf16.vlgmr.msra.gmra.mxu1 %vm2761_vm1, %v9163_v41 }
 0x60f   : > { %5916 = vmatpush1.bf16.msra.mxu1 %v5773_v7  ;;  %5933 = vmatprep.mubr.bf16.mxu1 %v9413_v14 }
 0x610   : > { %6810 = vmatprep.subr.msk.bf16.mxu1 %vm1776_vm6, %v5945_v12 }
 0x613   : > { %6805 = vmatmul.mubr.msk.bf16.vlgmr.msra.gmra.mxu0 %vm2761_vm1, %v9163_v41 }
 0x614   : > { %5989 = vmatpush1.bf16.msra.mxu0 %v5951_v23  ;;  %6006 = vmatprep.mubr.bf16.mxu0 %v9413_v14 }
 0x615   : > { %6812 = vmatprep.subr.msk.bf16.mxu0 %vm1776_vm6, %v5947_v21 }
 0x616   : > { %6807 = vmatmul.mubr.msk.bf16.vlgmr.msra.gmra.mxu1 %vm2761_vm1, %v9163_v41 }
 0x617   : > { %6030 = vmatpush1.bf16.msra.mxu1 %v5957_v40  ;;  %6047 = vmatprep.mubr.bf16.mxu1 %v9413_v14 }
 0x618   : > { %6814 = vmatprep.subr.msk.bf16.mxu1 %vm1776_vm6, %v5949_v38 }
 0x61b   : > { %6809 = vmatmul.mubr.msk.bf16.vlgmr.msra.gmra.mxu0 %vm2761_vm1, %v9163_v41 }
 0x61c   : > { %6071 = vmatpush1.bf16.msra.mxu0 %v5963_v29  ;;  %6088 = vmatprep.mubr.bf16.mxu0 %v9413_v14 }
 0x61d   : > { %6816 = vmatprep.subr.msk.bf16.mxu0 %vm1776_vm6, %v6139_v32 }
 0x61e   : > { %6811 = vmatmul.mubr.msk.bf16.vlgmr.msra.gmra.mxu1 %vm2761_vm1, %v9163_v41 }
 0x61f   : > { %6112 = vmatpush1.bf16.msra.mxu1 %v5969_v42  ;;  %6129 = vmatprep.mubr.bf16.mxu1 %v9413_v14 }
 0x620   : > { %6818 = vmatprep.subr.msk.bf16.mxu1 %vm1776_vm6, %v6141_v30 }
 0x623   : > { %6813 = vmatmul.mubr.msk.bf16.vlgmr.msra.gmra.mxu0 %vm2761_vm1, %v9163_v41 }
 0x624   : > { %6185 = vmatpush1.bf16.msra.mxu0 %v6147_v35  ;;  %6202 = vmatprep.mubr.bf16.mxu0 %v9413_v14 }
 0x625   : > { %6820 = vmatprep.subr.msk.bf16.mxu0 %vm1776_vm6, %v6143_v8 }
 0x626   : > { %6815 = vmatmul.mubr.msk.bf16.vlgmr.msra.gmra.mxu1 %vm2761_vm1, %v9163_v41 }
 0x627   : > { %6226 = vmatpush1.bf16.msra.mxu1 %v6153_v52  ;;  %6243 = vmatprep.mubr.bf16.mxu1 %v9413_v14 }
 0x628   : > { %6822 = vmatprep.subr.msk.bf16.mxu1 %vm1776_vm6, %v6145_v47 }
 0x62b   : > { %6817 = vmatmul.mubr.msk.bf16.vlgmr.msra.gmra.mxu0 %vm2761_vm1, %v9163_v41 }
 0x62c   : > { %6267 = vmatpush1.bf16.msra.mxu0 %v6159_v55  ;;  %6284 = vmatprep.mubr.bf16.mxu0 %v9413_v14 }
 0x62e   : > { %6819 = vmatmul.mubr.msk.bf16.vlgmr.msra.gmra.mxu1 %vm2761_vm1, %v9163_v41 }
 0x62f   : > { %6308 = vmatpush1.bf16.msra.mxu1 %v6165_v17  ;;  %6325 = vmatprep.mubr.bf16.mxu1 %v9413_v14 }
 0x633   : > { %6821 = vmatmul.mubr.msk.bf16.vlgmr.msra.gmra.mxu0 %vm2761_vm1, %v9163_v41 }
 0x636   : > { %6823 = vmatmul.mubr.msk.bf16.vlgmr.msra.gmra.mxu1 %vm2761_vm1, %v9163_v41 }
 0x6ab   : > { %v5409_v61 = vpop.f32.mrf.mxu0 }
 0x6ad   : > { %v5411_v24 = vpop.f32.mrf.mxu0 }
 0x6ae   : > { %v5450_v18 = vpop.f32.mrf.mxu1 }
 0x6af   : > { %v5413_v46 = vpop.f32.mrf.mxu0 }
 0x6b0   : > { %v5452_v45 = vpop.f32.mrf.mxu1 }
 0x6b1   : > { %v5414_v1 = vpop.f32.mrf.mxu0 }
 0x6b2   : > { %v5454_v16 = vpop.f32.mrf.mxu1 }
 0x6b3   : > { %v5491_v25 = vpop.f32.mrf.mxu0 }
 0x6b4   : > { %v5455_v53 = vpop.f32.mrf.mxu1 }
 0x6b5   : > { %v5493_v22 = vpop.f32.mrf.mxu0 }
 0x6b6   : > { %v5532_v60 = vpop.f32.mrf.mxu1 }
 0x6b7   : > { %v5495_v58 = vpop.f32.mrf.mxu0 }
 0x6b8   : > { %v5534_v14 = vpop.f32.mrf.mxu1 }
 0x6b9   : > { %v5496_v44 = vpop.f32.mrf.mxu0 }
 0x6ba   : > { %v5536_v0 = vpop.f32.mrf.mxu1 }
 0x6bb   : > { %v5600_v33 = vpop.f32.mrf.mxu0 }
 0x6bc   : > { %v5537_v4 = vpop.f32.mrf.mxu1  ;;  %v5601_v59 = vadd.f32 %v5600_v33, %v5409_v61 }
 0x6bd   : > { %v5602_v6 = vpop.f32.mrf.mxu0 }
 0x6be   : > { %v5641_v56 = vpop.f32.mrf.mxu1  ;;  %v5603_v31 = vadd.f32 %v5602_v6, %v5411_v24  ;;  %v5735_v3 = vadd.f32 %v5733_v20, %v5601_v59 }
 0x6bf   : > { %v5642_v37 = vadd.f32 %v5641_v56, %v5450_v18  ;;  %v5604_v28 = vpop.f32.mrf.mxu0 }
 0x6c0   : > { %v5736_v48 = vadd.f32 %v5733_v20, %v5603_v31  ;;  %v5643_v62 = vpop.f32.mrf.mxu1 }
 0x6c1   : > { %v5644_v10 = vadd.f32 %v5643_v62, %v5452_v45  ;;  %v5605_v9 = vpop.f32.mrf.mxu0  ;;  %v5737_v49 = vadd.f32 %v5733_v20, %v5642_v37 }
 0x6c2   : > { %v6845_v26 = vpack.c.bf16 %v5736_v48, %v5735_v3  ;;  %v5645_v39 = vpop.f32.mrf.mxu1 }
 0x6c3   : > { %v5738_v11 = vadd.f32 %v5733_v20, %v5644_v10  ;;  %v5682_v15 = vpop.f32.mrf.mxu0 }
 0x6c4   : > { %6366 = vst [vmem:[%s9252_s30] sm:$0xff] %v6845_v26  ;;  %v5646_v34 = vpop.f32.mrf.mxu1  ;;  %v5683_v63 = vadd.f32 %v5682_v15, %v5491_v25 }
 0x6c5   : > { %v6846_v41 = vpack.c.bf16 %v5738_v11, %v5737_v49  ;;  %v5684_v27 = vpop.f32.mrf.mxu0 }
 0x6c6   : > { %v5723_v19 = vpop.f32.mrf.mxu1  ;;  %v5685_v50 = vadd.f32 %v5684_v27, %v5493_v22  ;;  %v5739_v57 = vadd.f32 %v5733_v20, %v5683_v63 }
 0x6c7   : > { %6367 = vst [vmem:[%s9252_s30 + $0x8] sm:$0xff] %v6846_v41  ;;  %v5724_v12 = vadd.f32 %v5723_v19, %v5532_v60  ;;  %v5686_v7 = vpop.f32.mrf.mxu0 }
 0x6c8   : > { %v5740_v51 = vadd.f32 %v5733_v20, %v5685_v50  ;;  %v5725_v21 = vpop.f32.mrf.mxu1 }
 0x6c9   : > { %v5726_v23 = vadd.f32 %v5725_v21, %v5534_v14  ;;  %v5687_v38 = vpop.f32.mrf.mxu0  ;;  %v5741_v36 = vadd.f32 %v5733_v20, %v5724_v12 }
 0x6ca   : > { %v6847_v40 = vpack.c.bf16 %v5740_v51, %v5739_v57  ;;  %v5727_v43 = vpop.f32.mrf.mxu1 }
 0x6cb   : > { %v5742_v32 = vadd.f32 %v5733_v20, %v5726_v23  ;;  %v5812_v29 = vpop.f32.mrf.mxu0 }
 0x6cc   : > { %6368 = vst [vmem:[%s9252_s30 + $0x10] sm:$0xff] %v6847_v40  ;;  %v5728_v30 = vpop.f32.mrf.mxu1 }
 0x6cd   : > { %v6848_v42 = vpack.c.bf16 %v5742_v32, %v5741_v36  ;;  %v5814_v13 = vpop.f32.mrf.mxu0 }
 0x6ce   : > { %v5853_v54 = vpop.f32.mrf.mxu1  ;;  %v6849_v8 = vpack.c.bf16 %v5814_v13, %v5812_v29 }
 0x6cf   : > { %6369 = vst [vmem:[%s9252_s30 + $0x18] sm:$0xff] %v6848_v42  ;;  %v5816_v35 = vpop.f32.mrf.mxu0 }
 0x6d0   : > { %6402 = vst [vmem:[%s9252_s30 + $0x20] sm:$0x33] %v6849_v8  ;;  %v5855_v47 = vpop.f32.mrf.mxu1 }
 0x6d1   : > { %v6850_v52 = vpack.c.bf16 %v5855_v47, %v5853_v54  ;;  %v5817_v2 = vpop.f32.mrf.mxu0 }
 0x6d2   : > { %v5857_v5 = vpop.f32.mrf.mxu1 }
 0x6d3   : > { %6403 = vst [vmem:[%s9252_s30 + $0x28] sm:$0x33] %v6850_v52  ;;  %v5894_v55 = vpop.f32.mrf.mxu0 }
 0x6d4   : > { %v5858_v17 = vpop.f32.mrf.mxu1 }
 0x6d5   : > { %v5896_v61 = vpop.f32.mrf.mxu0 }
 0x6d6   : > { %v5935_v24 = vpop.f32.mrf.mxu1  ;;  %v6851_v18 = vpack.c.bf16 %v5896_v61, %v5894_v55 }
 0x6d7   : > { %v5898_v46 = vpop.f32.mrf.mxu0 }
 0x6d8   : > { %6404 = vst [vmem:[%s9252_s30 + $0x30] sm:$0x33] %v6851_v18  ;;  %v5937_v45 = vpop.f32.mrf.mxu1 }
 0x6d9   : > { %v6852_v1 = vpack.c.bf16 %v5937_v45, %v5935_v24  ;;  %v5899_v16 = vpop.f32.mrf.mxu0 }
 0x6da   : > { %v5939_v25 = vpop.f32.mrf.mxu1 }
 0x6db   : > { %6405 = vst [vmem:[%s9252_s30 + $0x38] sm:$0x33] %v6852_v1  ;;  %v6008_v53 = vpop.f32.mrf.mxu0 }
 0x6dc   : > { %v5940_v22 = vpop.f32.mrf.mxu1 }
 0x6dd   : > { %v6010_v60 = vpop.f32.mrf.mxu0 }
 0x6de   : > { %v6049_v58 = vpop.f32.mrf.mxu1  ;;  %v6853_v14 = vpack.c.bf16 %v6010_v60, %v6008_v53 }
 0x6df   : > { %v6012_v44 = vpop.f32.mrf.mxu0 }
 0x6e0   : > { %v6434_v0 = vrot.slane %v6853_v14, 6  ;;  %v6051_v33 = vpop.f32.mrf.mxu1 }
 0x6e1   : > { %v6854_v4 = vpack.c.bf16 %v6051_v33, %v6049_v58  ;;  %v6013_v59 = vpop.f32.mrf.mxu0 }
 0x6e2   : > { %6442 = vst [vmem:[%s9252_s30 + $0x20] sm:$0xcc] %v6434_v0  ;;  %v6053_v20 = vpop.f32.mrf.mxu1 }
 0x6e3   : > { %v6435_v6 = vrot.slane %v6854_v4, 6  ;;  %v6090_v56 = vpop.f32.mrf.mxu0 }
 0x6e4   : > { %v6054_v31 = vpop.f32.mrf.mxu1 }
 0x6e5   : > { %6443 = vst [vmem:[%s9252_s30 + $0x28] sm:$0xcc] %v6435_v6  ;;  %v6092_v37 = vpop.f32.mrf.mxu0 }
 0x6e6   : > { %v6131_v28 = vpop.f32.mrf.mxu1  ;;  %v6855_v3 = vpack.c.bf16 %v6092_v37, %v6090_v56 }
 0x6e7   : > { %v6094_v48 = vpop.f32.mrf.mxu0 }
 0x6e8   : > { %v6436_v62 = vrot.slane %v6855_v3, 6  ;;  %v6133_v10 = vpop.f32.mrf.mxu1 }
 0x6e9   : > { %v6856_v9 = vpack.c.bf16 %v6133_v10, %v6131_v28  ;;  %v6095_v26 = vpop.f32.mrf.mxu0 }
 0x6ea   : > { %6444 = vst [vmem:[%s9252_s30 + $0x30] sm:$0xcc] %v6436_v62  ;;  %v6135_v39 = vpop.f32.mrf.mxu1 }
 0x6eb   : > { %v6437_v49 = vrot.slane %v6856_v9, 6  ;;  %v6204_v11 = vpop.f32.mrf.mxu0 }
 0x6ec   : > { %v6136_v15 = vpop.f32.mrf.mxu1 }
 0x6ed   : > { %6445 = vst [vmem:[%s9252_s30 + $0x38] sm:$0xcc] %v6437_v49  ;;  %v6206_v34 = vpop.f32.mrf.mxu0 }
 0x6ee   : > { %v6245_v63 = vpop.f32.mrf.mxu1  ;;  %v6857_v41 = vpack.c.bf16 %v6206_v34, %v6204_v11 }
 0x6ef   : > { %v6208_v27 = vpop.f32.mrf.mxu0 }
 0x6f0   : > { %6478 = vst [vmem:[%s9252_s30 + $0x40] sm:$0x33] %v6857_v41  ;;  %v6247_v19 = vpop.f32.mrf.mxu1 }
 0x6f1   : > { %v6858_v50 = vpack.c.bf16 %v6247_v19, %v6245_v63  ;;  %v6209_v12 = vpop.f32.mrf.mxu0 }
 0x6f2   : > { %v6249_v7 = vpop.f32.mrf.mxu1 }
 0x6f3   : > { %6479 = vst [vmem:[%s9252_s30 + $0x48] sm:$0x33] %v6858_v50  ;;  %v6286_v57 = vpop.f32.mrf.mxu0 }
 0x6f4   : > { %v6250_v51 = vpop.f32.mrf.mxu1 }
 0x6f5   : > { %v6288_v21 = vpop.f32.mrf.mxu0 }
 0x6f6   : > { %v6327_v23 = vpop.f32.mrf.mxu1  ;;  %v6859_v38 = vpack.c.bf16 %v6288_v21, %v6286_v57 }
 0x6f7   : > { %v6290_v40 = vpop.f32.mrf.mxu0 }
 0x6f8   : > { %6480 = vst [vmem:[%s9252_s30 + $0x50] sm:$0x33] %v6859_v38  ;;  %v6329_v43 = vpop.f32.mrf.mxu1 }
 0x6f9   : > { %v6860_v36 = vpack.c.bf16 %v6329_v43, %v6327_v23  ;;  %v6291_v32 = vpop.f32.mrf.mxu0 }
 0x6fa   : > { %v6331_v29 = vpop.f32.mrf.mxu1 }
 0x6fb   : > { %6481 = vst [vmem:[%s9252_s30 + $0x58] sm:$0x33] %v6860_v36 }
 0x6fc   : > { %v6332_v30 = vpop.f32.mrf.mxu1 }
 0x6fd   : > { %7130 = shalt.err (!%p7127_p9)
}
 0x6fe   : > { %s7131_s30 = scalar_lea.hbm %s9273_s23, 1536  ;;  %s7135_s21 = scalar_lea.hbm %s9453_s0, 4608 }
 0x6ff   : > { %p7132_p0 = scmp.ne.s32.totalorder %s9273_s23, %s7131_s30  ;;  %p7136_p1 = scmp.lt.s32.totalorder %s9273_s23, %s9453_s0 }
 0x700   : > { %p7137_p3 = scmp.lt.s32.totalorder %s7135_s21, %s7131_s30 }
 0x701   : > { %p7133_p2 = pnand %p7132_p0, %p9454_p11 }
 0x702   : > { %p7138_p6 = por %p7137_p3, %p7136_p1 }
 0x703   : > { %p7134_p13 = pneg %p7133_p2 }
 0x705   : > { %p7139_p10 = pnand %p7138_p6, %p7134_p13 }
 0x707   : > { %7142 = shalt.err (!%p7139_p10)
}
 0x708   : > { %s7189_s26 = smov 512   ;;  %s7190_s12 = smov 1536  }
 0x709   : > { %s7191_s25 = smov 32   ;;  %s9455_s1 = scalar_lea.sflag [#allocation4], %s7369_s20 }
 0x70a   : > { %6867 = dma.vmem_to_hbm [thread:$0]  (%p9454_p11), %s9276_s18, 1536, %s9273_s23, %s9455_s1, %s7189_s26, %s7190_s12, %s7191_s25  }
 0x70b PF: > { %s9456_s16 = sld [smem:[#allocation8_spill]]  ;;  %p6878_p12 = scmp.ge.s32.totalorder %s7181_s24, 2 }
 0x70c   : > { %s9457_s19 = sld [smem:[#allocation14_spill]] }
 0x711   : > { %s6511_s17 = sand.u32 1, %s9456_s16  }
 0x712   : > { %p9458_p4 = scmp.ne.s32.totalorder %s9457_s19, 0  ;;  %s6512_s30 = scalar_lea.sflag [#allocation4], %s6511_s17 }
 0x714   : > { %p6874_p5 = pnand %p6878_p12, %p9458_p4 }
 0x716   : > { %p6875_p7 = pneg %p6874_p5 }
 0x718   : > { %7164 = dma.done.wait (%p6875_p7), %s6512_s30, 1536  }
 0x719   : > { %7166 = vsyncadd (%p6875_p7), %s6512_s30, 4294965760  ;;  %s9459_s24 = sld [smem:[#allocation11_spill]]  ;;  %s9462_s21 = smov %s7173_s22 }
 0x71a   : > { %s9460_s28 = sld [smem:[#allocation9_spill]] }
 0x71b   : > { %s9461_s23 = sld [smem:[#allocation12_spill]] }
 0x71f   : > { %p29_p8 = scmp.ge.s32.totalorder %s9459_s24, 5  }
 0x720   : > { %s9463_s22 = smov %s9460_s28 }
 0x721   :  { %31 = sbr.rel (!%p29_p8) target bundleno = 10 (0xa), region = 129 }
 0x726   :  { %6517 = vsyncpa [#allocation3], 1 }
 0x727   :  { %6519 = vsyncpa [#allocation3 + $0x1], 1 }
 0x728   :  { %6520 = vsyncpa [#allocation4], 1 }
 0x729   :  { %6522 = vsyncpa [#allocation4 + $0x1], 1 }

</bundles_post_ra>
